<compile_context>
chip_gen: v6e
topology: v6e:2x2x1
jax: 0.10.0
libtpu: 0.0.40
codegen_flags: <defaults>
</compile_context>

<pallas_src>
import functools

import jax
import jax.numpy as jnp
from jax.experimental import pallas as pl
from jax.experimental.pallas import tpu as pltpu

# ---- small BERT-like config (stand-in for bert-base-uncased) ----
VOCAB = 64
MAX_POS = 16
HIDDEN = 32
N_LAYERS = 2
N_HEADS = 4
HEAD_DIM = HIDDEN // N_HEADS
INTERMEDIATE = 64
NUM_LABELS = 2            # HF BertForSequenceClassification default
LN_EPS = 1e-12
N_ENC = 2                 # encoder1 + encoder2
LANE = 128                # lane-dense width for the classifier-head output


# ----------------------------- Pallas kernel -----------------------------
def _encoder_kernel(ids_ref,
                    word_emb_ref, pos_emb_ref, type_emb_ref,
                    emb_g_ref, emb_b_ref,
                    qkv_w_ref, qkv_b_ref, o_w_ref, o_b_ref,
                    ln1_g_ref, ln1_b_ref,
                    f1_w_ref, f1_b_ref, f2_w_ref, f2_b_ref,
                    ln2_g_ref, ln2_b_ref,
                    pool_w_ref, pool_b_ref, cls_w_ref, cls_b_ref,
                    logits_ref, tmp_ref, *, B, S):
    """Full BertForSequenceClassification forward for ONE encoder (grid step)."""
    H, D, NH = HIDDEN, HEAD_DIM, N_HEADS
    T = B * S
    scale = 1.0 / (D ** 0.5)

    def ln(x, g, b):
        mu = jnp.mean(x, axis=-1, keepdims=True)
        xc = x - mu
        var = jnp.mean(xc * xc, axis=-1, keepdims=True)
        return xc * jax.lax.rsqrt(var + LN_EPS) * g + b

    def matmul(x, w):
        # bf16 operands -> MXU native; f32 accumulation.
        return jnp.dot(x.astype(jnp.bfloat16), w,
                       preferred_element_type=jnp.float32)

    # ---- fused embedding lookup: word-id gather (ids live in SMEM) ----
    for t in range(T):
        tmp_ref[pl.ds(t, 1), :] = word_emb_ref[pl.ds(ids_ref[t], 1), :]
    pos = jnp.concatenate([pos_emb_ref[0:S, :]] * B, axis=0)            # [T, H]
    x = ln(tmp_ref[...] + pos + type_emb_ref[0:1, :],
           emb_g_ref[...], emb_b_ref[...])                              # [T, H] f32

    for l in range(N_LAYERS):
        # ---- fused QKV projection: [T, 3H] ----
        qkv = matmul(x, qkv_w_ref[l]) + qkv_b_ref[l]
        qkv = qkv.reshape(B, S, 3 * H)

        # ---- attention: batched over the batch dim; one softmax per head;
        #      head outputs written into the VMEM scratch slab (no concat) ----
        for hh in range(NH):
            qh = qkv[:, :, hh * D:(hh + 1) * D].astype(jnp.bfloat16)
            kh = qkv[:, :, H + hh * D:H + (hh + 1) * D].astype(jnp.bfloat16)
            vh = qkv[:, :, 2 * H + hh * D:2 * H + (hh + 1) * D].astype(jnp.bfloat16)
            s = jnp.einsum('bqd,bkd->bqk', qh, kh,
                           preferred_element_type=jnp.float32) * scale  # [B,S,S]
            s = s - jnp.max(s, axis=-1, keepdims=True)
            p = jnp.exp(s)
            p = p * pl.reciprocal(jnp.sum(p, axis=-1, keepdims=True),
                                  approx=True)
            ctx_h = jnp.einsum('bqk,bkd->bqd', p.astype(jnp.bfloat16), vh,
                               preferred_element_type=jnp.float32)      # [B,S,D]
            tmp_ref[:, hh * D:(hh + 1) * D] = ctx_h.reshape(T, D)
        ctx = tmp_ref[...]                                              # [T, H]

        # ---- attention output proj + residual + LN ----
        attn_out = matmul(ctx, o_w_ref[l]) + o_b_ref[l]
        x = ln(attn_out + x, ln1_g_ref[l], ln1_b_ref[l])

        # ---- FFN (GELU) + residual + LN ----
        ffn = matmul(x, f1_w_ref[l]) + f1_b_ref[l]
        # TODO(synk): HF BERT uses erf GELU; tanh approximation used here.
        ffn = 0.5 * ffn * (1.0 + jnp.tanh(
            0.7978845608028654 * (ffn + 0.044715 * ffn * ffn * ffn)))
        ffn = matmul(ffn, f2_w_ref[l]) + f2_b_ref[l]
        x = ln(ffn + x, ln2_g_ref[l], ln2_b_ref[l])

    # ---- pooler ([CLS] token per batch row) + lane-dense classifier head ----
    cls = x.reshape(B, S, H)[:, 0, :]                                   # [B, H]
    pooled = jnp.tanh(matmul(cls, pool_w_ref[...]) + pool_b_ref[...])
    logits_ref[...] = matmul(pooled, cls_w_ref[...]) + cls_b_ref[...]   # [B, 128]


# ----------------------------- kernel wrapper -----------------------------
_ENC_PARAM_NAMES = ["word_emb", "pos_emb", "type_emb",
                    "emb_ln_g", "emb_ln_b",
                    "qkv_w", "qkv_b", "o_w", "o_b",
                    "ln1_g", "ln1_b",
                    "f1_w", "f1_b", "f2_w", "f2_b",
                    "ln2_g", "ln2_b",
                    "pool_w", "pool_b", "cls_w", "cls_b"]


def encoders_forward(params, ids, B, S):
    """ids: [B*S] int32 token ids -> lane-padded logits [2, B, LANE]."""
    args = [params[n] for n in _ENC_PARAM_NAMES]

    def spec(shape):
        nd = len(shape)
        # leading axis = encoder index (squeezed out of the kernel ref);
        # everything else is untiled (full last-two dims, so no (8,128) issue).
        return pl.BlockSpec(
            (None,) + tuple(shape[1:]),
            lambda e, ids_smem, _nd=nd: (e,) + (0,) * (_nd - 1))

    return pl.pallas_call(
        functools.partial(_encoder_kernel, B=B, S=S),
        out_shape=jax.ShapeDtypeStruct((N_ENC, B, LANE), jnp.float32),
        grid_spec=pltpu.PrefetchScalarGridSpec(
            num_scalar_prefetch=1,                 # token ids -> SMEM
            grid=(N_ENC,),
            in_specs=[spec(a.shape) for a in args],
            out_specs=pl.BlockSpec((None, B, LANE),
                                   lambda e, ids_smem: (e, 0, 0)),
            scratch_shapes=[pltpu.VMEM((B * S, HIDDEN), jnp.float32)]),
        compiler_params=pltpu.CompilerParams(
            dimension_semantics=("parallel",)),    # one encoder per TC on v7x
    )(ids, *args)


# ----------------------------- parameter init -----------------------------
def _dense(key, fan_in, fan_out):
    kw, kb = jax.random.split(key)
    w = jax.random.normal(kw, (fan_in, fan_out), jnp.float32) * 0.02
    b = jax.random.normal(kb, (fan_out,), jnp.float32) * 0.02
    return w, b


def init_encoder_params(key):
    keys = jax.random.split(key, 5 + N_LAYERS)
    p = {
        "word_emb": jax.random.normal(keys[0], (VOCAB, HIDDEN), jnp.float32) * 0.02,
        "pos_emb": jax.random.normal(keys[1], (MAX_POS, HIDDEN), jnp.float32) * 0.02,
        "type_emb": jax.random.normal(keys[2], (2, HIDDEN), jnp.float32) * 0.02,
        "emb_ln_g": jnp.ones((1, HIDDEN), jnp.float32),
        "emb_ln_b": jnp.zeros((1, HIDDEN), jnp.float32),
    }
    qkv_w, qkv_b, o_w, o_b = [], [], [], []
    f1_w, f1_b, f2_w, f2_b = [], [], [], []
    ln1_g, ln1_b, ln2_g, ln2_b = [], [], [], []
    for l in range(N_LAYERS):
        lk = jax.random.split(keys[3 + l], 6)
        qw, qb = _dense(lk[0], HIDDEN, HIDDEN)
        kw, kb = _dense(lk[1], HIDDEN, HIDDEN)
        vw, vb = _dense(lk[2], HIDDEN, HIDDEN)
        ow, ob = _dense(lk[3], HIDDEN, HIDDEN)
        w1, b1 = _dense(lk[4], HIDDEN, INTERMEDIATE)
        w2, b2 = _dense(lk[5], INTERMEDIATE, HIDDEN)
        qkv_w.append(jnp.concatenate([qw, kw, vw], axis=1))       # [H, 3H]
        qkv_b.append(jnp.concatenate([qb, kb, vb])[None, :])      # [1, 3H]
        o_w.append(ow); o_b.append(ob[None, :])
        f1_w.append(w1); f1_b.append(b1[None, :])
        f2_w.append(w2); f2_b.append(b2[None, :])
        ln1_g.append(jnp.ones((1, HIDDEN), jnp.float32))
        ln1_b.append(jnp.zeros((1, HIDDEN), jnp.float32))
        ln2_g.append(jnp.ones((1, HIDDEN), jnp.float32))
        ln2_b.append(jnp.zeros((1, HIDDEN), jnp.float32))

    stack = lambda xs, dt: jnp.stack(xs).astype(dt)
    p.update({
        "qkv_w": stack(qkv_w, jnp.bfloat16), "qkv_b": stack(qkv_b, jnp.float32),
        "o_w": stack(o_w, jnp.bfloat16),     "o_b": stack(o_b, jnp.float32),
        "ln1_g": stack(ln1_g, jnp.float32),  "ln1_b": stack(ln1_b, jnp.float32),
        "f1_w": stack(f1_w, jnp.bfloat16),   "f1_b": stack(f1_b, jnp.float32),
        "f2_w": stack(f2_w, jnp.bfloat16),   "f2_b": stack(f2_b, jnp.float32),
        "ln2_g": stack(ln2_g, jnp.float32),  "ln2_b": stack(ln2_b, jnp.float32),
    })
    pw, pb = _dense(keys[3 + N_LAYERS], HIDDEN, HIDDEN)
    cw, cb = _dense(keys[4 + N_LAYERS], HIDDEN, NUM_LABELS)
    # lane-dense classifier head: pad output width NUM_LABELS -> LANE (=128).
    cw_pad = jnp.zeros((HIDDEN, LANE), jnp.float32).at[:, :NUM_LABELS].set(cw)
    cb_pad = jnp.zeros((1, LANE), jnp.float32).at[:, :NUM_LABELS].set(cb[None, :])
    p.update({"pool_w": pw.astype(jnp.bfloat16), "pool_b": pb[None, :],
              "cls_w": cw_pad.astype(jnp.bfloat16), "cls_b": cb_pad})
    return p


def init_all_params(key):
    k1, k2, k3 = jax.random.split(key, 3)
    p1 = init_encoder_params(k1)
    p2 = init_encoder_params(k2)
    # stack encoder1 / encoder2 along a leading axis of size 2
    params = jax.tree_util.tree_map(lambda a, b: jnp.stack([a, b], axis=0), p1, p2)
    fc_w, fc_b = _dense(k3, 2 * NUM_LABELS, 1)   # OurClassifier(4)
    params["fc_w"] = fc_w
    params["fc_b"] = fc_b.reshape(1, 1)
    return params


# ----------------------------- model forward -----------------------------
def bert_double_forward(params, text, label):
    # TODO(synk): the reference forward only calls encoder2, and
    # `torch.cat(text_fea, 1)` on a [B, 2] logits tensor raises in PyTorch;
    # we implement the evident intent (concat both encoders' logits to get the
    # 4 features expected by OurClassifier(4)). `label` only feeds the unused
    # `text_loss`, so no cross-entropy loss is computed.
    del label
    B, S = text.shape
    ids = text.reshape(-1).astype(jnp.int32)                 # [B*S] -> SMEM prefetch
    padded = encoders_forward(params, ids, B, S)             # [2, B, 128]
    logits = padded[:, :, :NUM_LABELS]                       # [2, B, 2]
    # OurClassifier ([B,4]@[4,1] + sigmoid): plain JAX — XLA fuses it for free.
    fea = jnp.concatenate([logits[0], logits[1]], axis=-1)   # [B, 4]
    y = fea @ params["fc_w"] + params["fc_b"]                # [B, 1]
    return jax.nn.sigmoid(jnp.squeeze(y, axis=1))            # [B]


# --------------------------------- main ---------------------------------
if __name__ == "__main__":
    key = jax.random.PRNGKey(0)
    k_params, k_text, k_label = jax.random.split(key, 3)
    params = init_all_params(k_params)

    B, S = 2, 8
    text = jax.random.randint(k_text, (B, S), 0, VOCAB, dtype=jnp.int32)
    label = jax.random.randint(k_label, (B,), 0, NUM_LABELS, dtype=jnp.int32)

    out = jax.jit(bert_double_forward)(params, text, label)
    out = jax.block_until_ready(out)
    assert out.shape == (B,) and out.dtype == jnp.float32
    assert bool(jnp.all((out >= 0.0) & (out <= 1.0)))
    print("KERNEL_OK")
</pallas_src>

<mosaic_0001>
module attributes {stable_mosaic.version = 11 : i64} {
  func.func @_encoder_kernel(%arg0: i32, %arg1: memref<16xi32, #tpu.memory_space<smem>>, %arg2: memref<1x64x32xf32, #tpu.memory_space<vmem>>, %arg3: memref<1x16x32xf32, #tpu.memory_space<vmem>>, %arg4: memref<1x2x32xf32, #tpu.memory_space<vmem>>, %arg5: memref<1x1x32xf32, #tpu.memory_space<vmem>>, %arg6: memref<1x1x32xf32, #tpu.memory_space<vmem>>, %arg7: memref<1x2x32x96xbf16, #tpu.memory_space<vmem>>, %arg8: memref<1x2x1x96xf32, #tpu.memory_space<vmem>>, %arg9: memref<1x2x32x32xbf16, #tpu.memory_space<vmem>>, %arg10: memref<1x2x1x32xf32, #tpu.memory_space<vmem>>, %arg11: memref<1x2x1x32xf32, #tpu.memory_space<vmem>>, %arg12: memref<1x2x1x32xf32, #tpu.memory_space<vmem>>, %arg13: memref<1x2x32x64xbf16, #tpu.memory_space<vmem>>, %arg14: memref<1x2x1x64xf32, #tpu.memory_space<vmem>>, %arg15: memref<1x2x64x32xbf16, #tpu.memory_space<vmem>>, %arg16: memref<1x2x1x32xf32, #tpu.memory_space<vmem>>, %arg17: memref<1x2x1x32xf32, #tpu.memory_space<vmem>>, %arg18: memref<1x2x1x32xf32, #tpu.memory_space<vmem>>, %arg19: memref<1x32x32xbf16, #tpu.memory_space<vmem>>, %arg20: memref<1x1x32xf32, #tpu.memory_space<vmem>>, %arg21: memref<1x32x128xbf16, #tpu.memory_space<vmem>>, %arg22: memref<1x1x128xf32, #tpu.memory_space<vmem>>, %arg23: memref<1x2x128xf32, #tpu.memory_space<vmem>>, %arg24: memref<16x32xf32, #tpu.memory_space<vmem>>) attributes {dimension_semantics = [#tpu.dimension_semantics<parallel>], iteration_bounds = array<i64: 2>, scalar_prefetch = 1 : i64, scratch_operands = 1 : i64, tpu.core_type = #tpu.core_type<tc>, window_params = [{transform_indices = @transform_0, window_bounds = array<i64: 1, 64, 32>}, {transform_indices = @transform_1, window_bounds = array<i64: 1, 16, 32>}, {transform_indices = @transform_2, window_bounds = array<i64: 1, 2, 32>}, {transform_indices = @transform_3, window_bounds = array<i64: 1, 1, 32>}, {transform_indices = @transform_4, window_bounds = array<i64: 1, 1, 32>}, {transform_indices = @transform_5, window_bounds = array<i64: 1, 2, 32, 96>}, {transform_indices = @transform_6, window_bounds = array<i64: 1, 2, 1, 96>}, {transform_indices = @transform_7, window_bounds = array<i64: 1, 2, 32, 32>}, {transform_indices = @transform_8, window_bounds = array<i64: 1, 2, 1, 32>}, {transform_indices = @transform_9, window_bounds = array<i64: 1, 2, 1, 32>}, {transform_indices = @transform_10, window_bounds = array<i64: 1, 2, 1, 32>}, {transform_indices = @transform_11, window_bounds = array<i64: 1, 2, 32, 64>}, {transform_indices = @transform_12, window_bounds = array<i64: 1, 2, 1, 64>}, {transform_indices = @transform_13, window_bounds = array<i64: 1, 2, 64, 32>}, {transform_indices = @transform_14, window_bounds = array<i64: 1, 2, 1, 32>}, {transform_indices = @transform_15, window_bounds = array<i64: 1, 2, 1, 32>}, {transform_indices = @transform_16, window_bounds = array<i64: 1, 2, 1, 32>}, {transform_indices = @transform_17, window_bounds = array<i64: 1, 32, 32>}, {transform_indices = @transform_18, window_bounds = array<i64: 1, 1, 32>}, {transform_indices = @transform_19, window_bounds = array<i64: 1, 32, 128>}, {transform_indices = @transform_20, window_bounds = array<i64: 1, 1, 128>}, {transform_indices = @transform_21, window_bounds = array<i64: 1, 2, 128>}]} {
    %c0 = arith.constant 0 : index
    %0 = memref.load %arg1[%c0] : memref<16xi32, #tpu.memory_space<smem>>
    %c0_0 = arith.constant 0 : index
    %1 = arith.index_cast %0 : i32 to index
    %c0_1 = arith.constant 0 : index
    %2 = vector.load %arg2[%c0_0, %1, %c0_1] : memref<1x64x32xf32, #tpu.memory_space<vmem>>, vector<1x1x32xf32>
    %3 = vector.shape_cast %2 : vector<1x1x32xf32> to vector<1x32xf32>
    %c0_2 = arith.constant 0 : index
    %c0_3 = arith.constant 0 : index
    %4 = vector.load %arg24[%c0_2, %c0_3] : memref<16x32xf32, #tpu.memory_space<vmem>>, vector<1x32xf32>
    tpu.vector_store %arg24[%c0_2, %c0_3], %3 {strides = array<i32>} : memref<16x32xf32, #tpu.memory_space<vmem>>, vector<1x32xf32>,
    %c1 = arith.constant 1 : index
    %5 = memref.load %arg1[%c1] : memref<16xi32, #tpu.memory_space<smem>>
    %c0_4 = arith.constant 0 : index
    %6 = arith.index_cast %5 : i32 to index
    %c0_5 = arith.constant 0 : index
    %7 = vector.load %arg2[%c0_4, %6, %c0_5] : memref<1x64x32xf32, #tpu.memory_space<vmem>>, vector<1x1x32xf32>
    %8 = vector.shape_cast %7 : vector<1x1x32xf32> to vector<1x32xf32>
    %c1_6 = arith.constant 1 : index
    %c0_7 = arith.constant 0 : index
    %9 = vector.load %arg24[%c1_6, %c0_7] : memref<16x32xf32, #tpu.memory_space<vmem>>, vector<1x32xf32>
    tpu.vector_store %arg24[%c1_6, %c0_7], %8 {strides = array<i32>} : memref<16x32xf32, #tpu.memory_space<vmem>>, vector<1x32xf32>,
    %c2 = arith.constant 2 : index
    %10 = memref.load %arg1[%c2] : memref<16xi32, #tpu.memory_space<smem>>
    %c0_8 = arith.constant 0 : index
    %11 = arith.index_cast %10 : i32 to index
    %c0_9 = arith.constant 0 : index
    %12 = vector.load %arg2[%c0_8, %11, %c0_9] : memref<1x64x32xf32, #tpu.memory_space<vmem>>, vector<1x1x32xf32>
    %13 = vector.shape_cast %12 : vector<1x1x32xf32> to vector<1x32xf32>
    %c2_10 = arith.constant 2 : index
    %c0_11 = arith.constant 0 : index
    %14 = vector.load %arg24[%c2_10, %c0_11] : memref<16x32xf32, #tpu.memory_space<vmem>>, vector<1x32xf32>
    tpu.vector_store %arg24[%c2_10, %c0_11], %13 {strides = array<i32>} : memref<16x32xf32, #tpu.memory_space<vmem>>, vector<1x32xf32>,
    %c3 = arith.constant 3 : index
    %15 = memref.load %arg1[%c3] : memref<16xi32, #tpu.memory_space<smem>>
    %c0_12 = arith.constant 0 : index
    %16 = arith.index_cast %15 : i32 to index
    %c0_13 = arith.constant 0 : index
    %17 = vector.load %arg2[%c0_12, %16, %c0_13] : memref<1x64x32xf32, #tpu.memory_space<vmem>>, vector<1x1x32xf32>
    %18 = vector.shape_cast %17 : vector<1x1x32xf32> to vector<1x32xf32>
    %c3_14 = arith.constant 3 : index
    %c0_15 = arith.constant 0 : index
    %19 = vector.load %arg24[%c3_14, %c0_15] : memref<16x32xf32, #tpu.memory_space<vmem>>, vector<1x32xf32>
    tpu.vector_store %arg24[%c3_14, %c0_15], %18 {strides = array<i32>} : memref<16x32xf32, #tpu.memory_space<vmem>>, vector<1x32xf32>,
    %c4 = arith.constant 4 : index
    %20 = memref.load %arg1[%c4] : memref<16xi32, #tpu.memory_space<smem>>
    %c0_16 = arith.constant 0 : index
    %21 = arith.index_cast %20 : i32 to index
    %c0_17 = arith.constant 0 : index
    %22 = vector.load %arg2[%c0_16, %21, %c0_17] : memref<1x64x32xf32, #tpu.memory_space<vmem>>, vector<1x1x32xf32>
    %23 = vector.shape_cast %22 : vector<1x1x32xf32> to vector<1x32xf32>
    %c4_18 = arith.constant 4 : index
    %c0_19 = arith.constant 0 : index
    %24 = vector.load %arg24[%c4_18, %c0_19] : memref<16x32xf32, #tpu.memory_space<vmem>>, vector<1x32xf32>
    tpu.vector_store %arg24[%c4_18, %c0_19], %23 {strides = array<i32>} : memref<16x32xf32, #tpu.memory_space<vmem>>, vector<1x32xf32>,
    %c5 = arith.constant 5 : index
    %25 = memref.load %arg1[%c5] : memref<16xi32, #tpu.memory_space<smem>>
    %c0_20 = arith.constant 0 : index
    %26 = arith.index_cast %25 : i32 to index
    %c0_21 = arith.constant 0 : index
    %27 = vector.load %arg2[%c0_20, %26, %c0_21] : memref<1x64x32xf32, #tpu.memory_space<vmem>>, vector<1x1x32xf32>
    %28 = vector.shape_cast %27 : vector<1x1x32xf32> to vector<1x32xf32>
    %c5_22 = arith.constant 5 : index
    %c0_23 = arith.constant 0 : index
    %29 = vector.load %arg24[%c5_22, %c0_23] : memref<16x32xf32, #tpu.memory_space<vmem>>, vector<1x32xf32>
    tpu.vector_store %arg24[%c5_22, %c0_23], %28 {strides = array<i32>} : memref<16x32xf32, #tpu.memory_space<vmem>>, vector<1x32xf32>,
    %c6 = arith.constant 6 : index
    %30 = memref.load %arg1[%c6] : memref<16xi32, #tpu.memory_space<smem>>
    %c0_24 = arith.constant 0 : index
    %31 = arith.index_cast %30 : i32 to index
    %c0_25 = arith.constant 0 : index
    %32 = vector.load %arg2[%c0_24, %31, %c0_25] : memref<1x64x32xf32, #tpu.memory_space<vmem>>, vector<1x1x32xf32>
    %33 = vector.shape_cast %32 : vector<1x1x32xf32> to vector<1x32xf32>
    %c6_26 = arith.constant 6 : index
    %c0_27 = arith.constant 0 : index
    %34 = vector.load %arg24[%c6_26, %c0_27] : memref<16x32xf32, #tpu.memory_space<vmem>>, vector<1x32xf32>
    tpu.vector_store %arg24[%c6_26, %c0_27], %33 {strides = array<i32>} : memref<16x32xf32, #tpu.memory_space<vmem>>, vector<1x32xf32>,
    %c7 = arith.constant 7 : index
    %35 = memref.load %arg1[%c7] : memref<16xi32, #tpu.memory_space<smem>>
    %c0_28 = arith.constant 0 : index
    %36 = arith.index_cast %35 : i32 to index
    %c0_29 = arith.constant 0 : index
    %37 = vector.load %arg2[%c0_28, %36, %c0_29] : memref<1x64x32xf32, #tpu.memory_space<vmem>>, vector<1x1x32xf32>
    %38 = vector.shape_cast %37 : vector<1x1x32xf32> to vector<1x32xf32>
    %c7_30 = arith.constant 7 : index
    %c0_31 = arith.constant 0 : index
    %39 = vector.load %arg24[%c7_30, %c0_31] : memref<16x32xf32, #tpu.memory_space<vmem>>, vector<1x32xf32>
    tpu.vector_store %arg24[%c7_30, %c0_31], %38 {strides = array<i32>} : memref<16x32xf32, #tpu.memory_space<vmem>>, vector<1x32xf32>,
    %c8 = arith.constant 8 : index
    %40 = memref.load %arg1[%c8] : memref<16xi32, #tpu.memory_space<smem>>
    %c0_32 = arith.constant 0 : index
    %41 = arith.index_cast %40 : i32 to index
    %c0_33 = arith.constant 0 : index
    %42 = vector.load %arg2[%c0_32, %41, %c0_33] : memref<1x64x32xf32, #tpu.memory_space<vmem>>, vector<1x1x32xf32>
    %43 = vector.shape_cast %42 : vector<1x1x32xf32> to vector<1x32xf32>
    %c8_34 = arith.constant 8 : index
    %c0_35 = arith.constant 0 : index
    %44 = vector.load %arg24[%c8_34, %c0_35] : memref<16x32xf32, #tpu.memory_space<vmem>>, vector<1x32xf32>
    tpu.vector_store %arg24[%c8_34, %c0_35], %43 {strides = array<i32>} : memref<16x32xf32, #tpu.memory_space<vmem>>, vector<1x32xf32>,
    %c9 = arith.constant 9 : index
    %45 = memref.load %arg1[%c9] : memref<16xi32, #tpu.memory_space<smem>>
    %c0_36 = arith.constant 0 : index
    %46 = arith.index_cast %45 : i32 to index
    %c0_37 = arith.constant 0 : index
    %47 = vector.load %arg2[%c0_36, %46, %c0_37] : memref<1x64x32xf32, #tpu.memory_space<vmem>>, vector<1x1x32xf32>
    %48 = vector.shape_cast %47 : vector<1x1x32xf32> to vector<1x32xf32>
    %c9_38 = arith.constant 9 : index
    %c0_39 = arith.constant 0 : index
    %49 = vector.load %arg24[%c9_38, %c0_39] : memref<16x32xf32, #tpu.memory_space<vmem>>, vector<1x32xf32>
    tpu.vector_store %arg24[%c9_38, %c0_39], %48 {strides = array<i32>} : memref<16x32xf32, #tpu.memory_space<vmem>>, vector<1x32xf32>,
    %c10 = arith.constant 10 : index
    %50 = memref.load %arg1[%c10] : memref<16xi32, #tpu.memory_space<smem>>
    %c0_40 = arith.constant 0 : index
    %51 = arith.index_cast %50 : i32 to index
    %c0_41 = arith.constant 0 : index
    %52 = vector.load %arg2[%c0_40, %51, %c0_41] : memref<1x64x32xf32, #tpu.memory_space<vmem>>, vector<1x1x32xf32>
    %53 = vector.shape_cast %52 : vector<1x1x32xf32> to vector<1x32xf32>
    %c10_42 = arith.constant 10 : index
    %c0_43 = arith.constant 0 : index
    %54 = vector.load %arg24[%c10_42, %c0_43] : memref<16x32xf32, #tpu.memory_space<vmem>>, vector<1x32xf32>
    tpu.vector_store %arg24[%c10_42, %c0_43], %53 {strides = array<i32>} : memref<16x32xf32, #tpu.memory_space<vmem>>, vector<1x32xf32>,
    %c11 = arith.constant 11 : index
    %55 = memref.load %arg1[%c11] : memref<16xi32, #tpu.memory_space<smem>>
    %c0_44 = arith.constant 0 : index
    %56 = arith.index_cast %55 : i32 to index
    %c0_45 = arith.constant 0 : index
    %57 = vector.load %arg2[%c0_44, %56, %c0_45] : memref<1x64x32xf32, #tpu.memory_space<vmem>>, vector<1x1x32xf32>
    %58 = vector.shape_cast %57 : vector<1x1x32xf32> to vector<1x32xf32>
    %c11_46 = arith.constant 11 : index
    %c0_47 = arith.constant 0 : index
    %59 = vector.load %arg24[%c11_46, %c0_47] : memref<16x32xf32, #tpu.memory_space<vmem>>, vector<1x32xf32>
    tpu.vector_store %arg24[%c11_46, %c0_47], %58 {strides = array<i32>} : memref<16x32xf32, #tpu.memory_space<vmem>>, vector<1x32xf32>,
    %c12 = arith.constant 12 : index
    %60 = memref.load %arg1[%c12] : memref<16xi32, #tpu.memory_space<smem>>
    %c0_48 = arith.constant 0 : index
    %61 = arith.index_cast %60 : i32 to index
    %c0_49 = arith.constant 0 : index
    %62 = vector.load %arg2[%c0_48, %61, %c0_49] : memref<1x64x32xf32, #tpu.memory_space<vmem>>, vector<1x1x32xf32>
    %63 = vector.shape_cast %62 : vector<1x1x32xf32> to vector<1x32xf32>
    %c12_50 = arith.constant 12 : index
    %c0_51 = arith.constant 0 : index
    %64 = vector.load %arg24[%c12_50, %c0_51] : memref<16x32xf32, #tpu.memory_space<vmem>>, vector<1x32xf32>
    tpu.vector_store %arg24[%c12_50, %c0_51], %63 {strides = array<i32>} : memref<16x32xf32, #tpu.memory_space<vmem>>, vector<1x32xf32>,
    %c13 = arith.constant 13 : index
    %65 = memref.load %arg1[%c13] : memref<16xi32, #tpu.memory_space<smem>>
    %c0_52 = arith.constant 0 : index
    %66 = arith.index_cast %65 : i32 to index
    %c0_53 = arith.constant 0 : index
    %67 = vector.load %arg2[%c0_52, %66, %c0_53] : memref<1x64x32xf32, #tpu.memory_space<vmem>>, vector<1x1x32xf32>
    %68 = vector.shape_cast %67 : vector<1x1x32xf32> to vector<1x32xf32>
    %c13_54 = arith.constant 13 : index
    %c0_55 = arith.constant 0 : index
    %69 = vector.load %arg24[%c13_54, %c0_55] : memref<16x32xf32, #tpu.memory_space<vmem>>, vector<1x32xf32>
    tpu.vector_store %arg24[%c13_54, %c0_55], %68 {strides = array<i32>} : memref<16x32xf32, #tpu.memory_space<vmem>>, vector<1x32xf32>,
    %c14 = arith.constant 14 : index
    %70 = memref.load %arg1[%c14] : memref<16xi32, #tpu.memory_space<smem>>
    %c0_56 = arith.constant 0 : index
    %71 = arith.index_cast %70 : i32 to index
    %c0_57 = arith.constant 0 : index
    %72 = vector.load %arg2[%c0_56, %71, %c0_57] : memref<1x64x32xf32, #tpu.memory_space<vmem>>, vector<1x1x32xf32>
    %73 = vector.shape_cast %72 : vector<1x1x32xf32> to vector<1x32xf32>
    %c14_58 = arith.constant 14 : index
    %c0_59 = arith.constant 0 : index
    %74 = vector.load %arg24[%c14_58, %c0_59] : memref<16x32xf32, #tpu.memory_space<vmem>>, vector<1x32xf32>
    tpu.vector_store %arg24[%c14_58, %c0_59], %73 {strides = array<i32>} : memref<16x32xf32, #tpu.memory_space<vmem>>, vector<1x32xf32>,
    %c15 = arith.constant 15 : index
    %75 = memref.load %arg1[%c15] : memref<16xi32, #tpu.memory_space<smem>>
    %c0_60 = arith.constant 0 : index
    %76 = arith.index_cast %75 : i32 to index
    %c0_61 = arith.constant 0 : index
    %77 = vector.load %arg2[%c0_60, %76, %c0_61] : memref<1x64x32xf32, #tpu.memory_space<vmem>>, vector<1x1x32xf32>
    %78 = vector.shape_cast %77 : vector<1x1x32xf32> to vector<1x32xf32>
    %c15_62 = arith.constant 15 : index
    %c0_63 = arith.constant 0 : index
    %79 = vector.load %arg24[%c15_62, %c0_63] : memref<16x32xf32, #tpu.memory_space<vmem>>, vector<1x32xf32>
    tpu.vector_store %arg24[%c15_62, %c0_63], %78 {strides = array<i32>} : memref<16x32xf32, #tpu.memory_space<vmem>>, vector<1x32xf32>,
    %c0_64 = arith.constant 0 : index
    %c0_65 = arith.constant 0 : index
    %c0_66 = arith.constant 0 : index
    %80 = vector.load %arg3[%c0_64, %c0_65, %c0_66] : memref<1x16x32xf32, #tpu.memory_space<vmem>>, vector<1x8x32xf32>
    %81 = vector.shape_cast %80 : vector<1x8x32xf32> to vector<8x32xf32>
    %82 = tpu.concatenate %81, %81 in 0 : vector<8x32xf32>, vector<8x32xf32> -> vector<16x32xf32>
    %c0_67 = arith.constant 0 : index
    %c0_68 = arith.constant 0 : index
    %83 = vector.load %arg24[%c0_67, %c0_68] : memref<16x32xf32, #tpu.memory_space<vmem>>, vector<16x32xf32>
    %84 = arith.addf %83, %82 : vector<16x32xf32>
    %c0_69 = arith.constant 0 : index
    %c0_70 = arith.constant 0 : index
    %c0_71 = arith.constant 0 : index
    %85 = vector.load %arg4[%c0_69, %c0_70, %c0_71] : memref<1x2x32xf32, #tpu.memory_space<vmem>>, vector<1x1x32xf32>
    %86 = vector.shape_cast %85 : vector<1x1x32xf32> to vector<1x32xf32>
    %87 = vector.broadcast %86 : vector<1x32xf32> to vector<16x32xf32>
    %88 = arith.addf %84, %87 : vector<16x32xf32>
    %c0_72 = arith.constant 0 : index
    %c0_73 = arith.constant 0 : index
    %c0_74 = arith.constant 0 : index
    %89 = vector.load %arg5[%c0_72, %c0_73, %c0_74] : memref<1x1x32xf32, #tpu.memory_space<vmem>>, vector<1x1x32xf32>
    %90 = vector.shape_cast %89 : vector<1x1x32xf32> to vector<1x32xf32>
    %c0_75 = arith.constant 0 : index
    %c0_76 = arith.constant 0 : index
    %c0_77 = arith.constant 0 : index
    %91 = vector.load %arg6[%c0_75, %c0_76, %c0_77] : memref<1x1x32xf32, #tpu.memory_space<vmem>>, vector<1x1x32xf32>
    %92 = vector.shape_cast %91 : vector<1x1x32xf32> to vector<1x32xf32>
    %cst = arith.constant dense<0.000000e+00> : vector<16xf32>
    %93 = vector.multi_reduction <add>, %88, %cst [1] : vector<16x32xf32> to vector<16xf32>
    %94 = vector.shape_cast %93 : vector<16xf32> to vector<16x1xf32>
    %cst_78 = arith.constant 3.200000e+01 : f32
    %95 = vector.broadcast %cst_78 : f32 to vector<16x1xf32>
    %96 = arith.divf %94, %95 : vector<16x1xf32>
    %97 = vector.broadcast %96 : vector<16x1xf32> to vector<16x32xf32>
    %98 = arith.subf %88, %97 : vector<16x32xf32>
    %99 = arith.mulf %98, %98 : vector<16x32xf32>
    %cst_79 = arith.constant dense<0.000000e+00> : vector<16xf32>
    %100 = vector.multi_reduction <add>, %99, %cst_79 [1] : vector<16x32xf32> to vector<16xf32>
    %101 = vector.shape_cast %100 : vector<16xf32> to vector<16x1xf32>
    %cst_80 = arith.constant 3.200000e+01 : f32
    %102 = vector.broadcast %cst_80 : f32 to vector<16x1xf32>
    %103 = arith.divf %101, %102 : vector<16x1xf32>
    %cst_81 = arith.constant 9.99999996E-13 : f32
    %104 = vector.broadcast %cst_81 : f32 to vector<16x1xf32>
    %105 = arith.addf %103, %104 : vector<16x1xf32>
    %106 = math.rsqrt %105 : vector<16x1xf32>
    %107 = vector.broadcast %106 : vector<16x1xf32> to vector<16x32xf32>
    %108 = arith.mulf %98, %107 : vector<16x32xf32>
    %109 = vector.broadcast %90 : vector<1x32xf32> to vector<16x32xf32>
    %110 = arith.mulf %108, %109 : vector<16x32xf32>
    %111 = vector.broadcast %92 : vector<1x32xf32> to vector<16x32xf32>
    %112 = arith.addf %110, %111 : vector<16x32xf32>
    %c0_82 = arith.constant 0 : index
    %c0_83 = arith.constant 0 : index
    %c0_84 = arith.constant 0 : index
    %c0_85 = arith.constant 0 : index
    %113 = vector.load %arg7[%c0_82, %c0_83, %c0_84, %c0_85] : memref<1x2x32x96xbf16, #tpu.memory_space<vmem>>, vector<1x1x32x96xbf16>
    %114 = vector.shape_cast %113 : vector<1x1x32x96xbf16> to vector<32x96xbf16>
    %115 = arith.truncf %112 : vector<16x32xf32> to vector<16x32xbf16>
    %cst_86 = arith.constant dense<0.000000e+00> : vector<16x96xf32>
    %116 = tpu.matmul %115, %114, %cst_86 {dimension_numbers = #tpu.dot_dimension_numbers<[1], [0], [0], [1], [0, 0, 1, 1], [], []>} : vector<16x32xbf16>, vector<32x96xbf16>, vector<16x96xf32> -> vector<16x96xf32>
    %c0_87 = arith.constant 0 : index
    %c0_88 = arith.constant 0 : index
    %c0_89 = arith.constant 0 : index
    %c0_90 = arith.constant 0 : index
    %117 = vector.load %arg8[%c0_87, %c0_88, %c0_89, %c0_90] : memref<1x2x1x96xf32, #tpu.memory_space<vmem>>, vector<1x1x1x96xf32>
    %118 = vector.shape_cast %117 : vector<1x1x1x96xf32> to vector<1x96xf32>
    %119 = vector.broadcast %118 : vector<1x96xf32> to vector<16x96xf32>
    %120 = arith.addf %116, %119 : vector<16x96xf32>
    %121 = vector.shape_cast %120 : vector<16x96xf32> to vector<2x8x96xf32>
    %122 = vector.extract_strided_slice %121 {offsets = [0, 0, 0], sizes = [2, 8, 8], strides = [1, 1, 1]} : vector<2x8x96xf32> to vector<2x8x8xf32>
    %123 = arith.truncf %122 : vector<2x8x8xf32> to vector<2x8x8xbf16>
    %124 = vector.extract_strided_slice %121 {offsets = [0, 0, 32], sizes = [2, 8, 8], strides = [1, 1, 1]} : vector<2x8x96xf32> to vector<2x8x8xf32>
    %125 = arith.truncf %124 : vector<2x8x8xf32> to vector<2x8x8xbf16>
    %126 = vector.extract_strided_slice %121 {offsets = [0, 0, 64], sizes = [2, 8, 8], strides = [1, 1, 1]} : vector<2x8x96xf32> to vector<2x8x8xf32>
    %127 = arith.truncf %126 : vector<2x8x8xf32> to vector<2x8x8xbf16>
    "tpu.trace_start"() <{level = 10 : i32, message = "bqd,bkd->bqk"}> : () -> ()
    %cst_91 = arith.constant dense<0.000000e+00> : vector<2x8x8xf32>
    %128 = tpu.matmul %123, %125, %cst_91 {dimension_numbers = #tpu.dot_dimension_numbers<[2], [2], [1], [1], [0, 0, 0, 1, 1, 1], [0], [0]>} : vector<2x8x8xbf16>, vector<2x8x8xbf16>, vector<2x8x8xf32> -> vector<2x8x8xf32>
    "tpu.trace_stop"() : () -> ()
    %cst_92 = arith.constant 0.353553385 : f32
    %129 = vector.broadcast %cst_92 : f32 to vector<2x8x8xf32>
    %130 = arith.mulf %128, %129 : vector<2x8x8xf32>
    %cst_93 = arith.constant dense<0xFF800000> : vector<2x8xf32>
    %131 = vector.multi_reduction <maximumf>, %130, %cst_93 [2] : vector<2x8x8xf32> to vector<2x8xf32>
    %132 = vector.shape_cast %131 : vector<2x8xf32> to vector<2x8x1xf32>
    %133 = vector.broadcast %132 : vector<2x8x1xf32> to vector<2x8x8xf32>
    %134 = arith.subf %130, %133 : vector<2x8x8xf32>
    %135 = math.exp %134 : vector<2x8x8xf32>
    %cst_94 = arith.constant dense<0.000000e+00> : vector<2x8xf32>
    %136 = vector.multi_reduction <add>, %135, %cst_94 [2] : vector<2x8x8xf32> to vector<2x8xf32>
    %137 = vector.shape_cast %136 : vector<2x8xf32> to vector<2x8x1xf32>
    %138 = tpu.reciprocal %137 {approx = true} : vector<2x8x1xf32> -> vector<2x8x1xf32>
    %139 = vector.broadcast %138 : vector<2x8x1xf32> to vector<2x8x8xf32>
    %140 = arith.mulf %135, %139 : vector<2x8x8xf32>
    %141 = arith.truncf %140 : vector<2x8x8xf32> to vector<2x8x8xbf16>
    "tpu.trace_start"() <{level = 10 : i32, message = "bqk,bkd->bqd"}> : () -> ()
    %cst_95 = arith.constant dense<0.000000e+00> : vector<2x8x8xf32>
    %142 = tpu.matmul %141, %127, %cst_95 {dimension_numbers = #tpu.dot_dimension_numbers<[2], [1], [1], [2], [0, 0, 0, 1, 1, 2], [0], [0]>} : vector<2x8x8xbf16>, vector<2x8x8xbf16>, vector<2x8x8xf32> -> vector<2x8x8xf32>
    "tpu.trace_stop"() : () -> ()
    %143 = vector.shape_cast %142 : vector<2x8x8xf32> to vector<16x8xf32>
    %c0_96 = arith.constant 0 : index
    %c0_97 = arith.constant 0 : index
    %144 = vector.load %arg24[%c0_96, %c0_97] : memref<16x32xf32, #tpu.memory_space<vmem>>, vector<16x8xf32>
    tpu.vector_store %arg24[%c0_96, %c0_97], %143 {strides = array<i32>} : memref<16x32xf32, #tpu.memory_space<vmem>>, vector<16x8xf32>,
    %145 = vector.extract_strided_slice %121 {offsets = [0, 0, 8], sizes = [2, 8, 8], strides = [1, 1, 1]} : vector<2x8x96xf32> to vector<2x8x8xf32>
    %146 = arith.truncf %145 : vector<2x8x8xf32> to vector<2x8x8xbf16>
    %147 = vector.extract_strided_slice %121 {offsets = [0, 0, 40], sizes = [2, 8, 8], strides = [1, 1, 1]} : vector<2x8x96xf32> to vector<2x8x8xf32>
    %148 = arith.truncf %147 : vector<2x8x8xf32> to vector<2x8x8xbf16>
    %149 = vector.extract_strided_slice %121 {offsets = [0, 0, 72], sizes = [2, 8, 8], strides = [1, 1, 1]} : vector<2x8x96xf32> to vector<2x8x8xf32>
    %150 = arith.truncf %149 : vector<2x8x8xf32> to vector<2x8x8xbf16>
    "tpu.trace_start"() <{level = 10 : i32, message = "bqd,bkd->bqk"}> : () -> ()
    %cst_98 = arith.constant dense<0.000000e+00> : vector<2x8x8xf32>
    %151 = tpu.matmul %146, %148, %cst_98 {dimension_numbers = #tpu.dot_dimension_numbers<[2], [2], [1], [1], [0, 0, 0, 1, 1, 1], [0], [0]>} : vector<2x8x8xbf16>, vector<2x8x8xbf16>, vector<2x8x8xf32> -> vector<2x8x8xf32>
    "tpu.trace_stop"() : () -> ()
    %cst_99 = arith.constant 0.353553385 : f32
    %152 = vector.broadcast %cst_99 : f32 to vector<2x8x8xf32>
    %153 = arith.mulf %151, %152 : vector<2x8x8xf32>
    %cst_100 = arith.constant dense<0xFF800000> : vector<2x8xf32>
    %154 = vector.multi_reduction <maximumf>, %153, %cst_100 [2] : vector<2x8x8xf32> to vector<2x8xf32>
    %155 = vector.shape_cast %154 : vector<2x8xf32> to vector<2x8x1xf32>
    %156 = vector.broadcast %155 : vector<2x8x1xf32> to vector<2x8x8xf32>
    %157 = arith.subf %153, %156 : vector<2x8x8xf32>
    %158 = math.exp %157 : vector<2x8x8xf32>
    %cst_101 = arith.constant dense<0.000000e+00> : vector<2x8xf32>
    %159 = vector.multi_reduction <add>, %158, %cst_101 [2] : vector<2x8x8xf32> to vector<2x8xf32>
    %160 = vector.shape_cast %159 : vector<2x8xf32> to vector<2x8x1xf32>
    %161 = tpu.reciprocal %160 {approx = true} : vector<2x8x1xf32> -> vector<2x8x1xf32>
    %162 = vector.broadcast %161 : vector<2x8x1xf32> to vector<2x8x8xf32>
    %163 = arith.mulf %158, %162 : vector<2x8x8xf32>
    %164 = arith.truncf %163 : vector<2x8x8xf32> to vector<2x8x8xbf16>
    "tpu.trace_start"() <{level = 10 : i32, message = "bqk,bkd->bqd"}> : () -> ()
    %cst_102 = arith.constant dense<0.000000e+00> : vector<2x8x8xf32>
    %165 = tpu.matmul %164, %150, %cst_102 {dimension_numbers = #tpu.dot_dimension_numbers<[2], [1], [1], [2], [0, 0, 0, 1, 1, 2], [0], [0]>} : vector<2x8x8xbf16>, vector<2x8x8xbf16>, vector<2x8x8xf32> -> vector<2x8x8xf32>
    "tpu.trace_stop"() : () -> ()
    %166 = vector.shape_cast %165 : vector<2x8x8xf32> to vector<16x8xf32>
    %c0_103 = arith.constant 0 : index
    %c8_104 = arith.constant 8 : index
    %167 = vector.load %arg24[%c0_103, %c8_104] : memref<16x32xf32, #tpu.memory_space<vmem>>, vector<16x8xf32>
    tpu.vector_store %arg24[%c0_103, %c8_104], %166 {strides = array<i32>} : memref<16x32xf32, #tpu.memory_space<vmem>>, vector<16x8xf32>,
    %168 = vector.extract_strided_slice %121 {offsets = [0, 0, 16], sizes = [2, 8, 8], strides = [1, 1, 1]} : vector<2x8x96xf32> to vector<2x8x8xf32>
    %169 = arith.truncf %168 : vector<2x8x8xf32> to vector<2x8x8xbf16>
    %170 = vector.extract_strided_slice %121 {offsets = [0, 0, 48], sizes = [2, 8, 8], strides = [1, 1, 1]} : vector<2x8x96xf32> to vector<2x8x8xf32>
    %171 = arith.truncf %170 : vector<2x8x8xf32> to vector<2x8x8xbf16>
    %172 = vector.extract_strided_slice %121 {offsets = [0, 0, 80], sizes = [2, 8, 8], strides = [1, 1, 1]} : vector<2x8x96xf32> to vector<2x8x8xf32>
    %173 = arith.truncf %172 : vector<2x8x8xf32> to vector<2x8x8xbf16>
    "tpu.trace_start"() <{level = 10 : i32, message = "bqd,bkd->bqk"}> : () -> ()
    %cst_105 = arith.constant dense<0.000000e+00> : vector<2x8x8xf32>
    %174 = tpu.matmul %169, %171, %cst_105 {dimension_numbers = #tpu.dot_dimension_numbers<[2], [2], [1], [1], [0, 0, 0, 1, 1, 1], [0], [0]>} : vector<2x8x8xbf16>, vector<2x8x8xbf16>, vector<2x8x8xf32> -> vector<2x8x8xf32>
    "tpu.trace_stop"() : () -> ()
    %cst_106 = arith.constant 0.353553385 : f32
    %175 = vector.broadcast %cst_106 : f32 to vector<2x8x8xf32>
    %176 = arith.mulf %174, %175 : vector<2x8x8xf32>
    %cst_107 = arith.constant dense<0xFF800000> : vector<2x8xf32>
    %177 = vector.multi_reduction <maximumf>, %176, %cst_107 [2] : vector<2x8x8xf32> to vector<2x8xf32>
    %178 = vector.shape_cast %177 : vector<2x8xf32> to vector<2x8x1xf32>
    %179 = vector.broadcast %178 : vector<2x8x1xf32> to vector<2x8x8xf32>
    %180 = arith.subf %176, %179 : vector<2x8x8xf32>
    %181 = math.exp %180 : vector<2x8x8xf32>
    %cst_108 = arith.constant dense<0.000000e+00> : vector<2x8xf32>
    %182 = vector.multi_reduction <add>, %181, %cst_108 [2] : vector<2x8x8xf32> to vector<2x8xf32>
    %183 = vector.shape_cast %182 : vector<2x8xf32> to vector<2x8x1xf32>
    %184 = tpu.reciprocal %183 {approx = true} : vector<2x8x1xf32> -> vector<2x8x1xf32>
    %185 = vector.broadcast %184 : vector<2x8x1xf32> to vector<2x8x8xf32>
    %186 = arith.mulf %181, %185 : vector<2x8x8xf32>
    %187 = arith.truncf %186 : vector<2x8x8xf32> to vector<2x8x8xbf16>
    "tpu.trace_start"() <{level = 10 : i32, message = "bqk,bkd->bqd"}> : () -> ()
    %cst_109 = arith.constant dense<0.000000e+00> : vector<2x8x8xf32>
    %188 = tpu.matmul %187, %173, %cst_109 {dimension_numbers = #tpu.dot_dimension_numbers<[2], [1], [1], [2], [0, 0, 0, 1, 1, 2], [0], [0]>} : vector<2x8x8xbf16>, vector<2x8x8xbf16>, vector<2x8x8xf32> -> vector<2x8x8xf32>
    "tpu.trace_stop"() : () -> ()
    %189 = vector.shape_cast %188 : vector<2x8x8xf32> to vector<16x8xf32>
    %c0_110 = arith.constant 0 : index
    %c16 = arith.constant 16 : index
    %190 = vector.load %arg24[%c0_110, %c16] : memref<16x32xf32, #tpu.memory_space<vmem>>, vector<16x8xf32>
    tpu.vector_store %arg24[%c0_110, %c16], %189 {strides = array<i32>} : memref<16x32xf32, #tpu.memory_space<vmem>>, vector<16x8xf32>,
    %191 = vector.extract_strided_slice %121 {offsets = [0, 0, 24], sizes = [2, 8, 8], strides = [1, 1, 1]} : vector<2x8x96xf32> to vector<2x8x8xf32>
    %192 = arith.truncf %191 : vector<2x8x8xf32> to vector<2x8x8xbf16>
    %193 = vector.extract_strided_slice %121 {offsets = [0, 0, 56], sizes = [2, 8, 8], strides = [1, 1, 1]} : vector<2x8x96xf32> to vector<2x8x8xf32>
    %194 = arith.truncf %193 : vector<2x8x8xf32> to vector<2x8x8xbf16>
    %195 = vector.extract_strided_slice %121 {offsets = [0, 0, 88], sizes = [2, 8, 8], strides = [1, 1, 1]} : vector<2x8x96xf32> to vector<2x8x8xf32>
    %196 = arith.truncf %195 : vector<2x8x8xf32> to vector<2x8x8xbf16>
    "tpu.trace_start"() <{level = 10 : i32, message = "bqd,bkd->bqk"}> : () -> ()
    %cst_111 = arith.constant dense<0.000000e+00> : vector<2x8x8xf32>
    %197 = tpu.matmul %192, %194, %cst_111 {dimension_numbers = #tpu.dot_dimension_numbers<[2], [2], [1], [1], [0, 0, 0, 1, 1, 1], [0], [0]>} : vector<2x8x8xbf16>, vector<2x8x8xbf16>, vector<2x8x8xf32> -> vector<2x8x8xf32>
    "tpu.trace_stop"() : () -> ()
    %cst_112 = arith.constant 0.353553385 : f32
    %198 = vector.broadcast %cst_112 : f32 to vector<2x8x8xf32>
    %199 = arith.mulf %197, %198 : vector<2x8x8xf32>
    %cst_113 = arith.constant dense<0xFF800000> : vector<2x8xf32>
    %200 = vector.multi_reduction <maximumf>, %199, %cst_113 [2] : vector<2x8x8xf32> to vector<2x8xf32>
    %201 = vector.shape_cast %200 : vector<2x8xf32> to vector<2x8x1xf32>
    %202 = vector.broadcast %201 : vector<2x8x1xf32> to vector<2x8x8xf32>
    %203 = arith.subf %199, %202 : vector<2x8x8xf32>
    %204 = math.exp %203 : vector<2x8x8xf32>
    %cst_114 = arith.constant dense<0.000000e+00> : vector<2x8xf32>
    %205 = vector.multi_reduction <add>, %204, %cst_114 [2] : vector<2x8x8xf32> to vector<2x8xf32>
    %206 = vector.shape_cast %205 : vector<2x8xf32> to vector<2x8x1xf32>
    %207 = tpu.reciprocal %206 {approx = true} : vector<2x8x1xf32> -> vector<2x8x1xf32>
    %208 = vector.broadcast %207 : vector<2x8x1xf32> to vector<2x8x8xf32>
    %209 = arith.mulf %204, %208 : vector<2x8x8xf32>
    %210 = arith.truncf %209 : vector<2x8x8xf32> to vector<2x8x8xbf16>
    "tpu.trace_start"() <{level = 10 : i32, message = "bqk,bkd->bqd"}> : () -> ()
    %cst_115 = arith.constant dense<0.000000e+00> : vector<2x8x8xf32>
    %211 = tpu.matmul %210, %196, %cst_115 {dimension_numbers = #tpu.dot_dimension_numbers<[2], [1], [1], [2], [0, 0, 0, 1, 1, 2], [0], [0]>} : vector<2x8x8xbf16>, vector<2x8x8xbf16>, vector<2x8x8xf32> -> vector<2x8x8xf32>
    "tpu.trace_stop"() : () -> ()
    %212 = vector.shape_cast %211 : vector<2x8x8xf32> to vector<16x8xf32>
    %c0_116 = arith.constant 0 : index
    %c24 = arith.constant 24 : index
    %213 = vector.load %arg24[%c0_116, %c24] : memref<16x32xf32, #tpu.memory_space<vmem>>, vector<16x8xf32>
    tpu.vector_store %arg24[%c0_116, %c24], %212 {strides = array<i32>} : memref<16x32xf32, #tpu.memory_space<vmem>>, vector<16x8xf32>,
    %c0_117 = arith.constant 0 : index
    %c0_118 = arith.constant 0 : index
    %214 = vector.load %arg24[%c0_117, %c0_118] : memref<16x32xf32, #tpu.memory_space<vmem>>, vector<16x32xf32>
    %c0_119 = arith.constant 0 : index
    %c0_120 = arith.constant 0 : index
    %c0_121 = arith.constant 0 : index
    %c0_122 = arith.constant 0 : index
    %215 = vector.load %arg9[%c0_119, %c0_120, %c0_121, %c0_122] : memref<1x2x32x32xbf16, #tpu.memory_space<vmem>>, vector<1x1x32x32xbf16>
    %216 = vector.shape_cast %215 : vector<1x1x32x32xbf16> to vector<32x32xbf16>
    %217 = arith.truncf %214 : vector<16x32xf32> to vector<16x32xbf16>
    %cst_123 = arith.constant dense<0.000000e+00> : vector<16x32xf32>
    %218 = tpu.matmul %217, %216, %cst_123 {dimension_numbers = #tpu.dot_dimension_numbers<[1], [0], [0], [1], [0, 0, 1, 1], [], []>} : vector<16x32xbf16>, vector<32x32xbf16>, vector<16x32xf32> -> vector<16x32xf32>
    %c0_124 = arith.constant 0 : index
    %c0_125 = arith.constant 0 : index
    %c0_126 = arith.constant 0 : index
    %c0_127 = arith.constant 0 : index
    %219 = vector.load %arg10[%c0_124, %c0_125, %c0_126, %c0_127] : memref<1x2x1x32xf32, #tpu.memory_space<vmem>>, vector<1x1x1x32xf32>
    %220 = vector.shape_cast %219 : vector<1x1x1x32xf32> to vector<1x32xf32>
    %221 = vector.broadcast %220 : vector<1x32xf32> to vector<16x32xf32>
    %222 = arith.addf %218, %221 : vector<16x32xf32>
    %223 = arith.addf %222, %112 : vector<16x32xf32>
    %c0_128 = arith.constant 0 : index
    %c0_129 = arith.constant 0 : index
    %c0_130 = arith.constant 0 : index
    %c0_131 = arith.constant 0 : index
    %224 = vector.load %arg11[%c0_128, %c0_129, %c0_130, %c0_131] : memref<1x2x1x32xf32, #tpu.memory_space<vmem>>, vector<1x1x1x32xf32>
    %225 = vector.shape_cast %224 : vector<1x1x1x32xf32> to vector<1x32xf32>
    %c0_132 = arith.constant 0 : index
    %c0_133 = arith.constant 0 : index
    %c0_134 = arith.constant 0 : index
    %c0_135 = arith.constant 0 : index
    %226 = vector.load %arg12[%c0_132, %c0_133, %c0_134, %c0_135] : memref<1x2x1x32xf32, #tpu.memory_space<vmem>>, vector<1x1x1x32xf32>
    %227 = vector.shape_cast %226 : vector<1x1x1x32xf32> to vector<1x32xf32>
    %cst_136 = arith.constant dense<0.000000e+00> : vector<16xf32>
    %228 = vector.multi_reduction <add>, %223, %cst_136 [1] : vector<16x32xf32> to vector<16xf32>
    %229 = vector.shape_cast %228 : vector<16xf32> to vector<16x1xf32>
    %cst_137 = arith.constant 3.200000e+01 : f32
    %230 = vector.broadcast %cst_137 : f32 to vector<16x1xf32>
    %231 = arith.divf %229, %230 : vector<16x1xf32>
    %232 = vector.broadcast %231 : vector<16x1xf32> to vector<16x32xf32>
    %233 = arith.subf %223, %232 : vector<16x32xf32>
    %234 = arith.mulf %233, %233 : vector<16x32xf32>
    %cst_138 = arith.constant dense<0.000000e+00> : vector<16xf32>
    %235 = vector.multi_reduction <add>, %234, %cst_138 [1] : vector<16x32xf32> to vector<16xf32>
    %236 = vector.shape_cast %235 : vector<16xf32> to vector<16x1xf32>
    %cst_139 = arith.constant 3.200000e+01 : f32
    %237 = vector.broadcast %cst_139 : f32 to vector<16x1xf32>
    %238 = arith.divf %236, %237 : vector<16x1xf32>
    %cst_140 = arith.constant 9.99999996E-13 : f32
    %239 = vector.broadcast %cst_140 : f32 to vector<16x1xf32>
    %240 = arith.addf %238, %239 : vector<16x1xf32>
    %241 = math.rsqrt %240 : vector<16x1xf32>
    %242 = vector.broadcast %241 : vector<16x1xf32> to vector<16x32xf32>
    %243 = arith.mulf %233, %242 : vector<16x32xf32>
    %244 = vector.broadcast %225 : vector<1x32xf32> to vector<16x32xf32>
    %245 = arith.mulf %243, %244 : vector<16x32xf32>
    %246 = vector.broadcast %227 : vector<1x32xf32> to vector<16x32xf32>
    %247 = arith.addf %245, %246 : vector<16x32xf32>
    %c0_141 = arith.constant 0 : index
    %c0_142 = arith.constant 0 : index
    %c0_143 = arith.constant 0 : index
    %c0_144 = arith.constant 0 : index
    %248 = vector.load %arg13[%c0_141, %c0_142, %c0_143, %c0_144] : memref<1x2x32x64xbf16, #tpu.memory_space<vmem>>, vector<1x1x32x64xbf16>
    %249 = vector.shape_cast %248 : vector<1x1x32x64xbf16> to vector<32x64xbf16>
    %250 = arith.truncf %247 : vector<16x32xf32> to vector<16x32xbf16>
    %cst_145 = arith.constant dense<0.000000e+00> : vector<16x64xf32>
    %251 = tpu.matmul %250, %249, %cst_145 {dimension_numbers = #tpu.dot_dimension_numbers<[1], [0], [0], [1], [0, 0, 1, 1], [], []>} : vector<16x32xbf16>, vector<32x64xbf16>, vector<16x64xf32> -> vector<16x64xf32>
    %c0_146 = arith.constant 0 : index
    %c0_147 = arith.constant 0 : index
    %c0_148 = arith.constant 0 : index
    %c0_149 = arith.constant 0 : index
    %252 = vector.load %arg14[%c0_146, %c0_147, %c0_148, %c0_149] : memref<1x2x1x64xf32, #tpu.memory_space<vmem>>, vector<1x1x1x64xf32>
    %253 = vector.shape_cast %252 : vector<1x1x1x64xf32> to vector<1x64xf32>
    %254 = vector.broadcast %253 : vector<1x64xf32> to vector<16x64xf32>
    %255 = arith.addf %251, %254 : vector<16x64xf32>
    %cst_150 = arith.constant 5.000000e-01 : f32
    %256 = vector.broadcast %cst_150 : f32 to vector<16x64xf32>
    %257 = arith.mulf %256, %255 : vector<16x64xf32>
    %cst_151 = arith.constant 4.471500e-02 : f32
    %258 = vector.broadcast %cst_151 : f32 to vector<16x64xf32>
    %259 = arith.mulf %258, %255 : vector<16x64xf32>
    %260 = arith.mulf %259, %255 : vector<16x64xf32>
    %261 = arith.mulf %260, %255 : vector<16x64xf32>
    %262 = arith.addf %255, %261 : vector<16x64xf32>
    %cst_152 = arith.constant 0.797884583 : f32
    %263 = vector.broadcast %cst_152 : f32 to vector<16x64xf32>
    %264 = arith.mulf %263, %262 : vector<16x64xf32>
    %265 = math.tanh %264 : vector<16x64xf32>
    %cst_153 = arith.constant 1.000000e+00 : f32
    %266 = vector.broadcast %cst_153 : f32 to vector<16x64xf32>
    %267 = arith.addf %266, %265 : vector<16x64xf32>
    %268 = arith.mulf %257, %267 : vector<16x64xf32>
    %c0_154 = arith.constant 0 : index
    %c0_155 = arith.constant 0 : index
    %c0_156 = arith.constant 0 : index
    %c0_157 = arith.constant 0 : index
    %269 = vector.load %arg15[%c0_154, %c0_155, %c0_156, %c0_157] : memref<1x2x64x32xbf16, #tpu.memory_space<vmem>>, vector<1x1x64x32xbf16>
    %270 = vector.shape_cast %269 : vector<1x1x64x32xbf16> to vector<64x32xbf16>
    %271 = arith.truncf %268 : vector<16x64xf32> to vector<16x64xbf16>
    %cst_158 = arith.constant dense<0.000000e+00> : vector<16x32xf32>
    %272 = tpu.matmul %271, %270, %cst_158 {dimension_numbers = #tpu.dot_dimension_numbers<[1], [0], [0], [1], [0, 0, 1, 1], [], []>} : vector<16x64xbf16>, vector<64x32xbf16>, vector<16x32xf32> -> vector<16x32xf32>
    %c0_159 = arith.constant 0 : index
    %c0_160 = arith.constant 0 : index
    %c0_161 = arith.constant 0 : index
    %c0_162 = arith.constant 0 : index
    %273 = vector.load %arg16[%c0_159, %c0_160, %c0_161, %c0_162] : memref<1x2x1x32xf32, #tpu.memory_space<vmem>>, vector<1x1x1x32xf32>
    %274 = vector.shape_cast %273 : vector<1x1x1x32xf32> to vector<1x32xf32>
    %275 = vector.broadcast %274 : vector<1x32xf32> to vector<16x32xf32>
    %276 = arith.addf %272, %275 : vector<16x32xf32>
    %277 = arith.addf %276, %247 : vector<16x32xf32>
    %c0_163 = arith.constant 0 : index
    %c0_164 = arith.constant 0 : index
    %c0_165 = arith.constant 0 : index
    %c0_166 = arith.constant 0 : index
    %278 = vector.load %arg17[%c0_163, %c0_164, %c0_165, %c0_166] : memref<1x2x1x32xf32, #tpu.memory_space<vmem>>, vector<1x1x1x32xf32>
    %279 = vector.shape_cast %278 : vector<1x1x1x32xf32> to vector<1x32xf32>
    %c0_167 = arith.constant 0 : index
    %c0_168 = arith.constant 0 : index
    %c0_169 = arith.constant 0 : index
    %c0_170 = arith.constant 0 : index
    %280 = vector.load %arg18[%c0_167, %c0_168, %c0_169, %c0_170] : memref<1x2x1x32xf32, #tpu.memory_space<vmem>>, vector<1x1x1x32xf32>
    %281 = vector.shape_cast %280 : vector<1x1x1x32xf32> to vector<1x32xf32>
    %cst_171 = arith.constant dense<0.000000e+00> : vector<16xf32>
    %282 = vector.multi_reduction <add>, %277, %cst_171 [1] : vector<16x32xf32> to vector<16xf32>
    %283 = vector.shape_cast %282 : vector<16xf32> to vector<16x1xf32>
    %cst_172 = arith.constant 3.200000e+01 : f32
    %284 = vector.broadcast %cst_172 : f32 to vector<16x1xf32>
    %285 = arith.divf %283, %284 : vector<16x1xf32>
    %286 = vector.broadcast %285 : vector<16x1xf32> to vector<16x32xf32>
    %287 = arith.subf %277, %286 : vector<16x32xf32>
    %288 = arith.mulf %287, %287 : vector<16x32xf32>
    %cst_173 = arith.constant dense<0.000000e+00> : vector<16xf32>
    %289 = vector.multi_reduction <add>, %288, %cst_173 [1] : vector<16x32xf32> to vector<16xf32>
    %290 = vector.shape_cast %289 : vector<16xf32> to vector<16x1xf32>
    %cst_174 = arith.constant 3.200000e+01 : f32
    %291 = vector.broadcast %cst_174 : f32 to vector<16x1xf32>
    %292 = arith.divf %290, %291 : vector<16x1xf32>
    %cst_175 = arith.constant 9.99999996E-13 : f32
    %293 = vector.broadcast %cst_175 : f32 to vector<16x1xf32>
    %294 = arith.addf %292, %293 : vector<16x1xf32>
    %295 = math.rsqrt %294 : vector<16x1xf32>
    %296 = vector.broadcast %295 : vector<16x1xf32> to vector<16x32xf32>
    %297 = arith.mulf %287, %296 : vector<16x32xf32>
    %298 = vector.broadcast %279 : vector<1x32xf32> to vector<16x32xf32>
    %299 = arith.mulf %297, %298 : vector<16x32xf32>
    %300 = vector.broadcast %281 : vector<1x32xf32> to vector<16x32xf32>
    %301 = arith.addf %299, %300 : vector<16x32xf32>
    %c0_176 = arith.constant 0 : index
    %c1_177 = arith.constant 1 : index
    %c0_178 = arith.constant 0 : index
    %c0_179 = arith.constant 0 : index
    %302 = vector.load %arg7[%c0_176, %c1_177, %c0_178, %c0_179] : memref<1x2x32x96xbf16, #tpu.memory_space<vmem>>, vector<1x1x32x96xbf16>
    %303 = vector.shape_cast %302 : vector<1x1x32x96xbf16> to vector<32x96xbf16>
    %304 = arith.truncf %301 : vector<16x32xf32> to vector<16x32xbf16>
    %cst_180 = arith.constant dense<0.000000e+00> : vector<16x96xf32>
    %305 = tpu.matmul %304, %303, %cst_180 {dimension_numbers = #tpu.dot_dimension_numbers<[1], [0], [0], [1], [0, 0, 1, 1], [], []>} : vector<16x32xbf16>, vector<32x96xbf16>, vector<16x96xf32> -> vector<16x96xf32>
    %c0_181 = arith.constant 0 : index
    %c1_182 = arith.constant 1 : index
    %c0_183 = arith.constant 0 : index
    %c0_184 = arith.constant 0 : index
    %306 = vector.load %arg8[%c0_181, %c1_182, %c0_183, %c0_184] : memref<1x2x1x96xf32, #tpu.memory_space<vmem>>, vector<1x1x1x96xf32>
    %307 = vector.shape_cast %306 : vector<1x1x1x96xf32> to vector<1x96xf32>
    %308 = vector.broadcast %307 : vector<1x96xf32> to vector<16x96xf32>
    %309 = arith.addf %305, %308 : vector<16x96xf32>
    %310 = vector.shape_cast %309 : vector<16x96xf32> to vector<2x8x96xf32>
    %311 = vector.extract_strided_slice %310 {offsets = [0, 0, 0], sizes = [2, 8, 8], strides = [1, 1, 1]} : vector<2x8x96xf32> to vector<2x8x8xf32>
    %312 = arith.truncf %311 : vector<2x8x8xf32> to vector<2x8x8xbf16>
    %313 = vector.extract_strided_slice %310 {offsets = [0, 0, 32], sizes = [2, 8, 8], strides = [1, 1, 1]} : vector<2x8x96xf32> to vector<2x8x8xf32>
    %314 = arith.truncf %313 : vector<2x8x8xf32> to vector<2x8x8xbf16>
    %315 = vector.extract_strided_slice %310 {offsets = [0, 0, 64], sizes = [2, 8, 8], strides = [1, 1, 1]} : vector<2x8x96xf32> to vector<2x8x8xf32>
    %316 = arith.truncf %315 : vector<2x8x8xf32> to vector<2x8x8xbf16>
    "tpu.trace_start"() <{level = 10 : i32, message = "bqd,bkd->bqk"}> : () -> ()
    %cst_185 = arith.constant dense<0.000000e+00> : vector<2x8x8xf32>
    %317 = tpu.matmul %312, %314, %cst_185 {dimension_numbers = #tpu.dot_dimension_numbers<[2], [2], [1], [1], [0, 0, 0, 1, 1, 1], [0], [0]>} : vector<2x8x8xbf16>, vector<2x8x8xbf16>, vector<2x8x8xf32> -> vector<2x8x8xf32>
    "tpu.trace_stop"() : () -> ()
    %cst_186 = arith.constant 0.353553385 : f32
    %318 = vector.broadcast %cst_186 : f32 to vector<2x8x8xf32>
    %319 = arith.mulf %317, %318 : vector<2x8x8xf32>
    %cst_187 = arith.constant dense<0xFF800000> : vector<2x8xf32>
    %320 = vector.multi_reduction <maximumf>, %319, %cst_187 [2] : vector<2x8x8xf32> to vector<2x8xf32>
    %321 = vector.shape_cast %320 : vector<2x8xf32> to vector<2x8x1xf32>
    %322 = vector.broadcast %321 : vector<2x8x1xf32> to vector<2x8x8xf32>
    %323 = arith.subf %319, %322 : vector<2x8x8xf32>
    %324 = math.exp %323 : vector<2x8x8xf32>
    %cst_188 = arith.constant dense<0.000000e+00> : vector<2x8xf32>
    %325 = vector.multi_reduction <add>, %324, %cst_188 [2] : vector<2x8x8xf32> to vector<2x8xf32>
    %326 = vector.shape_cast %325 : vector<2x8xf32> to vector<2x8x1xf32>
    %327 = tpu.reciprocal %326 {approx = true} : vector<2x8x1xf32> -> vector<2x8x1xf32>
    %328 = vector.broadcast %327 : vector<2x8x1xf32> to vector<2x8x8xf32>
    %329 = arith.mulf %324, %328 : vector<2x8x8xf32>
    %330 = arith.truncf %329 : vector<2x8x8xf32> to vector<2x8x8xbf16>
    "tpu.trace_start"() <{level = 10 : i32, message = "bqk,bkd->bqd"}> : () -> ()
    %cst_189 = arith.constant dense<0.000000e+00> : vector<2x8x8xf32>
    %331 = tpu.matmul %330, %316, %cst_189 {dimension_numbers = #tpu.dot_dimension_numbers<[2], [1], [1], [2], [0, 0, 0, 1, 1, 2], [0], [0]>} : vector<2x8x8xbf16>, vector<2x8x8xbf16>, vector<2x8x8xf32> -> vector<2x8x8xf32>
    "tpu.trace_stop"() : () -> ()
    %332 = vector.shape_cast %331 : vector<2x8x8xf32> to vector<16x8xf32>
    %c0_190 = arith.constant 0 : index
    %c0_191 = arith.constant 0 : index
    %333 = vector.load %arg24[%c0_190, %c0_191] : memref<16x32xf32, #tpu.memory_space<vmem>>, vector<16x8xf32>
    tpu.vector_store %arg24[%c0_190, %c0_191], %332 {strides = array<i32>} : memref<16x32xf32, #tpu.memory_space<vmem>>, vector<16x8xf32>,
    %334 = vector.extract_strided_slice %310 {offsets = [0, 0, 8], sizes = [2, 8, 8], strides = [1, 1, 1]} : vector<2x8x96xf32> to vector<2x8x8xf32>
    %335 = arith.truncf %334 : vector<2x8x8xf32> to vector<2x8x8xbf16>
    %336 = vector.extract_strided_slice %310 {offsets = [0, 0, 40], sizes = [2, 8, 8], strides = [1, 1, 1]} : vector<2x8x96xf32> to vector<2x8x8xf32>
    %337 = arith.truncf %336 : vector<2x8x8xf32> to vector<2x8x8xbf16>
    %338 = vector.extract_strided_slice %310 {offsets = [0, 0, 72], sizes = [2, 8, 8], strides = [1, 1, 1]} : vector<2x8x96xf32> to vector<2x8x8xf32>
    %339 = arith.truncf %338 : vector<2x8x8xf32> to vector<2x8x8xbf16>
    "tpu.trace_start"() <{level = 10 : i32, message = "bqd,bkd->bqk"}> : () -> ()
    %cst_192 = arith.constant dense<0.000000e+00> : vector<2x8x8xf32>
    %340 = tpu.matmul %335, %337, %cst_192 {dimension_numbers = #tpu.dot_dimension_numbers<[2], [2], [1], [1], [0, 0, 0, 1, 1, 1], [0], [0]>} : vector<2x8x8xbf16>, vector<2x8x8xbf16>, vector<2x8x8xf32> -> vector<2x8x8xf32>
    "tpu.trace_stop"() : () -> ()
    %cst_193 = arith.constant 0.353553385 : f32
    %341 = vector.broadcast %cst_193 : f32 to vector<2x8x8xf32>
    %342 = arith.mulf %340, %341 : vector<2x8x8xf32>
    %cst_194 = arith.constant dense<0xFF800000> : vector<2x8xf32>
    %343 = vector.multi_reduction <maximumf>, %342, %cst_194 [2] : vector<2x8x8xf32> to vector<2x8xf32>
    %344 = vector.shape_cast %343 : vector<2x8xf32> to vector<2x8x1xf32>
    %345 = vector.broadcast %344 : vector<2x8x1xf32> to vector<2x8x8xf32>
    %346 = arith.subf %342, %345 : vector<2x8x8xf32>
    %347 = math.exp %346 : vector<2x8x8xf32>
    %cst_195 = arith.constant dense<0.000000e+00> : vector<2x8xf32>
    %348 = vector.multi_reduction <add>, %347, %cst_195 [2] : vector<2x8x8xf32> to vector<2x8xf32>
    %349 = vector.shape_cast %348 : vector<2x8xf32> to vector<2x8x1xf32>
    %350 = tpu.reciprocal %349 {approx = true} : vector<2x8x1xf32> -> vector<2x8x1xf32>
    %351 = vector.broadcast %350 : vector<2x8x1xf32> to vector<2x8x8xf32>
    %352 = arith.mulf %347, %351 : vector<2x8x8xf32>
    %353 = arith.truncf %352 : vector<2x8x8xf32> to vector<2x8x8xbf16>
    "tpu.trace_start"() <{level = 10 : i32, message = "bqk,bkd->bqd"}> : () -> ()
    %cst_196 = arith.constant dense<0.000000e+00> : vector<2x8x8xf32>
    %354 = tpu.matmul %353, %339, %cst_196 {dimension_numbers = #tpu.dot_dimension_numbers<[2], [1], [1], [2], [0, 0, 0, 1, 1, 2], [0], [0]>} : vector<2x8x8xbf16>, vector<2x8x8xbf16>, vector<2x8x8xf32> -> vector<2x8x8xf32>
    "tpu.trace_stop"() : () -> ()
    %355 = vector.shape_cast %354 : vector<2x8x8xf32> to vector<16x8xf32>
    %c0_197 = arith.constant 0 : index
    %c8_198 = arith.constant 8 : index
    %356 = vector.load %arg24[%c0_197, %c8_198] : memref<16x32xf32, #tpu.memory_space<vmem>>, vector<16x8xf32>
    tpu.vector_store %arg24[%c0_197, %c8_198], %355 {strides = array<i32>} : memref<16x32xf32, #tpu.memory_space<vmem>>, vector<16x8xf32>,
    %357 = vector.extract_strided_slice %310 {offsets = [0, 0, 16], sizes = [2, 8, 8], strides = [1, 1, 1]} : vector<2x8x96xf32> to vector<2x8x8xf32>
    %358 = arith.truncf %357 : vector<2x8x8xf32> to vector<2x8x8xbf16>
    %359 = vector.extract_strided_slice %310 {offsets = [0, 0, 48], sizes = [2, 8, 8], strides = [1, 1, 1]} : vector<2x8x96xf32> to vector<2x8x8xf32>
    %360 = arith.truncf %359 : vector<2x8x8xf32> to vector<2x8x8xbf16>
    %361 = vector.extract_strided_slice %310 {offsets = [0, 0, 80], sizes = [2, 8, 8], strides = [1, 1, 1]} : vector<2x8x96xf32> to vector<2x8x8xf32>
    %362 = arith.truncf %361 : vector<2x8x8xf32> to vector<2x8x8xbf16>
    "tpu.trace_start"() <{level = 10 : i32, message = "bqd,bkd->bqk"}> : () -> ()
    %cst_199 = arith.constant dense<0.000000e+00> : vector<2x8x8xf32>
    %363 = tpu.matmul %358, %360, %cst_199 {dimension_numbers = #tpu.dot_dimension_numbers<[2], [2], [1], [1], [0, 0, 0, 1, 1, 1], [0], [0]>} : vector<2x8x8xbf16>, vector<2x8x8xbf16>, vector<2x8x8xf32> -> vector<2x8x8xf32>
    "tpu.trace_stop"() : () -> ()
    %cst_200 = arith.constant 0.353553385 : f32
    %364 = vector.broadcast %cst_200 : f32 to vector<2x8x8xf32>
    %365 = arith.mulf %363, %364 : vector<2x8x8xf32>
    %cst_201 = arith.constant dense<0xFF800000> : vector<2x8xf32>
    %366 = vector.multi_reduction <maximumf>, %365, %cst_201 [2] : vector<2x8x8xf32> to vector<2x8xf32>
    %367 = vector.shape_cast %366 : vector<2x8xf32> to vector<2x8x1xf32>
    %368 = vector.broadcast %367 : vector<2x8x1xf32> to vector<2x8x8xf32>
    %369 = arith.subf %365, %368 : vector<2x8x8xf32>
    %370 = math.exp %369 : vector<2x8x8xf32>
    %cst_202 = arith.constant dense<0.000000e+00> : vector<2x8xf32>
    %371 = vector.multi_reduction <add>, %370, %cst_202 [2] : vector<2x8x8xf32> to vector<2x8xf32>
    %372 = vector.shape_cast %371 : vector<2x8xf32> to vector<2x8x1xf32>
    %373 = tpu.reciprocal %372 {approx = true} : vector<2x8x1xf32> -> vector<2x8x1xf32>
    %374 = vector.broadcast %373 : vector<2x8x1xf32> to vector<2x8x8xf32>
    %375 = arith.mulf %370, %374 : vector<2x8x8xf32>
    %376 = arith.truncf %375 : vector<2x8x8xf32> to vector<2x8x8xbf16>
    "tpu.trace_start"() <{level = 10 : i32, message = "bqk,bkd->bqd"}> : () -> ()
    %cst_203 = arith.constant dense<0.000000e+00> : vector<2x8x8xf32>
    %377 = tpu.matmul %376, %362, %cst_203 {dimension_numbers = #tpu.dot_dimension_numbers<[2], [1], [1], [2], [0, 0, 0, 1, 1, 2], [0], [0]>} : vector<2x8x8xbf16>, vector<2x8x8xbf16>, vector<2x8x8xf32> -> vector<2x8x8xf32>
    "tpu.trace_stop"() : () -> ()
    %378 = vector.shape_cast %377 : vector<2x8x8xf32> to vector<16x8xf32>
    %c0_204 = arith.constant 0 : index
    %c16_205 = arith.constant 16 : index
    %379 = vector.load %arg24[%c0_204, %c16_205] : memref<16x32xf32, #tpu.memory_space<vmem>>, vector<16x8xf32>
    tpu.vector_store %arg24[%c0_204, %c16_205], %378 {strides = array<i32>} : memref<16x32xf32, #tpu.memory_space<vmem>>, vector<16x8xf32>,
    %380 = vector.extract_strided_slice %310 {offsets = [0, 0, 24], sizes = [2, 8, 8], strides = [1, 1, 1]} : vector<2x8x96xf32> to vector<2x8x8xf32>
    %381 = arith.truncf %380 : vector<2x8x8xf32> to vector<2x8x8xbf16>
    %382 = vector.extract_strided_slice %310 {offsets = [0, 0, 56], sizes = [2, 8, 8], strides = [1, 1, 1]} : vector<2x8x96xf32> to vector<2x8x8xf32>
    %383 = arith.truncf %382 : vector<2x8x8xf32> to vector<2x8x8xbf16>
    %384 = vector.extract_strided_slice %310 {offsets = [0, 0, 88], sizes = [2, 8, 8], strides = [1, 1, 1]} : vector<2x8x96xf32> to vector<2x8x8xf32>
    %385 = arith.truncf %384 : vector<2x8x8xf32> to vector<2x8x8xbf16>
    "tpu.trace_start"() <{level = 10 : i32, message = "bqd,bkd->bqk"}> : () -> ()
    %cst_206 = arith.constant dense<0.000000e+00> : vector<2x8x8xf32>
    %386 = tpu.matmul %381, %383, %cst_206 {dimension_numbers = #tpu.dot_dimension_numbers<[2], [2], [1], [1], [0, 0, 0, 1, 1, 1], [0], [0]>} : vector<2x8x8xbf16>, vector<2x8x8xbf16>, vector<2x8x8xf32> -> vector<2x8x8xf32>
    "tpu.trace_stop"() : () -> ()
    %cst_207 = arith.constant 0.353553385 : f32
    %387 = vector.broadcast %cst_207 : f32 to vector<2x8x8xf32>
    %388 = arith.mulf %386, %387 : vector<2x8x8xf32>
    %cst_208 = arith.constant dense<0xFF800000> : vector<2x8xf32>
    %389 = vector.multi_reduction <maximumf>, %388, %cst_208 [2] : vector<2x8x8xf32> to vector<2x8xf32>
    %390 = vector.shape_cast %389 : vector<2x8xf32> to vector<2x8x1xf32>
    %391 = vector.broadcast %390 : vector<2x8x1xf32> to vector<2x8x8xf32>
    %392 = arith.subf %388, %391 : vector<2x8x8xf32>
    %393 = math.exp %392 : vector<2x8x8xf32>
    %cst_209 = arith.constant dense<0.000000e+00> : vector<2x8xf32>
    %394 = vector.multi_reduction <add>, %393, %cst_209 [2] : vector<2x8x8xf32> to vector<2x8xf32>
    %395 = vector.shape_cast %394 : vector<2x8xf32> to vector<2x8x1xf32>
    %396 = tpu.reciprocal %395 {approx = true} : vector<2x8x1xf32> -> vector<2x8x1xf32>
    %397 = vector.broadcast %396 : vector<2x8x1xf32> to vector<2x8x8xf32>
    %398 = arith.mulf %393, %397 : vector<2x8x8xf32>
    %399 = arith.truncf %398 : vector<2x8x8xf32> to vector<2x8x8xbf16>
    "tpu.trace_start"() <{level = 10 : i32, message = "bqk,bkd->bqd"}> : () -> ()
    %cst_210 = arith.constant dense<0.000000e+00> : vector<2x8x8xf32>
    %400 = tpu.matmul %399, %385, %cst_210 {dimension_numbers = #tpu.dot_dimension_numbers<[2], [1], [1], [2], [0, 0, 0, 1, 1, 2], [0], [0]>} : vector<2x8x8xbf16>, vector<2x8x8xbf16>, vector<2x8x8xf32> -> vector<2x8x8xf32>
    "tpu.trace_stop"() : () -> ()
    %401 = vector.shape_cast %400 : vector<2x8x8xf32> to vector<16x8xf32>
    %c0_211 = arith.constant 0 : index
    %c24_212 = arith.constant 24 : index
    %402 = vector.load %arg24[%c0_211, %c24_212] : memref<16x32xf32, #tpu.memory_space<vmem>>, vector<16x8xf32>
    tpu.vector_store %arg24[%c0_211, %c24_212], %401 {strides = array<i32>} : memref<16x32xf32, #tpu.memory_space<vmem>>, vector<16x8xf32>,
    %c0_213 = arith.constant 0 : index
    %c0_214 = arith.constant 0 : index
    %403 = vector.load %arg24[%c0_213, %c0_214] : memref<16x32xf32, #tpu.memory_space<vmem>>, vector<16x32xf32>
    %c0_215 = arith.constant 0 : index
    %c1_216 = arith.constant 1 : index
    %c0_217 = arith.constant 0 : index
    %c0_218 = arith.constant 0 : index
    %404 = vector.load %arg9[%c0_215, %c1_216, %c0_217, %c0_218] : memref<1x2x32x32xbf16, #tpu.memory_space<vmem>>, vector<1x1x32x32xbf16>
    %405 = vector.shape_cast %404 : vector<1x1x32x32xbf16> to vector<32x32xbf16>
    %406 = arith.truncf %403 : vector<16x32xf32> to vector<16x32xbf16>
    %cst_219 = arith.constant dense<0.000000e+00> : vector<16x32xf32>
    %407 = tpu.matmul %406, %405, %cst_219 {dimension_numbers = #tpu.dot_dimension_numbers<[1], [0], [0], [1], [0, 0, 1, 1], [], []>} : vector<16x32xbf16>, vector<32x32xbf16>, vector<16x32xf32> -> vector<16x32xf32>
    %c0_220 = arith.constant 0 : index
    %c1_221 = arith.constant 1 : index
    %c0_222 = arith.constant 0 : index
    %c0_223 = arith.constant 0 : index
    %408 = vector.load %arg10[%c0_220, %c1_221, %c0_222, %c0_223] : memref<1x2x1x32xf32, #tpu.memory_space<vmem>>, vector<1x1x1x32xf32>
    %409 = vector.shape_cast %408 : vector<1x1x1x32xf32> to vector<1x32xf32>
    %410 = vector.broadcast %409 : vector<1x32xf32> to vector<16x32xf32>
    %411 = arith.addf %407, %410 : vector<16x32xf32>
    %412 = arith.addf %411, %301 : vector<16x32xf32>
    %c0_224 = arith.constant 0 : index
    %c1_225 = arith.constant 1 : index
    %c0_226 = arith.constant 0 : index
    %c0_227 = arith.constant 0 : index
    %413 = vector.load %arg11[%c0_224, %c1_225, %c0_226, %c0_227] : memref<1x2x1x32xf32, #tpu.memory_space<vmem>>, vector<1x1x1x32xf32>
    %414 = vector.shape_cast %413 : vector<1x1x1x32xf32> to vector<1x32xf32>
    %c0_228 = arith.constant 0 : index
    %c1_229 = arith.constant 1 : index
    %c0_230 = arith.constant 0 : index
    %c0_231 = arith.constant 0 : index
    %415 = vector.load %arg12[%c0_228, %c1_229, %c0_230, %c0_231] : memref<1x2x1x32xf32, #tpu.memory_space<vmem>>, vector<1x1x1x32xf32>
    %416 = vector.shape_cast %415 : vector<1x1x1x32xf32> to vector<1x32xf32>
    %cst_232 = arith.constant dense<0.000000e+00> : vector<16xf32>
    %417 = vector.multi_reduction <add>, %412, %cst_232 [1] : vector<16x32xf32> to vector<16xf32>
    %418 = vector.shape_cast %417 : vector<16xf32> to vector<16x1xf32>
    %cst_233 = arith.constant 3.200000e+01 : f32
    %419 = vector.broadcast %cst_233 : f32 to vector<16x1xf32>
    %420 = arith.divf %418, %419 : vector<16x1xf32>
    %421 = vector.broadcast %420 : vector<16x1xf32> to vector<16x32xf32>
    %422 = arith.subf %412, %421 : vector<16x32xf32>
    %423 = arith.mulf %422, %422 : vector<16x32xf32>
    %cst_234 = arith.constant dense<0.000000e+00> : vector<16xf32>
    %424 = vector.multi_reduction <add>, %423, %cst_234 [1] : vector<16x32xf32> to vector<16xf32>
    %425 = vector.shape_cast %424 : vector<16xf32> to vector<16x1xf32>
    %cst_235 = arith.constant 3.200000e+01 : f32
    %426 = vector.broadcast %cst_235 : f32 to vector<16x1xf32>
    %427 = arith.divf %425, %426 : vector<16x1xf32>
    %cst_236 = arith.constant 9.99999996E-13 : f32
    %428 = vector.broadcast %cst_236 : f32 to vector<16x1xf32>
    %429 = arith.addf %427, %428 : vector<16x1xf32>
    %430 = math.rsqrt %429 : vector<16x1xf32>
    %431 = vector.broadcast %430 : vector<16x1xf32> to vector<16x32xf32>
    %432 = arith.mulf %422, %431 : vector<16x32xf32>
    %433 = vector.broadcast %414 : vector<1x32xf32> to vector<16x32xf32>
    %434 = arith.mulf %432, %433 : vector<16x32xf32>
    %435 = vector.broadcast %416 : vector<1x32xf32> to vector<16x32xf32>
    %436 = arith.addf %434, %435 : vector<16x32xf32>
    %c0_237 = arith.constant 0 : index
    %c1_238 = arith.constant 1 : index
    %c0_239 = arith.constant 0 : index
    %c0_240 = arith.constant 0 : index
    %437 = vector.load %arg13[%c0_237, %c1_238, %c0_239, %c0_240] : memref<1x2x32x64xbf16, #tpu.memory_space<vmem>>, vector<1x1x32x64xbf16>
    %438 = vector.shape_cast %437 : vector<1x1x32x64xbf16> to vector<32x64xbf16>
    %439 = arith.truncf %436 : vector<16x32xf32> to vector<16x32xbf16>
    %cst_241 = arith.constant dense<0.000000e+00> : vector<16x64xf32>
    %440 = tpu.matmul %439, %438, %cst_241 {dimension_numbers = #tpu.dot_dimension_numbers<[1], [0], [0], [1], [0, 0, 1, 1], [], []>} : vector<16x32xbf16>, vector<32x64xbf16>, vector<16x64xf32> -> vector<16x64xf32>
    %c0_242 = arith.constant 0 : index
    %c1_243 = arith.constant 1 : index
    %c0_244 = arith.constant 0 : index
    %c0_245 = arith.constant 0 : index
    %441 = vector.load %arg14[%c0_242, %c1_243, %c0_244, %c0_245] : memref<1x2x1x64xf32, #tpu.memory_space<vmem>>, vector<1x1x1x64xf32>
    %442 = vector.shape_cast %441 : vector<1x1x1x64xf32> to vector<1x64xf32>
    %443 = vector.broadcast %442 : vector<1x64xf32> to vector<16x64xf32>
    %444 = arith.addf %440, %443 : vector<16x64xf32>
    %cst_246 = arith.constant 5.000000e-01 : f32
    %445 = vector.broadcast %cst_246 : f32 to vector<16x64xf32>
    %446 = arith.mulf %445, %444 : vector<16x64xf32>
    %cst_247 = arith.constant 4.471500e-02 : f32
    %447 = vector.broadcast %cst_247 : f32 to vector<16x64xf32>
    %448 = arith.mulf %447, %444 : vector<16x64xf32>
    %449 = arith.mulf %448, %444 : vector<16x64xf32>
    %450 = arith.mulf %449, %444 : vector<16x64xf32>
    %451 = arith.addf %444, %450 : vector<16x64xf32>
    %cst_248 = arith.constant 0.797884583 : f32
    %452 = vector.broadcast %cst_248 : f32 to vector<16x64xf32>
    %453 = arith.mulf %452, %451 : vector<16x64xf32>
    %454 = math.tanh %453 : vector<16x64xf32>
    %cst_249 = arith.constant 1.000000e+00 : f32
    %455 = vector.broadcast %cst_249 : f32 to vector<16x64xf32>
    %456 = arith.addf %455, %454 : vector<16x64xf32>
    %457 = arith.mulf %446, %456 : vector<16x64xf32>
    %c0_250 = arith.constant 0 : index
    %c1_251 = arith.constant 1 : index
    %c0_252 = arith.constant 0 : index
    %c0_253 = arith.constant 0 : index
    %458 = vector.load %arg15[%c0_250, %c1_251, %c0_252, %c0_253] : memref<1x2x64x32xbf16, #tpu.memory_space<vmem>>, vector<1x1x64x32xbf16>
    %459 = vector.shape_cast %458 : vector<1x1x64x32xbf16> to vector<64x32xbf16>
    %460 = arith.truncf %457 : vector<16x64xf32> to vector<16x64xbf16>
    %cst_254 = arith.constant dense<0.000000e+00> : vector<16x32xf32>
    %461 = tpu.matmul %460, %459, %cst_254 {dimension_numbers = #tpu.dot_dimension_numbers<[1], [0], [0], [1], [0, 0, 1, 1], [], []>} : vector<16x64xbf16>, vector<64x32xbf16>, vector<16x32xf32> -> vector<16x32xf32>
    %c0_255 = arith.constant 0 : index
    %c1_256 = arith.constant 1 : index
    %c0_257 = arith.constant 0 : index
    %c0_258 = arith.constant 0 : index
    %462 = vector.load %arg16[%c0_255, %c1_256, %c0_257, %c0_258] : memref<1x2x1x32xf32, #tpu.memory_space<vmem>>, vector<1x1x1x32xf32>
    %463 = vector.shape_cast %462 : vector<1x1x1x32xf32> to vector<1x32xf32>
    %464 = vector.broadcast %463 : vector<1x32xf32> to vector<16x32xf32>
    %465 = arith.addf %461, %464 : vector<16x32xf32>
    %466 = arith.addf %465, %436 : vector<16x32xf32>
    %c0_259 = arith.constant 0 : index
    %c1_260 = arith.constant 1 : index
    %c0_261 = arith.constant 0 : index
    %c0_262 = arith.constant 0 : index
    %467 = vector.load %arg17[%c0_259, %c1_260, %c0_261, %c0_262] : memref<1x2x1x32xf32, #tpu.memory_space<vmem>>, vector<1x1x1x32xf32>
    %468 = vector.shape_cast %467 : vector<1x1x1x32xf32> to vector<1x32xf32>
    %c0_263 = arith.constant 0 : index
    %c1_264 = arith.constant 1 : index
    %c0_265 = arith.constant 0 : index
    %c0_266 = arith.constant 0 : index
    %469 = vector.load %arg18[%c0_263, %c1_264, %c0_265, %c0_266] : memref<1x2x1x32xf32, #tpu.memory_space<vmem>>, vector<1x1x1x32xf32>
    %470 = vector.shape_cast %469 : vector<1x1x1x32xf32> to vector<1x32xf32>
    %cst_267 = arith.constant dense<0.000000e+00> : vector<16xf32>
    %471 = vector.multi_reduction <add>, %466, %cst_267 [1] : vector<16x32xf32> to vector<16xf32>
    %472 = vector.shape_cast %471 : vector<16xf32> to vector<16x1xf32>
    %cst_268 = arith.constant 3.200000e+01 : f32
    %473 = vector.broadcast %cst_268 : f32 to vector<16x1xf32>
    %474 = arith.divf %472, %473 : vector<16x1xf32>
    %475 = vector.broadcast %474 : vector<16x1xf32> to vector<16x32xf32>
    %476 = arith.subf %466, %475 : vector<16x32xf32>
    %477 = arith.mulf %476, %476 : vector<16x32xf32>
    %cst_269 = arith.constant dense<0.000000e+00> : vector<16xf32>
    %478 = vector.multi_reduction <add>, %477, %cst_269 [1] : vector<16x32xf32> to vector<16xf32>
    %479 = vector.shape_cast %478 : vector<16xf32> to vector<16x1xf32>
    %cst_270 = arith.constant 3.200000e+01 : f32
    %480 = vector.broadcast %cst_270 : f32 to vector<16x1xf32>
    %481 = arith.divf %479, %480 : vector<16x1xf32>
    %cst_271 = arith.constant 9.99999996E-13 : f32
    %482 = vector.broadcast %cst_271 : f32 to vector<16x1xf32>
    %483 = arith.addf %481, %482 : vector<16x1xf32>
    %484 = math.rsqrt %483 : vector<16x1xf32>
    %485 = vector.broadcast %484 : vector<16x1xf32> to vector<16x32xf32>
    %486 = arith.mulf %476, %485 : vector<16x32xf32>
    %487 = vector.broadcast %468 : vector<1x32xf32> to vector<16x32xf32>
    %488 = arith.mulf %486, %487 : vector<16x32xf32>
    %489 = vector.broadcast %470 : vector<1x32xf32> to vector<16x32xf32>
    %490 = arith.addf %488, %489 : vector<16x32xf32>
    %491 = vector.shape_cast %490 : vector<16x32xf32> to vector<2x8x32xf32>
    %492 = vector.extract_strided_slice %491 {offsets = [0, 0, 0], sizes = [2, 1, 32], strides = [1, 1, 1]} : vector<2x8x32xf32> to vector<2x1x32xf32>
    %493 = vector.shape_cast %492 : vector<2x1x32xf32> to vector<2x32xf32>
    %c0_272 = arith.constant 0 : index
    %c0_273 = arith.constant 0 : index
    %c0_274 = arith.constant 0 : index
    %494 = vector.load %arg19[%c0_272, %c0_273, %c0_274] : memref<1x32x32xbf16, #tpu.memory_space<vmem>>, vector<1x32x32xbf16>
    %495 = vector.shape_cast %494 : vector<1x32x32xbf16> to vector<32x32xbf16>
    %496 = arith.truncf %493 : vector<2x32xf32> to vector<2x32xbf16>
    %cst_275 = arith.constant dense<0.000000e+00> : vector<2x32xf32>
    %497 = tpu.matmul %496, %495, %cst_275 {dimension_numbers = #tpu.dot_dimension_numbers<[1], [0], [0], [1], [0, 0, 1, 1], [], []>} : vector<2x32xbf16>, vector<32x32xbf16>, vector<2x32xf32> -> vector<2x32xf32>
    %c0_276 = arith.constant 0 : index
    %c0_277 = arith.constant 0 : index
    %c0_278 = arith.constant 0 : index
    %498 = vector.load %arg20[%c0_276, %c0_277, %c0_278] : memref<1x1x32xf32, #tpu.memory_space<vmem>>, vector<1x1x32xf32>
    %499 = vector.shape_cast %498 : vector<1x1x32xf32> to vector<1x32xf32>
    %500 = vector.broadcast %499 : vector<1x32xf32> to vector<2x32xf32>
    %501 = arith.addf %497, %500 : vector<2x32xf32>
    %502 = math.tanh %501 : vector<2x32xf32>
    %c0_279 = arith.constant 0 : index
    %c0_280 = arith.constant 0 : index
    %c0_281 = arith.constant 0 : index
    %503 = vector.load %arg21[%c0_279, %c0_280, %c0_281] : memref<1x32x128xbf16, #tpu.memory_space<vmem>>, vector<1x32x128xbf16>
    %504 = vector.shape_cast %503 : vector<1x32x128xbf16> to vector<32x128xbf16>
    %505 = arith.truncf %502 : vector<2x32xf32> to vector<2x32xbf16>
    %cst_282 = arith.constant dense<0.000000e+00> : vector<2x128xf32>
    %506 = tpu.matmul %505, %504, %cst_282 {dimension_numbers = #tpu.dot_dimension_numbers<[1], [0], [0], [1], [0, 0, 1, 1], [], []>} : vector<2x32xbf16>, vector<32x128xbf16>, vector<2x128xf32> -> vector<2x128xf32>
    %c0_283 = arith.constant 0 : index
    %c0_284 = arith.constant 0 : index
    %c0_285 = arith.constant 0 : index
    %507 = vector.load %arg22[%c0_283, %c0_284, %c0_285] : memref<1x1x128xf32, #tpu.memory_space<vmem>>, vector<1x1x128xf32>
    %508 = vector.shape_cast %507 : vector<1x1x128xf32> to vector<1x128xf32>
    %509 = vector.broadcast %508 : vector<1x128xf32> to vector<2x128xf32>
    %510 = arith.addf %506, %509 : vector<2x128xf32>
    %c0_286 = arith.constant 0 : index
    %c0_287 = arith.constant 0 : index
    %c0_288 = arith.constant 0 : index
    %511 = vector.load %arg23[%c0_286, %c0_287, %c0_288] : memref<1x2x128xf32, #tpu.memory_space<vmem>>, vector<1x2x128xf32>
    %512 = vector.shape_cast %511 : vector<1x2x128xf32> to vector<2x128xf32>
    %513 = vector.shape_cast %510 : vector<2x128xf32> to vector<1x2x128xf32>
    tpu.vector_store %arg23[%c0_286, %c0_287, %c0_288], %513 {strides = array<i32>} : memref<1x2x128xf32, #tpu.memory_space<vmem>>, vector<1x2x128xf32>,
    return
  }
  func.func @transform_0(%arg0: i32, %arg1: memref<16xi32, #tpu.memory_space<smem>>) -> (i32, i32, i32) {
    %c0_i32 = arith.constant 0 : i32
    %c0_i32_0 = arith.constant 0 : i32
    %c0_i32_1 = arith.constant 0 : i32
    return %arg0, %c0_i32, %c0_i32_0 : i32, i32, i32
  }
  func.func @transform_1(%arg0: i32, %arg1: memref<16xi32, #tpu.memory_space<smem>>) -> (i32, i32, i32) {
    %c0_i32 = arith.constant 0 : i32
    %c0_i32_0 = arith.constant 0 : i32
    %c0_i32_1 = arith.constant 0 : i32
    return %arg0, %c0_i32, %c0_i32_0 : i32, i32, i32
  }
  func.func @transform_2(%arg0: i32, %arg1: memref<16xi32, #tpu.memory_space<smem>>) -> (i32, i32, i32) {
    %c0_i32 = arith.constant 0 : i32
    %c0_i32_0 = arith.constant 0 : i32
    %c0_i32_1 = arith.constant 0 : i32
    return %arg0, %c0_i32, %c0_i32_0 : i32, i32, i32
  }
  func.func @transform_3(%arg0: i32, %arg1: memref<16xi32, #tpu.memory_space<smem>>) -> (i32, i32, i32) {
    %c0_i32 = arith.constant 0 : i32
    %c0_i32_0 = arith.constant 0 : i32
    %c0_i32_1 = arith.constant 0 : i32
    return %arg0, %c0_i32, %c0_i32_0 : i32, i32, i32
  }
  func.func @transform_4(%arg0: i32, %arg1: memref<16xi32, #tpu.memory_space<smem>>) -> (i32, i32, i32) {
    %c0_i32 = arith.constant 0 : i32
    %c0_i32_0 = arith.constant 0 : i32
    %c0_i32_1 = arith.constant 0 : i32
    return %arg0, %c0_i32, %c0_i32_0 : i32, i32, i32
  }
  func.func @transform_5(%arg0: i32, %arg1: memref<16xi32, #tpu.memory_space<smem>>) -> (i32, i32, i32, i32) {
    %c0_i32 = arith.constant 0 : i32
    %c0_i32_0 = arith.constant 0 : i32
    %c0_i32_1 = arith.constant 0 : i32
    %c0_i32_2 = arith.constant 0 : i32
    return %arg0, %c0_i32, %c0_i32_0, %c0_i32_1 : i32, i32, i32, i32
  }
  func.func @transform_6(%arg0: i32, %arg1: memref<16xi32, #tpu.memory_space<smem>>) -> (i32, i32, i32, i32) {
    %c0_i32 = arith.constant 0 : i32
    %c0_i32_0 = arith.constant 0 : i32
    %c0_i32_1 = arith.constant 0 : i32
    %c0_i32_2 = arith.constant 0 : i32
    return %arg0, %c0_i32, %c0_i32_0, %c0_i32_1 : i32, i32, i32, i32
  }
  func.func @transform_7(%arg0: i32, %arg1: memref<16xi32, #tpu.memory_space<smem>>) -> (i32, i32, i32, i32) {
    %c0_i32 = arith.constant 0 : i32
    %c0_i32_0 = arith.constant 0 : i32
    %c0_i32_1 = arith.constant 0 : i32
    %c0_i32_2 = arith.constant 0 : i32
    return %arg0, %c0_i32, %c0_i32_0, %c0_i32_1 : i32, i32, i32, i32
  }
  func.func @transform_8(%arg0: i32, %arg1: memref<16xi32, #tpu.memory_space<smem>>) -> (i32, i32, i32, i32) {
    %c0_i32 = arith.constant 0 : i32
    %c0_i32_0 = arith.constant 0 : i32
    %c0_i32_1 = arith.constant 0 : i32
    %c0_i32_2 = arith.constant 0 : i32
    return %arg0, %c0_i32, %c0_i32_0, %c0_i32_1 : i32, i32, i32, i32
  }
  func.func @transform_9(%arg0: i32, %arg1: memref<16xi32, #tpu.memory_space<smem>>) -> (i32, i32, i32, i32) {
    %c0_i32 = arith.constant 0 : i32
    %c0_i32_0 = arith.constant 0 : i32
    %c0_i32_1 = arith.constant 0 : i32
    %c0_i32_2 = arith.constant 0 : i32
    return %arg0, %c0_i32, %c0_i32_0, %c0_i32_1 : i32, i32, i32, i32
  }
  func.func @transform_10(%arg0: i32, %arg1: memref<16xi32, #tpu.memory_space<smem>>) -> (i32, i32, i32, i32) {
    %c0_i32 = arith.constant 0 : i32
    %c0_i32_0 = arith.constant 0 : i32
    %c0_i32_1 = arith.constant 0 : i32
    %c0_i32_2 = arith.constant 0 : i32
    return %arg0, %c0_i32, %c0_i32_0, %c0_i32_1 : i32, i32, i32, i32
  }
  func.func @transform_11(%arg0: i32, %arg1: memref<16xi32, #tpu.memory_space<smem>>) -> (i32, i32, i32, i32) {
    %c0_i32 = arith.constant 0 : i32
    %c0_i32_0 = arith.constant 0 : i32
    %c0_i32_1 = arith.constant 0 : i32
    %c0_i32_2 = arith.constant 0 : i32
    return %arg0, %c0_i32, %c0_i32_0, %c0_i32_1 : i32, i32, i32, i32
  }
  func.func @transform_12(%arg0: i32, %arg1: memref<16xi32, #tpu.memory_space<smem>>) -> (i32, i32, i32, i32) {
    %c0_i32 = arith.constant 0 : i32
    %c0_i32_0 = arith.constant 0 : i32
    %c0_i32_1 = arith.constant 0 : i32
    %c0_i32_2 = arith.constant 0 : i32
    return %arg0, %c0_i32, %c0_i32_0, %c0_i32_1 : i32, i32, i32, i32
  }
  func.func @transform_13(%arg0: i32, %arg1: memref<16xi32, #tpu.memory_space<smem>>) -> (i32, i32, i32, i32) {
    %c0_i32 = arith.constant 0 : i32
    %c0_i32_0 = arith.constant 0 : i32
    %c0_i32_1 = arith.constant 0 : i32
    %c0_i32_2 = arith.constant 0 : i32
    return %arg0, %c0_i32, %c0_i32_0, %c0_i32_1 : i32, i32, i32, i32
  }
  func.func @transform_14(%arg0: i32, %arg1: memref<16xi32, #tpu.memory_space<smem>>) -> (i32, i32, i32, i32) {
    %c0_i32 = arith.constant 0 : i32
    %c0_i32_0 = arith.constant 0 : i32
    %c0_i32_1 = arith.constant 0 : i32
    %c0_i32_2 = arith.constant 0 : i32
    return %arg0, %c0_i32, %c0_i32_0, %c0_i32_1 : i32, i32, i32, i32
  }
  func.func @transform_15(%arg0: i32, %arg1: memref<16xi32, #tpu.memory_space<smem>>) -> (i32, i32, i32, i32) {
    %c0_i32 = arith.constant 0 : i32
    %c0_i32_0 = arith.constant 0 : i32
    %c0_i32_1 = arith.constant 0 : i32
    %c0_i32_2 = arith.constant 0 : i32
    return %arg0, %c0_i32, %c0_i32_0, %c0_i32_1 : i32, i32, i32, i32
  }
  func.func @transform_16(%arg0: i32, %arg1: memref<16xi32, #tpu.memory_space<smem>>) -> (i32, i32, i32, i32) {
    %c0_i32 = arith.constant 0 : i32
    %c0_i32_0 = arith.constant 0 : i32
    %c0_i32_1 = arith.constant 0 : i32
    %c0_i32_2 = arith.constant 0 : i32
    return %arg0, %c0_i32, %c0_i32_0, %c0_i32_1 : i32, i32, i32, i32
  }
  func.func @transform_17(%arg0: i32, %arg1: memref<16xi32, #tpu.memory_space<smem>>) -> (i32, i32, i32) {
    %c0_i32 = arith.constant 0 : i32
    %c0_i32_0 = arith.constant 0 : i32
    %c0_i32_1 = arith.constant 0 : i32
    return %arg0, %c0_i32, %c0_i32_0 : i32, i32, i32
  }
  func.func @transform_18(%arg0: i32, %arg1: memref<16xi32, #tpu.memory_space<smem>>) -> (i32, i32, i32) {
    %c0_i32 = arith.constant 0 : i32
    %c0_i32_0 = arith.constant 0 : i32
    %c0_i32_1 = arith.constant 0 : i32
    return %arg0, %c0_i32, %c0_i32_0 : i32, i32, i32
  }
  func.func @transform_19(%arg0: i32, %arg1: memref<16xi32, #tpu.memory_space<smem>>) -> (i32, i32, i32) {
    %c0_i32 = arith.constant 0 : i32
    %c0_i32_0 = arith.constant 0 : i32
    %c0_i32_1 = arith.constant 0 : i32
    return %arg0, %c0_i32, %c0_i32_0 : i32, i32, i32
  }
  func.func @transform_20(%arg0: i32, %arg1: memref<16xi32, #tpu.memory_space<smem>>) -> (i32, i32, i32) {
    %c0_i32 = arith.constant 0 : i32
    %c0_i32_0 = arith.constant 0 : i32
    %c0_i32_1 = arith.constant 0 : i32
    return %arg0, %c0_i32, %c0_i32_0 : i32, i32, i32
  }
  func.func @transform_21(%arg0: i32, %arg1: memref<16xi32, #tpu.memory_space<smem>>) -> (i32, i32, i32) {
    %c0_i32 = arith.constant 0 : i32
    %c0_i32_0 = arith.constant 0 : i32
    %c0_i32_1 = arith.constant 0 : i32
    return %arg0, %c0_i32, %c0_i32_0 : i32, i32, i32
  }
}

</mosaic_0001>

<bundles_post_ra>
// kernel: bert_double_forward.1
= control target key start
LH: loop header
LB: loop body
LE: loop exit
PB: predicated region body
PF: predicated region fallthrough
CT: control target
= control target key end

     0   :  { %s5712_s0 = inlined_call_operand.vmem [shape: s32[16], index: 0, kind: input, shape index: {}]   ;;  %s5713_s1 = inlined_call_operand.vmem [shape: f32[2,64,32], index: 1, kind: input, shape index: {}]   ;;  %s5714_s2 = inlined_call_operand.vmem [shape: f32[2,16,32], index: 2, kind: input, shape index: {}]   ;;  %s5715_s3 = inlined_call_operand.vmem [shape: f32[2,2,32], index: 3, kind: input, shape index: {}]   ;;  %s5716_s4 = inlined_call_operand.vmem [shape: f32[2,1,32], index: 4, kind: input, shape index: {}]   ;;  %s5717_s5 = inlined_call_operand.vmem [shape: f32[2,1,32], index: 5, kind: input, shape index: {}]   ;;  %s5718_s6 = inlined_call_operand.vmem [shape: bf16[2,2,32,96], index: 6, kind: input, shape index: {}]   ;;  %s5719_s7 = inlined_call_operand.vmem [shape: f32[2,2,1,96], index: 7, kind: input, shape index: {}]   ;;  %s5720_s8 = inlined_call_operand.vmem [shape: bf16[2,2,32,32], index: 8, kind: input, shape index: {}]   ;;  %s5721_s9 = inlined_call_operand.vmem [shape: f32[2,2,1,32], index: 9, kind: input, shape index: {}]   ;;  %s5722_s10 = inlined_call_operand.vmem [shape: f32[2,2,1,32], index: 10, kind: input, shape index: {}]   ;;  %s5723_s11 = inlined_call_operand.vmem [shape: f32[2,2,1,32], index: 11, kind: input, shape index: {}]   ;;  %s5724_s12 = inlined_call_operand.vmem [shape: bf16[2,2,32,64], index: 12, kind: input, shape index: {}]   ;;  %s5725_s13 = inlined_call_operand.vmem [shape: f32[2,2,1,64], index: 13, kind: input, shape index: {}]   ;;  %s5726_s14 = inlined_call_operand.vmem [shape: bf16[2,2,64,32], index: 14, kind: input, shape index: {}]   ;;  %s5727_s15 = inlined_call_operand.vmem [shape: f32[2,2,1,32], index: 15, kind: input, shape index: {}]   ;;  %s5728_s16 = inlined_call_operand.vmem [shape: f32[2,2,1,32], index: 16, kind: input, shape index: {}]   ;;  %s5729_s17 = inlined_call_operand.vmem [shape: f32[2,2,1,32], index: 17, kind: input, shape index: {}]   ;;  %s5730_s18 = inlined_call_operand.vmem [shape: bf16[2,32,32], index: 18, kind: input, shape index: {}]   ;;  %s5731_s19 = inlined_call_operand.vmem [shape: f32[2,1,32], index: 19, kind: input, shape index: {}]   ;;  %s5732_s20 = inlined_call_operand.vmem [shape: bf16[2,32,128], index: 20, kind: input, shape index: {}]   ;;  %s5733_s21 = inlined_call_operand.vmem [shape: f32[2,1,128], index: 21, kind: input, shape index: {}]   ;;  %s5734_s22 = inlined_call_operand.vmem [shape: f32[2,2,128], index: 22, kind: output, shape index: {}]  }
   0x1   :  { %5758 = sst [smem:[#allocation9_spill]] %s5712_s0 }
   0x2   :  { %5759 = sst [smem:[#allocation10_spill]] %s5713_s1 }
   0x3   :  { %5760 = sst [smem:[#allocation11_spill]] %s5714_s2 }
   0x4   :  { %5761 = sst [smem:[#allocation12_spill]] %s5715_s3 }
   0x5   :  { %5762 = sst [smem:[#allocation13_spill]] %s5716_s4 }
   0x6   :  { %5763 = sst [smem:[#allocation14_spill]] %s5717_s5 }
   0x7   :  { %5764 = sst [smem:[#allocation15_spill]] %s5718_s6 }
   0x8   :  { %5765 = sst [smem:[#allocation16_spill]] %s5726_s14 }
   0x9   :  { %5766 = sst [smem:[#allocation17_spill]] %s5728_s16 }
   0xa   :  { %5767 = sst [smem:[#allocation18_spill]] %s5729_s17 }
   0xb   :  { %5768 = sst [smem:[#allocation19_spill]] %s5730_s18 }
   0xc   :  { %5769 = sst [smem:[#allocation20_spill]] %s5731_s19 }
   0xd   :  { %5770 = sst [smem:[#allocation21_spill]] %s5732_s20 }
   0xe   :  { %5771 = sst [smem:[#allocation22_spill]] %s5733_s21 }
   0xf   :  { %5772 = sst [smem:[#allocation23_spill]] %s5734_s22 }
  0x10   :  { %s5773_s29 = sld [smem:[#allocation9_spill]] }
  0x16   :  { %s27_s16 = sshll.u32 %s5773_s29, 4  ;;  %s28_s16 = int_to_ptr.vmem [resolvable:$true] %s27_s16 }
  0x17   :  { %s4927_s30 = scalar_lea.vmem %s28_s16, 16  ;;  %p4932_p1 = scmp.lt.s32.totalorder %s28_s16, %s28_s16 }
  0x18   :  { %p4928_p0 = scmp.ne.s32.totalorder %s28_s16, %s4927_s30  ;;  %p4933_p2 = scmp.lt.s32.totalorder %s4927_s30, %s4927_s30 }
  0x1a   :  { %p4934_p3 = por %p4933_p2, %p4932_p1 }
  0x1c   :  { %p4935_p4 = pnand %p4934_p3, %p4928_p0 }
  0x1e   :  { %4938 = shalt.err (!%p4935_p4)  }
  0x1f   :  { %s4949_s4 = smov [#allocation4]  }
  0x20   :  { %30 = dma.vmem_to_smem %s28_s16, 16, %s4949_s4, [#allocation3] }
  0x21   :  { %4943 = dma.done.wait [#allocation3], 16 }
  0x22   :  { %4944 = vsyncadd [#allocation3], 4294967280 }
  0x23   :  { %32 = sfence }
  0x24   :  { %s5084_s0 = smov 0  }
  0x25 LB: > { %5774 = sst [smem:[#allocation6_spill]] %s4947_s0  ;;  %s4235_s23 = sadd.s32 4294967295, %s4947_s0   ;;  %s4947_s0 = sphi %s5084_s0, %s38_s0  }
  0x26   : > { %p4239_p5 = scmp.ge.s32.totalorder %s4947_s0, 1  ;;  %p777_p6 = scmp.lt.s32.totalorder %s4947_s0, 3 }
  0x28   : > { %p778_p7 = pnand %p4239_p5, %p777_p6 }
  0x2a   : > { %781 = sbr.rel (%p778_p7) target bundleno = 8726 (0x2216), region = 104 }
  0x2f   : > { %p919_p8 = scmp.lt.s32.totalorder %s4235_s23, 1  ;;  %s1012_s16 = sld [smem:[#allocation4]]  ;;  %vm1015_vm0 = vcmask 253952   ;;  %vm1091_vm1 = vcmask 261120   ;;  %v4950_v36 = vmov 0.0   ;;  %vm4951_vm2 = vmmov 0  }
  0x30   : > { %s4266_s1 = sld [smem:[#allocation4 + $0x1]]  ;;  %4504 = vmatprep.subr.bf16.mxu0 %v4950_v36  ;;  %4508 = vmatprep.mubr.msk.bf16.mxu0 %vm4951_vm2, %v4950_v36  ;;  %vm1208_vm3 = vcmask 64512   ;;  %vm1335_vm4 = vcmask 1043456   ;;  %vm1659_vm5 = vcmask 130112   ;;  %vm1892_vm6 = vcmask 195712  }
  0x31   : > { %s5805_s23 = smov (!%p919_p8, %s4235_s23), 1  ;;  %s4267_s5 = sld [smem:[#allocation4 + $0x2]]  ;;  %4512 = vmatprep.subr.bf16.mxu1 %v4950_v36  ;;  %4514 = vmatprep.mubr.msk.bf16.mxu1 %vm4951_vm2, %v4950_v36  ;;  %vm2125_vm7 = vcmask 261312   ;;  %vm2370_vm8 = vcmask 523264   ;;  %vm3811_vm9 = vcmask 1041409  }
  0x32   : > { %s4398_s24 = sshll.u32 %s5805_s23, 6  ;;  %s5775_s26 = sld [smem:[#allocation10_spill]] }
  0x33   : > { %s5776_s14 = sld [smem:[#allocation16_spill]]  ;;  %s5106_s29 = sshll.u32 %s5805_s23, 4 }
  0x34   : > { %s4268_s25 = sld [smem:[#allocation4 + $0x3]] }
  0x35   : > { %s4271_s27 = sld [smem:[#allocation4 + $0x6]] }
  0x36   : > { %s5777_s18 = sld [smem:[#allocation19_spill]] }
  0x37   : > { %s5779_s20 = sld [smem:[#allocation21_spill]] }
  0x38   : > { %s5098_s2 = scalar_lea.vmem %s5775_s26, %s4398_s24  ;;  %s4270_s26 = sld [smem:[#allocation4 + $0x5]] }
  0x39   : > { %s5103_s28 = scalar_lea.vmem %s5776_s14, %s4398_s24  ;;  %s1013_s30 = scalar_lea.vmem %s5098_s2, %s1012_s16 }
  0x3a   : > { %v1014_v0 = vld [vmem:[%s1013_s30] sm:$0x1]  ;;  %s1018_s4 = scalar_lea.vmem %s5098_s2, %s4266_s1  ;;  %s1022_s6 = scalar_lea.vmem %s5098_s2, %s4267_s5 }
  0x3b   : > { %1016 = vst.msk [vmem:[#allocation2] sm:$0x1] %vm1015_vm0, %v1014_v0  ;;  %v1019_v1 = vld [vmem:[%s1018_s4] sm:$0x1]  ;;  %s4269_s24 = sld [smem:[#allocation4 + $0x4]]  ;;  %s1026_s0 = scalar_lea.vmem %s5098_s2, %s4268_s25 }
  0x3c   : > { %v1023_v2 = vld [vmem:[%s1022_s6] sm:$0x1]  ;;  %1020 = vst.msk [vmem:[#allocation2 + $0x1] sm:$0x1] %vm1015_vm0, %v1019_v1  ;;  %s5118_s1 = scalar_lea.vmem %s5777_s18, %s5106_s29  ;;  %s4272_s5 = sld [smem:[#allocation4 + $0x7]] }
  0x3d   : > { %1024 = vst.msk [vmem:[#allocation2 + $0x2] sm:$0x1] %vm1015_vm0, %v1023_v2  ;;  %5778 = sst [smem:[#allocation7_spill]] %s5118_s1  ;;  %s5124_s4 = scalar_lea.vmem %s5779_s20, %s5106_s29  ;;  %v1027_v3 = vld [vmem:[%s1026_s0] sm:$0x1] }
  0x3e   : > { %5780 = sst [smem:[#allocation8_spill]] %s5124_s4  ;;  %1028 = vst.msk [vmem:[#allocation2 + $0x3] sm:$0x1] %vm1015_vm0, %v1027_v3  ;;  %s1034_s3 = scalar_lea.vmem %s5098_s2, %s4270_s26 }
  0x3f   : > { %s4273_s6 = sld [smem:[#allocation4 + $0x8]]  ;;  %v1035_v5 = vld [vmem:[%s1034_s3] sm:$0x1]  ;;  %s1038_s14 = scalar_lea.vmem %s5098_s2, %s4271_s27 }
  0x40   : > { %s4274_s22 = sld [smem:[#allocation4 + $0x9]]  ;;  %1036 = vst.msk [vmem:[#allocation2 + $0x5] sm:$0x1] %vm1015_vm0, %v1035_v5  ;;  %v1039_v6 = vld [vmem:[%s1038_s14] sm:$0x1]  ;;  %s5139_s3 = sshll.u32 %s5805_s23, 1 }
  0x41   : > { %s1030_s21 = scalar_lea.vmem %s5098_s2, %s4269_s24  ;;  %s4275_s19 = sld [smem:[#allocation4 + $0xa]]  ;;  %1040 = vst.msk [vmem:[#allocation2 + $0x6] sm:$0x1] %vm1015_vm0, %v1039_v6 }
  0x42   : > { %v1031_v4 = vld [vmem:[%s1030_s21] sm:$0x1]  ;;  %s4276_s16 = sld [smem:[#allocation4 + $0xb]]  ;;  %s1042_s0 = scalar_lea.vmem %s5098_s2, %s4272_s5 }
  0x43   : > { %1032 = vst.msk [vmem:[#allocation2 + $0x4] sm:$0x1] %vm1015_vm0, %v1031_v4  ;;  %s4277_s30 = sld [smem:[#allocation4 + $0xc]]  ;;  %v1043_v7 = vld [vmem:[%s1042_s0] sm:$0x1]  ;;  %s5214_s20 = scalar_lea.vmem %s5719_s7, %s5139_s3 }
  0x44   : > { %s4278_s25 = sld [smem:[#allocation4 + $0xd]]  ;;  %1044 = vst.msk [vmem:[#allocation2 + $0x7] sm:$0x1] %vm1015_vm0, %v1043_v7  ;;  %v4284_v56 = vld [vmem:[%s5214_s20] ss:$0 sm:$0xff]  ;;  %s5750_s14 = smov 48  }
  0x45   : > { %s1046_s21 = scalar_lea.vmem %s5098_s2, %s4273_s6  ;;  %s4279_s24 = sld [smem:[#allocation4 + $0xe]] }
  0x46   : > { %v1047_v8 = vld [vmem:[%s1046_s21] sm:$0x1]  ;;  %s1050_s26 = scalar_lea.vmem %s5098_s2, %s4274_s22  ;;  %s4280_s27 = sld [smem:[#allocation4 + $0xf]] }
  0x47   : > { %1048 = vst.msk [vmem:[#allocation2 + $0x8] sm:$0x1] %vm1015_vm0, %v1047_v8  ;;  %v1051_v9 = vld [vmem:[%s1050_s26] sm:$0x1]  ;;  %s1054_s5 = scalar_lea.vmem %s5098_s2, %s4275_s19  ;;  %s5781_s0 = sld [smem:[#allocation11_spill]] }
  0x48   : > { %1052 = vst.msk [vmem:[#allocation2 + $0x9] sm:$0x1] %vm1015_vm0, %v1051_v9  ;;  %v1055_v10 = vld [vmem:[%s1054_s5] sm:$0x1]  ;;  %s1058_s21 = scalar_lea.vmem %s5098_s2, %s4276_s16  ;;  %s5782_s1 = sld [smem:[#allocation12_spill]] }
  0x49   : > { %1056 = vst.msk [vmem:[#allocation2 + $0xa] sm:$0x1] %vm1015_vm0, %v1055_v10  ;;  %v1059_v11 = vld [vmem:[%s1058_s21] sm:$0x1]  ;;  %s1062_s22 = scalar_lea.vmem %s5098_s2, %s4277_s30  ;;  %s4954_s16 = smov 88  }
  0x4a   : > { %1060 = vst.msk [vmem:[#allocation2 + $0xb] sm:$0x1] %vm1015_vm0, %v1059_v11  ;;  %v1063_v12 = vld [vmem:[%s1062_s22] sm:$0x1]  ;;  %s1066_s19 = scalar_lea.vmem %s5098_s2, %s4278_s25  ;;  %s4955_s30 = smov 120  }
  0x4b   : > { %1064 = vst.msk [vmem:[#allocation2 + $0xc] sm:$0x1] %vm1015_vm0, %v1063_v12  ;;  %v1067_v14 = vld [vmem:[%s1066_s19] sm:$0x1]  ;;  %s1070_s18 = scalar_lea.vmem %s5098_s2, %s4279_s24  ;;  %s5785_s19 = sld [smem:[#allocation14_spill]] }
  0x4c   : > { %1068 = vst.msk [vmem:[#allocation2 + $0xd] sm:$0x1] %vm1015_vm0, %v1067_v14  ;;  %v1071_v15 = vld [vmem:[%s1070_s18] sm:$0x1]  ;;  %s5756_s24 = smov 56   ;;  %s5754_s26 = smov 80  }
  0x4d   : > { %s928_s6 = scalar_lea.vmem %s5781_s0, %s5106_s29  ;;  %s1074_s29 = scalar_lea.vmem %s5098_s2, %s4280_s27  ;;  %v1078_v16 = vld [vmem:[#allocation2] sm:$0xff]  ;;  %1072 = vst.msk [vmem:[#allocation2 + $0xe] sm:$0x1] %vm1015_vm0, %v1071_v15 }
  0x4e   : > { %s932_s17 = scalar_lea.vmem %s5782_s1, %s5139_s3  ;;  %v1077_v13 = vld [vmem:[%s928_s6] sm:$0xff]  ;;  %s5783_s1 = sld [smem:[#allocation15_spill]] }
  0x4f   : > { %v4281_v17 = vld [vmem:[%s932_s17] ss:$0 sm:$0xff]  ;;  %v1080_v19 = vadd.f32 %v1078_v16, %v1077_v13  ;;  %s4400_s17 = sshll.u32 %s5805_s23, 5  ;;  %s5784_s0 = sld [smem:[#allocation13_spill]] }
  0x50   : > { %v1075_v18 = vld [vmem:[%s1074_s29] sm:$0x1]  ;;  %s5183_s25 = scalar_lea.vmem %s5720_s8, %s4400_s17  ;;  %s5188_s27 = scalar_lea.vmem %s5724_s12, %s4400_s17 }
  0x51   : > { %1076 = vst.msk [vmem:[#allocation2 + $0xf] sm:$0x1] %vm1015_vm0, %v1075_v18  ;;  %v1087_v20 = vadd.f32 %v4281_v17, %v1080_v19  ;;  %s938_s18 = scalar_lea.vmem %s5785_s19, %s5805_s23  ;;  %s4952_s2 = smov 96  }
  0x52   : > { %v4283_v51 = vld [vmem:[%s938_s18] ss:$0 sm:$0xff]  ;;  %s5752_s5 = smov 112   ;;  %s5744_s21 = smov 40  }
  0x53   : > { %v1092_v21 = vsel %vm1091_vm1, %v1087_v20, 0.0  ;;  %s5742_s22 = smov 8   ;;  %s5740_s19 = smov 16  }
  0x54   : > { %1093 = vadd.xlane.f32.xlu0 %v1092_v21  ;;  %s5172_s4 = scalar_lea.vmem %s5783_s1, %s4400_s17  ;;  %s4953_s1 = smov 64  }
  0x55   : > { %v4809_v37 = vld [vmem:[%s5172_s4 + $0x8] sm:$0xff]   ;;  %v4810_v38 = vld [vmem:[%s5172_s4] sm:$0xff]   ;;  %s935_s6 = scalar_lea.vmem %s5784_s0, %s5805_s23  ;;  %s5748_s0 = smov 72  }
  0x56   : > { %4505 = vmatpush3.bf16.msra.mxu0 %v4809_v37  ;;  %v4282_v47 = vld [vmem:[%s935_s6] ss:$0 sm:$0xff]  ;;  %s5746_s6 = smov 104   ;;  %s5738_s18 = smov 24  }
  0x57   : > { %4506 = vmatprep.subr.bf16.mxu0 %v4950_v36  ;;  %s5436_s29 = scalar_lea.vmem %s5725_s13, %s5139_s3  ;;  %s5796_s17 = smov 16  }
  0x58   : > { %v1079_v22 = vld [vmem:[#allocation2 + $0x8] sm:$0xff] }
  0x59   : > { %v1081_v23 = vadd.f32 %v1079_v22, %v1077_v13 }
  0x5a   : > { %4507 = vmatpush3.bf16.msra.mxu0 %v4810_v38 }
  0x5b   : > { %v1088_v24 = vadd.f32 %v4281_v17, %v1081_v23  ;;  %4518 = vmatprep.subr.bf16.mxu0 %v4950_v36 }
  0x5d   : > { %v1095_v25 = vsel %vm1091_vm1, %v1088_v24, 0.0 }
  0x5e   : > { %1096 = vadd.xlane.f32.xlu0 %v1095_v25 }
  0xdd   : > { %v1094_v26 = vpop.xlane.xlu0 %1093 }
  0xde   : > { %v1099_v27 = vmul.f32 0.03125, %v1094_v26 }
  0xe0   : > { %v1101_v28 = vsub.f32 %v1087_v20, %v1099_v27 }
  0xe2   : > { %v1103_v29 = vmul.f32 %v1101_v28, %v1101_v28 }
  0xe4   : > { %v1105_v30 = vsel %vm1091_vm1, %v1103_v29, 0.0 }
  0xe5   : > { %1106 = vadd.xlane.f32.xlu1 %v1105_v30 }
  0xe7   : > { %v1097_v31 = vpop.xlane.xlu0 %1096 }
  0xe8   : > { %v1100_v32 = vmul.f32 0.03125, %v1097_v31 }
  0xea   : > { %v1102_v33 = vsub.f32 %v1088_v24, %v1100_v32 }
  0xec   : > { %v1104_v34 = vmul.f32 %v1102_v33, %v1102_v33 }
  0xee   : > { %v1108_v35 = vsel %vm1091_vm1, %v1104_v34, 0.0 }
  0xef   : > { %1109 = vadd.xlane.f32.xlu1 %v1108_v35 }
 0x16e   : > { %v1107_v39 = vpop.xlane.xlu1 %1106 }
 0x16f   : > { %v1111_v40 = vmul.f32 0.03125, %v1107_v39 }
 0x171   : > { %v1113_v41 = vadd.f32 1e-12, %v1111_v40 }
 0x173   : > { %4833 = vrsqrt.f32 %v1113_v41 }
 0x178   : > { %v1110_v42 = vpop.xlane.xlu1 %1109 }
 0x179   : > { %v1112_v43 = vmul.f32 0.03125, %v1110_v42 }
 0x17b   : > { %v1114_v44 = vadd.f32 1e-12, %v1112_v43 }
 0x17d   : > { %4835 = vrsqrt.f32 %v1114_v44 }
 0x180   : > { %v4834_v45 = vpop.eup %4833 }
 0x181   : > { %v1117_v46 = vmul.f32 %v4834_v45, %v1101_v28 }
 0x183   : > { %v1125_v50 = vmul.f32 %v4282_v47, %v1117_v46 }
 0x185   : > { %v5201_v53 = vadd.f32 %v4283_v51, %v1125_v50 }
 0x18a   : > { %v4836_v48 = vpop.eup %4835 }
 0x18b   : > { %v1118_v49 = vmul.f32 %v4836_v48, %v1102_v33 }
 0x18d   : > { %v1126_v52 = vmul.f32 %v4282_v47, %v1118_v49 }
 0x18f   : > { %v5203_v54 = vadd.f32 %v4283_v51, %v1126_v52 }
 0x191   : > { %v1139_v55 = vpack.c.bf16 %v5203_v54, %v5201_v53 }
 0x193   : > { %4509 = vmatmul.mubr.msk.bf16.vlgmr.msra.gmra.mxu0 %vm1091_vm1, %v1139_v55 }
 0x194   : > { %4520 = vmatprep.mubr.msk.bf16.mxu0 %vm4951_vm2, %v4950_v36 }
 0x253   : > { %v1196_v57 = vpop.f32.mrf.mxu0 }
 0x254   : > { %v1197_v58 = vadd.f32 %v4284_v56, %v1196_v57 }
 0x255   : > { %v4510_v59 = vpop.f32.mrf.mxu0 }
 0x256   : > { %v5217_v60 = vpack.c.bf16 %v1197_v58, %v1197_v58 }
 0x257   : > { %v1199_v61 = vpop.f32.mrf.mxu0 }
 0x258   : > { %v1200_v62 = vadd.f32 %v4284_v56, %v1199_v61  ;;  %1206 = vrot.lane.b32.xlu0 %v5217_v60, %s4952_s2 }
 0x259   : > { %v4511_v63 = vpop.f32.mrf.mxu0 }
 0x25a   : > { %v5221_v0 = vpack.c.bf16 %v1200_v62, %v1200_v62 }
 0x25c   : > { %1256 = vrot.lane.b32.xlu1 %v5221_v0, %s4952_s2 }
 0x2ca   : > { %v1207_v1 = vpop.permute.xlu0 %1206 }
 0x2cb   : > { %v1213_v2 = vsel %vm1208_vm3, %v1207_v1, 0 }
 0x2cc   : > { %4513 = vmatpush3.bf16.xpose.msra.mxu1 %v1213_v2 }
 0x2cd   : > { %4524 = vmatprep.subr.bf16.mxu1 %v4950_v36 }
 0x2ce   : > { %v1257_v3 = vpop.permute.xlu1 %1256 }
 0x2cf   : > { %v1262_v4 = vsel %vm1208_vm3, %v1257_v3, 0 }
 0x2d0   : > { %4519 = vmatpush3.bf16.xpose.msra.mxu0 %v1262_v4 }
 0x2d1   : > { %4530 = vmatprep.subr.bf16.mxu0 %v4950_v36 }
 0x2d3   : > { %4515 = vmatmul.mubr.msk.bf16.vlgmr.msra.gmra.mxu1 %vm1208_vm3, %v5217_v60 }
 0x2d4   : > { %4526 = vmatprep.mubr.msk.bf16.mxu1 %vm4951_vm2, %v4950_v36 }
 0x2d7   : > { %4521 = vmatmul.mubr.msk.bf16.vlgmr.msra.gmra.mxu0 %vm1208_vm3, %v5221_v0 }
 0x2d8   : > { %4532 = vmatprep.mubr.msk.bf16.mxu0 %vm4951_vm2, %v4950_v36 }
 0x393   : > { %v1249_v5 = vpop.f32.mrf.mxu1 }
 0x394   : > { %v1304_v6 = vmul.f32 0.35355338, %v1249_v5 }
 0x395   : > { %v4516_v7 = vpop.f32.mrf.mxu1 }
 0x396   : > { %v1306_v8 = vsel %vm1208_vm3, %v1304_v6, -inf }
 0x397   : > { %v1252_v9 = vpop.f32.mrf.mxu1  ;;  %1307 = vmax.xlane.f32.xlu1 %v1306_v8  ;;  %v1298_v10 = vpop.f32.mrf.mxu0 }
 0x398   : > { %v1305_v11 = vmul.f32 0.35355338, %v1298_v10 }
 0x399   : > { %v4517_v12 = vpop.f32.mrf.mxu1  ;;  %v4522_v13 = vpop.f32.mrf.mxu0 }
 0x39a   : > { %v1309_v14 = vsel %vm1208_vm3, %v1305_v11, -inf }
 0x39b   : > { %1310 = vmax.xlane.f32.xlu0 %v1309_v14  ;;  %v1301_v15 = vpop.f32.mrf.mxu0 }
 0x39d   : > { %v4523_v16 = vpop.f32.mrf.mxu0 }
 0x3a8   : > { %1379 = vrot.lane.b32.xlu1 %v5221_v0, %s4953_s1 }
 0x3ac   : > { %1431 = vrot.lane.b32.xlu1 %v5217_v60, %s4954_s16 }
 0x420   : > { %v1308_v17 = vpop.xlane.xlu1 %1307 }
 0x421   : > { %v1312_v18 = vsub.f32 %v1304_v6, %v1308_v17 }
 0x423   : > { %v1314_v19 = vmul.f32 1.442695, %v1312_v18 }
 0x424   : > { %v1380_v20 = vpop.permute.xlu1 %1379  ;;  %v1311_v21 = vpop.xlane.xlu0 %1310 }
 0x425   : > { %4837 = vpow2.f32 %v1314_v19  ;;  %v1385_v22 = vsel %vm1335_vm4, %v1380_v20, 0  ;;  %v1313_v23 = vsub.f32 %v1305_v11, %v1311_v21 }
 0x426   : > { %4531 = vmatpush3.bf16.msra.mxu0 %v1385_v22 }
 0x427   : > { %v1316_v24 = vmul.f32 1.442695, %v1313_v23  ;;  %4542 = vmatprep.subr.bf16.mxu0 %v4950_v36 }
 0x428   : > { %v1432_v29 = vpop.permute.xlu1 %1431 }
 0x429   : > { %4839 = vpow2.f32 %v1316_v24  ;;  %v1437_v39 = vsel %vm1208_vm3, %v1432_v29, 0 }
 0x432   : > { %v4838_v25 = vpop.eup %4837 }
 0x433   : > { %v1318_v26 = vsel %vm1208_vm3, %v4838_v25, 0.0 }
 0x434   : > { %1319 = vadd.xlane.f32.xlu0 %v1318_v26 }
 0x436   : > { %v4840_v27 = vpop.eup %4839 }
 0x437   : > { %v1321_v28 = vsel %vm1208_vm3, %v4840_v27, 0.0 }
 0x438   : > { %1322 = vadd.xlane.f32.xlu1 %v1321_v28 }
 0x449   : > { %1481 = vrot.lane.b32.xlu1 %v5221_v0, %s4954_s16 }
 0x44a   : > { %1330 = vrot.lane.b32.xlu0 %v5217_v60, %s4953_s1 }
 0x44d   : > { %1479 = vrot.lane.b32.xlu1 %v5221_v0, %s4955_s30 }
 0x44e   : > { %1429 = vrot.lane.b32.xlu0 %v5217_v60, %s4955_s30 }
 0x4bd   : > { %v1320_v30 = vpop.xlane.xlu0 %1319 }
 0x4be   : > { %4841 = vrcp.f32 %v1320_v30 }
 0x4c1   : > { %v1323_v31 = vpop.xlane.xlu1 %1322  ;;  %v1331_v32 = vpop.permute.xlu0 %1330 }
 0x4c2   : > { %4843 = vrcp.f32 %v1323_v31  ;;  %v1337_v33 = vsel %vm1335_vm4, %v1331_v32, 0 }
 0x4c3   : > { %4525 = vmatpush3.bf16.msra.mxu1 %v1337_v33 }
 0x4c4   : > { %4536 = vmatprep.subr.bf16.mxu1 %v4950_v36 }
 0x4c5   : > { %v1482_v41 = vpop.permute.xlu1 %1481  ;;  %v1430_v44 = vpop.permute.xlu0 %1429 }
 0x4c6   : > { %v1487_v43 = vsel %vm1208_vm3, %v1482_v41, 0 }
 0x4c9   : > { %v1480_v45 = vpop.permute.xlu1 %1479 }
 0x4cb   : > { %v4842_v34 = vpop.eup %4841 }
 0x4cc   : > { %v1326_v35 = vmul.f32 %v4842_v34, %v4838_v25 }
 0x4ce   : > { %v1328_v37 = vpack.c.bf16 %v1326_v35, %v1326_v35 }
 0x4cf   : > { %v4844_v38 = vpop.eup %4843 }
 0x4d0   : > { %4527 = vmatmul.mubr.msk.bf16.vlgmr.msra.gmra.mxu1 %vm1208_vm3, %v1328_v37  ;;  %v1327_v40 = vmul.f32 %v4844_v38, %v4840_v27 }
 0x4d1   : > { %4537 = vmatpush3.bf16.xpose.msra.mxu1 %v1437_v39  ;;  %4538 = vmatprep.mubr.msk.bf16.mxu1 %vm4951_vm2, %v4950_v36 }
 0x4d2   : > { %v1329_v42 = vpack.c.bf16 %v1327_v40, %v1327_v40  ;;  %4548 = vmatprep.subr.bf16.mxu1 %v4950_v36 }
 0x4d4   : > { %4533 = vmatmul.mubr.msk.bf16.vlgmr.msra.gmra.mxu0 %vm1208_vm3, %v1329_v42 }
 0x4d5   : > { %4543 = vmatpush3.bf16.xpose.msra.mxu0 %v1487_v43  ;;  %4544 = vmatprep.mubr.msk.bf16.mxu0 %vm4951_vm2, %v4950_v36 }
 0x4d6   : > { %4554 = vmatprep.subr.bf16.mxu0 %v4950_v36 }
 0x4d8   : > { %4539 = vmatmul.mubr.msk.bf16.vlgmr.msra.gmra.mxu1 %vm1208_vm3, %v1430_v44 }
 0x4d9   : > { %4550 = vmatprep.mubr.msk.bf16.mxu1 %vm4951_vm2, %v4950_v36 }
 0x4dc   : > { %4545 = vmatmul.mubr.msk.bf16.vlgmr.msra.gmra.mxu0 %vm1208_vm3, %v1480_v45 }
 0x4dd   : > { %4556 = vmatprep.mubr.msk.bf16.mxu0 %vm4951_vm2, %v4950_v36 }
 0x590   : > { %v1373_v46 = vpop.f32.mrf.mxu1 }
 0x591   : > { %1427 = vst.msk [vmem:[#allocation2] sm:$0xff] %vm1208_vm3, %v1373_v46 }
 0x592   : > { %v4528_v47 = vpop.f32.mrf.mxu1 }
 0x594   : > { %v1376_v48 = vpop.f32.mrf.mxu1  ;;  %v1421_v49 = vpop.f32.mrf.mxu0 }
 0x595   : > { %1428 = vst.msk [vmem:[#allocation2 + $0x8] sm:$0xff] %vm1208_vm3, %v1421_v49 }
 0x596   : > { %v4529_v50 = vpop.f32.mrf.mxu1  ;;  %v4534_v51 = vpop.f32.mrf.mxu0 }
 0x598   : > { %v1424_v52 = vpop.f32.mrf.mxu0  ;;  %v1473_v55 = vpop.f32.mrf.mxu1 }
 0x599   : > { %v1529_v56 = vmul.f32 0.35355338, %v1473_v55 }
 0x59a   : > { %v4535_v57 = vpop.f32.mrf.mxu0  ;;  %v4540_v58 = vpop.f32.mrf.mxu1 }
 0x59b   : > { %v1531_v59 = vsel %vm1208_vm3, %v1529_v56, -inf }
 0x59c   : > { %1532 = vmax.xlane.f32.xlu0 %v1531_v59  ;;  %v1476_v61 = vpop.f32.mrf.mxu1  ;;  %v1523_v62 = vpop.f32.mrf.mxu0 }
 0x59d   : > { %v1530_v63 = vmul.f32 0.35355338, %v1523_v62 }
 0x59e   : > { %v4541_v1 = vpop.f32.mrf.mxu1  ;;  %v4546_v2 = vpop.f32.mrf.mxu0 }
 0x59f   : > { %v1534_v3 = vsel %vm1208_vm3, %v1530_v63, -inf }
 0x5a0   : > { %1535 = vmax.xlane.f32.xlu1 %v1534_v3  ;;  %v1526_v4 = vpop.f32.mrf.mxu0 }
 0x5a2   : > { %v4547_v5 = vpop.f32.mrf.mxu0 }
 0x5b1   : > { %1603 = vrot.lane.b32.xlu1 %v5221_v0, %s5756_s24 }
 0x5b5   : > { %1664 = vrot.lane.b32.xlu1 %v5217_v60, %s5754_s26 }
 0x5b9   : > { %1714 = vrot.lane.b32.xlu1 %v5221_v0, %s5754_s26  ;;  %s5787_s26 = sld [smem:[#allocation18_spill]] }
 0x5bd   : > { %1712 = vrot.lane.b32.xlu1 %v5221_v0, %s5752_s5 }
 0x625   : > { %v1533_v6 = vpop.xlane.xlu0 %1532 }
 0x626   : > { %v1537_v7 = vsub.f32 %v1529_v56, %v1533_v6 }
 0x628   : > { %v1539_v8 = vmul.f32 1.442695, %v1537_v7 }
 0x629   : > { %v1536_v9 = vpop.xlane.xlu1 %1535 }
 0x62a   : > { %4845 = vpow2.f32 %v1539_v8  ;;  %v1538_v10 = vsub.f32 %v1530_v63, %v1536_v9 }
 0x62c   : > { %v1541_v11 = vmul.f32 1.442695, %v1538_v10 }
 0x62d   : > { %v1604_v12 = vpop.permute.xlu1 %1603 }
 0x62e   : > { %4847 = vpow2.f32 %v1541_v11  ;;  %v1609_v13 = vsel %vm1335_vm4, %v1604_v12, 0 }
 0x62f   : > { %4555 = vmatpush3.bf16.msra.mxu0 %v1609_v13 }
 0x630   : > { %4566 = vmatprep.subr.bf16.mxu0 %v4950_v36 }
 0x631   : > { %v1665_v23 = vpop.permute.xlu1 %1664 }
 0x632   : > { %v1670_v27 = vsel %vm1208_vm3, %v1665_v23, 0 }
 0x635   : > { %v1715_v29 = vpop.permute.xlu1 %1714 }
 0x636   : > { %v1720_v31 = vsel %vm1208_vm3, %v1715_v29, 0 }
 0x637   : > { %v4846_v14 = vpop.eup %4845 }
 0x638   : > { %v1543_v15 = vsel %vm1208_vm3, %v4846_v14, 0.0 }
 0x639   : > { %1544 = vadd.xlane.f32.xlu0 %v1543_v15  ;;  %v1713_v33 = vpop.permute.xlu1 %1712 }
 0x63b   : > { %v4848_v16 = vpop.eup %4847 }
 0x63c   : > { %v1546_v17 = vsel %vm1208_vm3, %v4848_v16, 0.0 }
 0x63d   : > { %1547 = vadd.xlane.f32.xlu0 %v1546_v17 }
 0x653   : > { %1555 = vrot.lane.b32.xlu0 %v5217_v60, %s5756_s24  ;;  %s5468_s24 = scalar_lea.vmem %s5787_s26, %s5139_s3  ;;  %s5793_s26 = smov 104  }
 0x657   : > { %1662 = vrot.lane.b32.xlu0 %v5217_v60, %s5752_s5  ;;  %s5794_s5 = smov 40  }
 0x6c2   : > { %v1545_v18 = vpop.xlane.xlu0 %1544 }
 0x6c3   : > { %4849 = vrcp.f32 %v1545_v18 }
 0x6c6   : > { %v1548_v19 = vpop.xlane.xlu0 %1547 }
 0x6c7   : > { %4851 = vrcp.f32 %v1548_v19 }
 0x6ca   : > { %v1556_v20 = vpop.permute.xlu0 %1555 }
 0x6cb   : > { %v1561_v21 = vsel %vm1335_vm4, %v1556_v20, 0 }
 0x6cc   : > { %4549 = vmatpush3.bf16.msra.mxu1 %v1561_v21 }
 0x6cd   : > { %4560 = vmatprep.subr.bf16.mxu1 %v4950_v36 }
 0x6ce   : > { %v1663_v32 = vpop.permute.xlu0 %1662 }
 0x6d0   : > { %v4850_v22 = vpop.eup %4849 }
 0x6d1   : > { %v1551_v24 = vmul.f32 %v4850_v22, %v4846_v14 }
 0x6d3   : > { %v1553_v25 = vpack.c.bf16 %v1551_v24, %v1551_v24 }
 0x6d4   : > { %v4852_v26 = vpop.eup %4851 }
 0x6d5   : > { %4551 = vmatmul.mubr.msk.bf16.vlgmr.msra.gmra.mxu1 %vm1208_vm3, %v1553_v25  ;;  %v1552_v28 = vmul.f32 %v4852_v26, %v4848_v16 }
 0x6d6   : > { %4561 = vmatpush3.bf16.xpose.msra.mxu1 %v1670_v27  ;;  %4562 = vmatprep.mubr.msk.bf16.mxu1 %vm4951_vm2, %v4950_v36 }
 0x6d7   : > { %v1554_v30 = vpack.c.bf16 %v1552_v28, %v1552_v28  ;;  %4572 = vmatprep.subr.bf16.mxu1 %v4950_v36 }
 0x6d9   : > { %4557 = vmatmul.mubr.msk.bf16.vlgmr.msra.gmra.mxu0 %vm1208_vm3, %v1554_v30 }
 0x6da   : > { %4567 = vmatpush3.bf16.xpose.msra.mxu0 %v1720_v31  ;;  %4568 = vmatprep.mubr.msk.bf16.mxu0 %vm4951_vm2, %v4950_v36 }
 0x6db   : > { %4578 = vmatprep.subr.bf16.mxu0 %v4950_v36 }
 0x6dd   : > { %4563 = vmatmul.mubr.msk.bf16.vlgmr.msra.gmra.mxu1 %vm1208_vm3, %v1663_v32 }
 0x6de   : > { %4574 = vmatprep.mubr.msk.bf16.mxu1 %vm4951_vm2, %v4950_v36 }
 0x6e1   : > { %4569 = vmatmul.mubr.msk.bf16.vlgmr.msra.gmra.mxu0 %vm1208_vm3, %v1713_v33 }
 0x6e2   : > { %4580 = vmatprep.mubr.msk.bf16.mxu0 %vm4951_vm2, %v4950_v36 }
 0x795   : > { %v5311_v34 = vpop.f32.mrf.mxu1 }
 0x797   : > { %v4552_v35 = vpop.f32.mrf.mxu1 }
 0x799   : > { %v1600_v37 = vpop.f32.mrf.mxu1  ;;  %v5313_v38 = vpop.f32.mrf.mxu0 }
 0x79b   : > { %v4553_v39 = vpop.f32.mrf.mxu1  ;;  %v4558_v40 = vpop.f32.mrf.mxu0 }
 0x79d   : > { %v1648_v41 = vpop.f32.mrf.mxu0  ;;  %v1706_v42 = vpop.f32.mrf.mxu1 }
 0x79e   : > { %v1762_v43 = vmul.f32 0.35355338, %v1706_v42 }
 0x79f   : > { %v4559_v44 = vpop.f32.mrf.mxu0  ;;  %v4564_v45 = vpop.f32.mrf.mxu1 }
 0x7a0   : > { %v1764_v46 = vsel %vm1208_vm3, %v1762_v43, -inf }
 0x7a1   : > { %1765 = vmax.xlane.f32.xlu0 %v1764_v46  ;;  %v1709_v47 = vpop.f32.mrf.mxu1  ;;  %v1756_v48 = vpop.f32.mrf.mxu0 }
 0x7a2   : > { %v1763_v49 = vmul.f32 0.35355338, %v1756_v48 }
 0x7a3   : > { %v4565_v50 = vpop.f32.mrf.mxu1  ;;  %v4570_v51 = vpop.f32.mrf.mxu0 }
 0x7a4   : > { %v1767_v52 = vsel %vm1208_vm3, %v1763_v49, -inf }
 0x7a5   : > { %1768 = vmax.xlane.f32.xlu1 %v1767_v52  ;;  %v1759_v55 = vpop.f32.mrf.mxu0 }
 0x7a7   : > { %v4571_v56 = vpop.f32.mrf.mxu0 }
 0x7b6   : > { %1836 = vrot.lane.b32.xlu1 %v5221_v0, %s5750_s14 }
 0x7ba   : > { %1897 = vrot.lane.b32.xlu1 %v5217_v60, %s5748_s0 }
 0x7be   : > { %1947 = vrot.lane.b32.xlu1 %v5221_v0, %s5748_s0  ;;  %s5786_s0 = sld [smem:[#allocation17_spill]] }
 0x7c2   : > { %1945 = vrot.lane.b32.xlu1 %v5221_v0, %s5746_s6 }
 0x82a   : > { %v1766_v57 = vpop.xlane.xlu0 %1765 }
 0x82b   : > { %v1770_v58 = vsub.f32 %v1762_v43, %v1766_v57 }
 0x82d   : > { %v1772_v59 = vmul.f32 1.442695, %v1770_v58 }
 0x82e   : > { %v1769_v61 = vpop.xlane.xlu1 %1768 }
 0x82f   : > { %4853 = vpow2.f32 %v1772_v59  ;;  %v1771_v62 = vsub.f32 %v1763_v49, %v1769_v61 }
 0x831   : > { %v1774_v63 = vmul.f32 1.442695, %v1771_v62 }
 0x832   : > { %v1837_v1 = vpop.permute.xlu1 %1836 }
 0x833   : > { %4855 = vpow2.f32 %v1774_v63  ;;  %v1842_v2 = vsel %vm1335_vm4, %v1837_v1, 0 }
 0x834   : > { %4579 = vmatpush3.bf16.msra.mxu0 %v1842_v2 }
 0x835   : > { %4590 = vmatprep.subr.bf16.mxu0 %v4950_v36 }
 0x836   : > { %v1898_v12 = vpop.permute.xlu1 %1897 }
 0x837   : > { %v1903_v16 = vsel %vm1208_vm3, %v1898_v12, 0 }
 0x83a   : > { %v1948_v18 = vpop.permute.xlu1 %1947 }
 0x83b   : > { %v1953_v20 = vsel %vm1208_vm3, %v1948_v18, 0 }
 0x83c   : > { %v4854_v3 = vpop.eup %4853 }
 0x83d   : > { %v1776_v4 = vsel %vm1208_vm3, %v4854_v3, 0.0 }
 0x83e   : > { %1777 = vadd.xlane.f32.xlu0 %v1776_v4  ;;  %v1946_v22 = vpop.permute.xlu1 %1945 }
 0x840   : > { %v4856_v5 = vpop.eup %4855 }
 0x841   : > { %v1779_v6 = vsel %vm1208_vm3, %v4856_v5, 0.0 }
 0x842   : > { %1780 = vadd.xlane.f32.xlu0 %v1779_v6 }
 0x858   : > { %1788 = vrot.lane.b32.xlu0 %v5217_v60, %s5750_s14  ;;  %s5461_s14 = scalar_lea.vmem %s5786_s0, %s5139_s3  ;;  %s5795_s0 = smov 8  }
 0x85c   : > { %1895 = vrot.lane.b32.xlu0 %v5217_v60, %s5746_s6  ;;  %s5418_s6 = scalar_lea.vmem %s5723_s11, %s5139_s3 }
 0x8c7   : > { %v1778_v7 = vpop.xlane.xlu0 %1777 }
 0x8c8   : > { %4857 = vrcp.f32 %v1778_v7 }
 0x8cb   : > { %v1781_v8 = vpop.xlane.xlu0 %1780 }
 0x8cc   : > { %4859 = vrcp.f32 %v1781_v8  ;;  %v4811_v8 = vld [vmem:[%s5183_s25 + $0x8] sm:$0xff]  }
 0x8cf   : > { %v1789_v9 = vpop.permute.xlu0 %1788 }
 0x8d0   : > { %v1794_v10 = vsel %vm1335_vm4, %v1789_v9, 0  ;;  %v4812_v9 = vld [vmem:[%s5183_s25] sm:$0xff]  }
 0x8d1   : > { %4573 = vmatpush3.bf16.msra.mxu1 %v1794_v10 }
 0x8d2   : > { %4584 = vmatprep.subr.bf16.mxu1 %v4950_v36 }
 0x8d3   : > { %v1896_v21 = vpop.permute.xlu0 %1895 }
 0x8d5   : > { %v4858_v11 = vpop.eup %4857 }
 0x8d6   : > { %v1784_v13 = vmul.f32 %v4858_v11, %v4854_v3 }
 0x8d8   : > { %v1786_v14 = vpack.c.bf16 %v1784_v13, %v1784_v13 }
 0x8d9   : > { %v4860_v15 = vpop.eup %4859 }
 0x8da   : > { %4575 = vmatmul.mubr.msk.bf16.vlgmr.msra.gmra.mxu1 %vm1208_vm3, %v1786_v14  ;;  %v1785_v17 = vmul.f32 %v4860_v15, %v4856_v5 }
 0x8db   : > { %4585 = vmatpush3.bf16.xpose.msra.mxu1 %v1903_v16  ;;  %4586 = vmatprep.mubr.msk.bf16.mxu1 %vm4951_vm2, %v4950_v36 }
 0x8dc   : > { %v1787_v19 = vpack.c.bf16 %v1785_v17, %v1785_v17  ;;  %4596 = vmatprep.subr.bf16.mxu1 %v4950_v36 }
 0x8de   : > { %4581 = vmatmul.mubr.msk.bf16.vlgmr.msra.gmra.mxu0 %vm1208_vm3, %v1787_v19 }
 0x8df   : > { %4591 = vmatpush3.bf16.xpose.msra.mxu0 %v1953_v20  ;;  %4592 = vmatprep.mubr.msk.bf16.mxu0 %vm4951_vm2, %v4950_v36 }
 0x8e0   : > { %4602 = vmatprep.subr.bf16.mxu0 %v4950_v36 }
 0x8e2   : > { %4587 = vmatmul.mubr.msk.bf16.vlgmr.msra.gmra.mxu1 %vm1208_vm3, %v1896_v21 }
 0x8e3   : > { %4598 = vmatprep.mubr.msk.bf16.mxu1 %vm4951_vm2, %v4950_v36 }
 0x8e6   : > { %4593 = vmatmul.mubr.msk.bf16.vlgmr.msra.gmra.mxu0 %vm1208_vm3, %v1946_v22 }
 0x8e7   : > { %4604 = vmatprep.mubr.msk.bf16.mxu0 %vm4951_vm2, %v4950_v36 }
 0x99a   : > { %v1830_v23 = vpop.f32.mrf.mxu1 }
 0x99c   : > { %v4576_v24 = vpop.f32.mrf.mxu1 }
 0x99e   : > { %v1833_v25 = vpop.f32.mrf.mxu1  ;;  %v1878_v26 = vpop.f32.mrf.mxu0 }
 0x9a0   : > { %v4577_v27 = vpop.f32.mrf.mxu1  ;;  %v4582_v28 = vpop.f32.mrf.mxu0 }
 0x9a2   : > { %v1881_v29 = vpop.f32.mrf.mxu0  ;;  %v1939_v30 = vpop.f32.mrf.mxu1 }
 0x9a3   : > { %v1995_v31 = vmul.f32 0.35355338, %v1939_v30 }
 0x9a4   : > { %v4583_v32 = vpop.f32.mrf.mxu0  ;;  %v4588_v33 = vpop.f32.mrf.mxu1 }
 0x9a5   : > { %v1997_v35 = vsel %vm1208_vm3, %v1995_v31, -inf }
 0x9a6   : > { %1998 = vmax.xlane.f32.xlu0 %v1997_v35  ;;  %v1942_v37 = vpop.f32.mrf.mxu1  ;;  %v1989_v39 = vpop.f32.mrf.mxu0 }
 0x9a7   : > { %v1996_v40 = vmul.f32 0.35355338, %v1989_v39 }
 0x9a8   : > { %v4589_v41 = vpop.f32.mrf.mxu1  ;;  %v4594_v42 = vpop.f32.mrf.mxu0 }
 0x9a9   : > { %v2000_v43 = vsel %vm1208_vm3, %v1996_v40, -inf }
 0x9aa   : > { %2001 = vmax.xlane.f32.xlu1 %v2000_v43  ;;  %v1992_v44 = vpop.f32.mrf.mxu0 }
 0x9ac   : > { %v4595_v45 = vpop.f32.mrf.mxu0 }
 0x9bb   : > { %2069 = vrot.lane.b32.xlu1 %v5221_v0, %s5744_s21 }
 0x9bf   : > { %1653 = vrot.lane.b32.xlu1 %v5311_v34, %s5742_s22 }
 0x9c3   : > { %1655 = vrot.lane.b32.xlu1 %v5313_v38, %s5742_s22  ;;  %s5446_s22 = scalar_lea.vmem %s5727_s15, %s5139_s3 }
 0x9c7   : > { %1888 = vrot.lane.b32.xlu1 %v1878_v26, %s5740_s19 }
 0xa2f   : > { %v1999_v46 = vpop.xlane.xlu0 %1998 }
 0xa30   : > { %v2003_v47 = vsub.f32 %v1995_v31, %v1999_v46  ;;  %v4814_v46 = vld [vmem:[%s5188_s27] sm:$0xff]  }
 0xa32   : > { %v2005_v48 = vmul.f32 1.442695, %v2003_v47 }
 0xa33   : > { %v2002_v49 = vpop.xlane.xlu1 %2001 }
 0xa34   : > { %4861 = vpow2.f32 %v2005_v48  ;;  %v2004_v50 = vsub.f32 %v1996_v40, %v2002_v49 }
 0xa36   : > { %v2007_v51 = vmul.f32 1.442695, %v2004_v50 }
 0xa37   : > { %v2070_v52 = vpop.permute.xlu1 %2069 }
 0xa38   : > { %4863 = vpow2.f32 %v2007_v51  ;;  %v2075_v0 = vsel %vm1335_vm4, %v2070_v52, 0 }
 0xa39   : > { %4603 = vmatpush3.bf16.msra.mxu0 %v2075_v0 }
 0xa3a   : > { %4616 = vmatprep.subr.bf16.mxu0 %v4950_v36 }
 0xa3b   : > { %v1654_v34 = vpop.permute.xlu1 %1653 }
 0xa3c   : > { %1660 = vst.msk [vmem:[#allocation2] sm:$0xff] %vm1659_vm5, %v1654_v34 }
 0xa3f   : > { %v1656_v38 = vpop.permute.xlu1 %1655 }
 0xa40   : > { %1661 = vst.msk [vmem:[#allocation2 + $0x8] sm:$0xff] %vm1659_vm5, %v1656_v38 }
 0xa41   : > { %v4862_v55 = vpop.eup %4861 }
 0xa42   : > { %v2009_v56 = vsel %vm1208_vm3, %v4862_v55, 0.0 }
 0xa43   : > { %2010 = vadd.xlane.f32.xlu0 %v2009_v56  ;;  %v1889_v57 = vpop.permute.xlu1 %1888 }
 0xa44   : > { %1894 = vst.msk [vmem:[#allocation2 + $0x8] sm:$0xff] %vm1892_vm6, %v1889_v57 }
 0xa45   : > { %v4864_v58 = vpop.eup %4863 }
 0xa46   : > { %v2012_v59 = vsel %vm1208_vm3, %v4864_v58, 0.0 }
 0xa47   : > { %2013 = vadd.xlane.f32.xlu0 %v2012_v59 }
 0xa5d   : > { %2021 = vrot.lane.b32.xlu0 %v5217_v60, %s5744_s21  ;;  %s5797_s21 = smov 24  }
 0xa61   : > { %1886 = vrot.lane.b32.xlu0 %v1830_v23, %s5740_s19  ;;  %s5411_s19 = scalar_lea.vmem %s5722_s10, %s5139_s3 }
 0xa62   : > { %v4308_v38 = vld [vmem:[%s5411_s19] ss:$0 sm:$0xff] }
 0xacc   : > { %v2011_v61 = vpop.xlane.xlu0 %2010 }
 0xacd   : > { %4865 = vrcp.f32 %v2011_v61 }
 0xad0   : > { %v2014_v62 = vpop.xlane.xlu0 %2013 }
 0xad1   : > { %4867 = vrcp.f32 %v2014_v62 }
 0xad4   : > { %v2022_v63 = vpop.permute.xlu0 %2021 }
 0xad5   : > { %v2027_v1 = vsel %vm1335_vm4, %v2022_v63, 0 }
 0xad6   : > { %4597 = vmatpush3.bf16.msra.mxu1 %v2027_v1  ;;  %v4815_v1 = vld [vmem:[%s5103_s28 + $0x18] sm:$0xff]  }
 0xad7   : > { %4608 = vmatprep.subr.bf16.mxu1 %v4950_v36 }
 0xad8   : > { %v1887_v2 = vpop.permute.xlu0 %1886 }
 0xad9   : > { %1893 = vst.msk [vmem:[#allocation2] sm:$0xff] %vm1892_vm6, %v1887_v2  ;;  %v4816_v2 = vld [vmem:[%s5103_s28 + $0x10] sm:$0xff]  }
 0xada   : > { %v4866_v3 = vpop.eup %4865 }
 0xadb   : > { %v2017_v4 = vmul.f32 %v4866_v3, %v4862_v55  ;;  %v4817_v3 = vld [vmem:[%s5103_s28 + $0x8] sm:$0xff]  }
 0xadd   : > { %v2019_v60 = vpack.c.bf16 %v2017_v4, %v2017_v4  ;;  %v4818_v4 = vld [vmem:[%s5103_s28] sm:$0xff]  }
 0xade   : > { %v4868_v5 = vpop.eup %4867 }
 0xadf   : > { %4599 = vmatmul.mubr.msk.bf16.vlgmr.msra.gmra.mxu1 %vm1208_vm3, %v2019_v60  ;;  %v2018_v6 = vmul.f32 %v4868_v5, %v4864_v58  ;;  %v4309_v58 = vld [vmem:[%s5418_s6] ss:$0 sm:$0xff] }
 0xae0   : > { %4612 = vmatprep.mubr.msk.bf16.mxu1 %vm4951_vm2, %v4950_v36  ;;  %4609 = vmatpush3.bf16.msra.mxu1 %v4811_v8  ;;  %v4310_v60 = vld [vmem:[%s5436_s29] ss:$0 sm:$0xff] }
 0xae1   : > { %v2020_v7 = vpack.c.bf16 %v2018_v6, %v2018_v6  ;;  %4610 = vmatprep.subr.bf16.mxu1 %v4950_v36 }
 0xae3   : > { %4605 = vmatmul.mubr.msk.bf16.vlgmr.msra.gmra.mxu0 %vm1208_vm3, %v2020_v7 }
 0xae4   : > { %4620 = vmatprep.mubr.msk.bf16.mxu0 %vm4951_vm2, %v4950_v36  ;;  %4611 = vmatpush3.bf16.msra.mxu1 %v4812_v9 }
 0xae5   : > { %4624 = vmatprep.subr.bf16.mxu1 %v4950_v36 }
 0xb9f   : > { %v2063_v10 = vpop.f32.mrf.mxu1 }
 0xba0   : > { %2119 = vrot.lane.b32.xlu0 %v2063_v10, %s5738_s18 }
 0xba1   : > { %v4600_v11 = vpop.f32.mrf.mxu1 }
 0xba3   : > { %v2066_v12 = vpop.f32.mrf.mxu1  ;;  %v2111_v13 = vpop.f32.mrf.mxu0 }
 0xba4   : > { %2121 = vrot.lane.b32.xlu1 %v2111_v13, %s5738_s18  ;;  %s5394_s18 = scalar_lea.vmem %s5721_s9, %s5139_s3 }
 0xba5   : > { %v4601_v14 = vpop.f32.mrf.mxu1  ;;  %v4606_v15 = vpop.f32.mrf.mxu0  ;;  %v4304_v23 = vld [vmem:[%s5394_s18] ss:$0 sm:$0xff] }
 0xba7   : > { %v2114_v16 = vpop.f32.mrf.mxu0 }
 0xba9   : > { %v4607_v17 = vpop.f32.mrf.mxu0 }
 0xc12   : > { %v2120_v18 = vpop.permute.xlu0 %2119 }
 0xc13   : > { %2126 = vst.msk [vmem:[#allocation2] sm:$0xff] %vm2125_vm7, %v2120_v18 }
 0xc16   : > { %v2122_v19 = vpop.permute.xlu1 %2121 }
 0xc17   : > { %2127 = vst.msk [vmem:[#allocation2 + $0x8] sm:$0xff] %vm2125_vm7, %v2122_v19 }
 0xc1a   : > { %v2128_v20 = vld [vmem:[#allocation2] sm:$0xff] }
 0xc1e   : > { %v2129_v21 = vld [vmem:[#allocation2 + $0x8] sm:$0xff] }
 0xc1f   : > { %v2134_v22 = vpack.c.bf16 %v2129_v21, %v2128_v20 }
 0xc21   : > { %4613 = vmatmul.mubr.msk.bf16.vlgmr.msra.gmra.mxu1 %vm1091_vm1, %v2134_v22 }
 0xc22   : > { %4632 = vmatprep.mubr.msk.bf16.mxu1 %vm4951_vm2, %v4950_v36  ;;  %4625 = vmatpush3.bf16.msra.mxu1 %v4815_v1 }
 0xc23   : > { %4626 = vmatprep.subr.bf16.mxu1 %v4950_v36 }
 0xc26   : > { %4627 = vmatpush3.bf16.msra.mxu1 %v4816_v2 }
 0xc27   : > { %4628 = vmatprep.subr.bf16.mxu1 %v4950_v36 }
 0xc2a   : > { %4629 = vmatpush3.bf16.msra.mxu1 %v4817_v3  ;;  %v4321_v3 = vld [vmem:[%s5468_s24] ss:$0 sm:$0xff] }
 0xc2b   : > { %4630 = vmatprep.subr.bf16.mxu1 %v4950_v36 }
 0xc2e   : > { %4631 = vmatpush3.bf16.msra.mxu1 %v4818_v4 }
 0xc2f   : > { %4650 = vmatprep.subr.bf16.mxu1 %v4950_v36 }
 0xce1   : > { %v2191_v24 = vpop.f32.mrf.mxu1 }
 0xce2   : > { %v2192_v25 = vadd.f32 %v4304_v23, %v2191_v24 }
 0xce3   : > { %v4614_v26 = vpop.f32.mrf.mxu1 }
 0xce4   : > { %v2198_v27 = vadd.f32 %v2192_v25, %v5201_v53 }
 0xce5   : > { %v2194_v28 = vpop.f32.mrf.mxu1 }
 0xce6   : > { %v2195_v29 = vadd.f32 %v4304_v23, %v2194_v28  ;;  %v2202_v30 = vsel %vm1091_vm1, %v2198_v27, 0.0 }
 0xce7   : > { %2203 = vadd.xlane.f32.xlu0 %v2202_v30  ;;  %v4615_v31 = vpop.f32.mrf.mxu1  ;;  %v4314_v30 = vld [vmem:[%s5446_s22] ss:$0 sm:$0xff] }
 0xce8   : > { %v2199_v32 = vadd.f32 %v2195_v29, %v5203_v54  ;;  %v4813_v54 = vld [vmem:[%s5188_s27 + $0x8] sm:$0xff]  }
 0xce9   : > { %4617 = vmatpush3.bf16.msra.mxu0 %v4813_v54 }
 0xcea   : > { %v2205_v33 = vsel %vm1091_vm1, %v2199_v32, 0.0  ;;  %4618 = vmatprep.subr.bf16.mxu0 %v4950_v36 }
 0xceb   : > { %2206 = vadd.xlane.f32.xlu1 %v2205_v33 }
 0xced   : > { %4619 = vmatpush3.bf16.msra.mxu0 %v4814_v46 }
 0xcee   : > { %4636 = vmatprep.subr.bf16.mxu0 %v4950_v36 }
 0xd70   : > { %v2204_v35 = vpop.xlane.xlu0 %2203 }
 0xd71   : > { %v2208_v37 = vmul.f32 0.03125, %v2204_v35 }
 0xd73   : > { %v2210_v39 = vsub.f32 %v2198_v27, %v2208_v37 }
 0xd74   : > { %v2207_v40 = vpop.xlane.xlu1 %2206 }
 0xd75   : > { %v2209_v41 = vmul.f32 0.03125, %v2207_v40  ;;  %v2212_v42 = vmul.f32 %v2210_v39, %v2210_v39 }
 0xd77   : > { %v2211_v53 = vsub.f32 %v2199_v32, %v2209_v41  ;;  %v2214_v43 = vsel %vm1091_vm1, %v2212_v42, 0.0 }
 0xd78   : > { %2215 = vadd.xlane.f32.xlu0 %v2214_v43 }
 0xd79   : > { %v2213_v44 = vmul.f32 %v2211_v53, %v2211_v53 }
 0xd7b   : > { %v2217_v45 = vsel %vm1091_vm1, %v2213_v44, 0.0 }
 0xd7c   : > { %2218 = vadd.xlane.f32.xlu0 %v2217_v45 }
 0xe01   : > { %v2216_v47 = vpop.xlane.xlu0 %2215 }
 0xe02   : > { %v2220_v48 = vmul.f32 0.03125, %v2216_v47 }
 0xe04   : > { %v2222_v49 = vadd.f32 1e-12, %v2220_v48 }
 0xe05   : > { %v2219_v50 = vpop.xlane.xlu0 %2218 }
 0xe06   : > { %4869 = vrsqrt.f32 %v2222_v49  ;;  %v2221_v51 = vmul.f32 0.03125, %v2219_v50 }
 0xe08   : > { %v2223_v52 = vadd.f32 1e-12, %v2221_v51 }
 0xe0a   : > { %4871 = vrsqrt.f32 %v2223_v52  ;;  %v4819_v52 = vld [vmem:[%s5172_s4 + $0x18] sm:$0xff]  }
 0xe13   : > { %v4870_v0 = vpop.eup %4869 }
 0xe14   : > { %v2226_v34 = vmul.f32 %v4870_v0, %v2210_v39  ;;  %v4820_v0 = vld [vmem:[%s5172_s4 + $0x10] sm:$0xff]  }
 0xe16   : > { %v2234_v57 = vmul.f32 %v4308_v38, %v2226_v34 }
 0xe17   : > { %v4872_v55 = vpop.eup %4871 }
 0xe18   : > { %v2227_v56 = vmul.f32 %v4872_v55, %v2211_v53  ;;  %v2242_v61 = vadd.f32 %v4309_v58, %v2234_v57 }
 0xe1a   : > { %v2235_v59 = vmul.f32 %v4308_v38, %v2227_v56 }
 0xe1c   : > { %v2243_v62 = vadd.f32 %v4309_v58, %v2235_v59 }
 0xe1e   : > { %v2248_v63 = vpack.c.bf16 %v2243_v62, %v2242_v61 }
 0xe20   : > { %4621 = vmatmul.mubr.msk.bf16.vlgmr.msra.gmra.mxu0 %vm1091_vm1, %v2248_v63 }
 0xe21   : > { %4640 = vmatprep.mubr.msk.bf16.mxu0 %vm4951_vm2, %v4950_v36  ;;  %4637 = vmatpush3.bf16.msra.mxu0 %v4819_v52 }
 0xe22   : > { %4638 = vmatprep.subr.bf16.mxu0 %v4950_v36 }
 0xe25   : > { %4639 = vmatpush3.bf16.msra.mxu0 %v4820_v0 }
 0xe26   : > { %4644 = vmatprep.subr.bf16.mxu0 %v4950_v36 }
 0xee0   : > { %v2305_v5 = vpop.f32.mrf.mxu0 }
 0xee1   : > { %v2306_v6 = vadd.f32 %v4310_v60, %v2305_v5 }
 0xee2   : > { %v4622_v7 = vpop.f32.mrf.mxu0 }
 0xee3   : > { %v2314_v8 = vmul.f32 0.044715, %v2306_v6  ;;  %v2312_v24 = vmul.f32 0.5, %v2306_v6  ;;  %v4327_v7 = vld [vmem:[%s5214_s20 + $0x1] ss:$0 sm:$0xff]  ;;  %s5788_s20 = smov 56  }
 0xee4   : > { %v2308_v9 = vpop.f32.mrf.mxu0 }
 0xee5   : > { %v2316_v10 = vmul.f32 %v2314_v8, %v2306_v6  ;;  %v2309_v11 = vadd.f32 %v4310_v60, %v2308_v9 }
 0xee6   : > { %v4623_v12 = vpop.f32.mrf.mxu0 }
 0xee7   : > { %v2318_v13 = vmul.f32 %v2316_v10, %v2306_v6  ;;  %v2315_v14 = vmul.f32 0.044715, %v2309_v11  ;;  %v2313_v25 = vmul.f32 0.5, %v2309_v11 }
 0xee9   : > { %v2320_v15 = vadd.f32 %v2318_v13, %v2306_v6  ;;  %v2317_v16 = vmul.f32 %v2315_v14, %v2309_v11 }
 0xeeb   : > { %v2322_v17 = vmul.f32 0.7978846, %v2320_v15  ;;  %v2319_v18 = vmul.f32 %v2317_v16, %v2309_v11 }
 0xeed   : > { %4873 = vtanh.f32 %v2322_v17  ;;  %v2321_v19 = vadd.f32 %v2319_v18, %v2309_v11 }
 0xeef   : > { %v2323_v20 = vmul.f32 0.7978846, %v2321_v19 }
 0xef1   : > { %4875 = vtanh.f32 %v2323_v20 }
 0xefa   : > { %v4874_v21 = vpop.eup %4873 }
 0xefb   : > { %v2326_v22 = vadd.f32 1.0, %v4874_v21 }
 0xefd   : > { %v2328_v27 = vmul.f32 %v2326_v22, %v2312_v24 }
 0xefe   : > { %v4876_v23 = vpop.eup %4875 }
 0xeff   : > { %v2327_v26 = vadd.f32 1.0, %v4876_v23 }
 0xf01   : > { %v2329_v28 = vmul.f32 %v2327_v26, %v2313_v25 }
 0xf03   : > { %v2338_v29 = vpack.c.bf16 %v2329_v28, %v2328_v27 }
 0xf05   : > { %4633 = vmatmul.mubr.msk.bf16.vlgmr.msra.gmra.mxu1 %vm2370_vm8, %v2338_v29 }
 0xf06   : > { %4652 = vmatprep.mubr.msk.bf16.mxu1 %vm4951_vm2, %v4950_v36 }
 0xfc5   : > { %v2408_v31 = vpop.f32.mrf.mxu1 }
 0xfc6   : > { %v2409_v32 = vadd.f32 %v4314_v30, %v2408_v31 }
 0xfc7   : > { %v4634_v33 = vpop.f32.mrf.mxu1 }
 0xfc8   : > { %v2415_v35 = vadd.f32 %v2409_v32, %v2242_v61 }
 0xfc9   : > { %v2411_v37 = vpop.f32.mrf.mxu1 }
 0xfca   : > { %v2412_v39 = vadd.f32 %v4314_v30, %v2411_v37  ;;  %v2419_v40 = vsel %vm1091_vm1, %v2415_v35, 0.0 }
 0xfcb   : > { %2420 = vadd.xlane.f32.xlu0 %v2419_v40  ;;  %v4635_v41 = vpop.f32.mrf.mxu1 }
 0xfcc   : > { %v2416_v42 = vadd.f32 %v2412_v39, %v2243_v62  ;;  %v4320_v62 = vld [vmem:[%s5461_s14] ss:$0 sm:$0xff] }
 0xfce   : > { %v2422_v53 = vsel %vm1091_vm1, %v2416_v42, 0.0 }
 0xfcf   : > { %2423 = vadd.xlane.f32.xlu1 %v2422_v53 }
0x1054   : > { %v2421_v43 = vpop.xlane.xlu0 %2420 }
0x1055   : > { %v2425_v44 = vmul.f32 0.03125, %v2421_v43 }
0x1057   : > { %v2427_v45 = vsub.f32 %v2415_v35, %v2425_v44 }
0x1058   : > { %v2424_v54 = vpop.xlane.xlu1 %2423 }
0x1059   : > { %v2426_v46 = vmul.f32 0.03125, %v2424_v54  ;;  %v2429_v47 = vmul.f32 %v2427_v45, %v2427_v45 }
0x105b   : > { %v2428_v48 = vsub.f32 %v2416_v42, %v2426_v46  ;;  %v2431_v49 = vsel %vm1091_vm1, %v2429_v47, 0.0 }
0x105c   : > { %2432 = vadd.xlane.f32.xlu0 %v2431_v49 }
0x105d   : > { %v2430_v50 = vmul.f32 %v2428_v48, %v2428_v48 }
0x105f   : > { %v2434_v51 = vsel %vm1091_vm1, %v2430_v50, 0.0 }
0x1060   : > { %2435 = vadd.xlane.f32.xlu1 %v2434_v51 }
0x10e5   : > { %v2433_v34 = vpop.xlane.xlu0 %2432 }
0x10e6   : > { %v2437_v38 = vmul.f32 0.03125, %v2433_v34 }
0x10e8   : > { %v2439_v55 = vadd.f32 1e-12, %v2437_v38 }
0x10e9   : > { %v2436_v56 = vpop.xlane.xlu1 %2435 }
0x10ea   : > { %4877 = vrsqrt.f32 %v2439_v55  ;;  %v2438_v57 = vmul.f32 0.03125, %v2436_v56 }
0x10ec   : > { %v2440_v58 = vadd.f32 1e-12, %v2438_v57 }
0x10ee   : > { %4879 = vrsqrt.f32 %v2440_v58 }
0x10f7   : > { %v4878_v59 = vpop.eup %4877 }
0x10f8   : > { %v2443_v61 = vmul.f32 %v4878_v59, %v2427_v45 }
0x10fa   : > { %v2451_v2 = vmul.f32 %v4320_v62, %v2443_v61 }
0x10fb   : > { %v4880_v63 = vpop.eup %4879 }
0x10fc   : > { %v2444_v1 = vmul.f32 %v4880_v63, %v2428_v48  ;;  %v5471_v60 = vadd.f32 %v4321_v3, %v2451_v2 }
0x10fe   : > { %v2452_v4 = vmul.f32 %v4320_v62, %v2444_v1 }
0x1100   : > { %v5473_v5 = vadd.f32 %v4321_v3, %v2452_v4 }
0x1102   : > { %v2466_v6 = vpack.c.bf16 %v5473_v5, %v5471_v60 }
0x1104   : > { %4641 = vmatmul.mubr.msk.bf16.vlgmr.msra.gmra.mxu0 %vm1091_vm1, %v2466_v6 }
0x1105   : > { %4646 = vmatprep.mubr.msk.bf16.mxu0 %vm4951_vm2, %v4950_v36 }
0x11c4   : > { %v2524_v8 = vpop.f32.mrf.mxu0 }
0x11c5   : > { %v2525_v9 = vadd.f32 %v4327_v7, %v2524_v8 }
0x11c6   : > { %v4642_v10 = vpop.f32.mrf.mxu0 }
0x11c7   : > { %v5481_v11 = vpack.c.bf16 %v2525_v9, %v2525_v9 }
0x11c8   : > { %v2527_v12 = vpop.f32.mrf.mxu0 }
0x11c9   : > { %v2528_v13 = vadd.f32 %v4327_v7, %v2527_v12  ;;  %2534 = vrot.lane.b32.xlu0 %v5481_v11, %s4952_s2 }
0x11ca   : > { %v4643_v14 = vpop.f32.mrf.mxu0 }
0x11cb   : > { %v5485_v15 = vpack.c.bf16 %v2528_v13, %v2528_v13 }
0x11cd   : > { %2583 = vrot.lane.b32.xlu1 %v5485_v15, %s4952_s2  ;;  %s5789_s2 = smov 80  }
0x123b   : > { %v2535_v16 = vpop.permute.xlu0 %2534 }
0x123c   : > { %v2540_v17 = vsel %vm1208_vm3, %v2535_v16, 0 }
0x123d   : > { %4645 = vmatpush3.bf16.xpose.msra.mxu0 %v2540_v17 }
0x123e   : > { %4656 = vmatprep.subr.bf16.mxu0 %v4950_v36 }
0x123f   : > { %v2584_v18 = vpop.permute.xlu1 %2583 }
0x1240   : > { %v2589_v19 = vsel %vm1208_vm3, %v2584_v18, 0 }
0x1241   : > { %4651 = vmatpush3.bf16.xpose.msra.mxu1 %v2589_v19 }
0x1242   : > { %4662 = vmatprep.subr.bf16.mxu1 %v4950_v36 }
0x1244   : > { %4647 = vmatmul.mubr.msk.bf16.vlgmr.msra.gmra.mxu0 %vm1208_vm3, %v5481_v11 }
0x1245   : > { %4658 = vmatprep.mubr.msk.bf16.mxu0 %vm4951_vm2, %v4950_v36 }
0x1248   : > { %4653 = vmatmul.mubr.msk.bf16.vlgmr.msra.gmra.mxu1 %vm1208_vm3, %v5485_v15 }
0x1249   : > { %4664 = vmatprep.mubr.msk.bf16.mxu1 %vm4951_vm2, %v4950_v36 }
0x1304   : > { %v2576_v20 = vpop.f32.mrf.mxu0 }
0x1305   : > { %v2631_v21 = vmul.f32 0.35355338, %v2576_v20 }
0x1306   : > { %v4648_v22 = vpop.f32.mrf.mxu0 }
0x1307   : > { %v2633_v23 = vsel %vm1208_vm3, %v2631_v21, -inf }
0x1308   : > { %v2625_v24 = vpop.f32.mrf.mxu1  ;;  %2634 = vmax.xlane.f32.xlu1 %v2633_v23  ;;  %v2579_v25 = vpop.f32.mrf.mxu0 }
0x1309   : > { %v2632_v26 = vmul.f32 0.35355338, %v2625_v24 }
0x130a   : > { %v4649_v27 = vpop.f32.mrf.mxu0  ;;  %v4654_v28 = vpop.f32.mrf.mxu1 }
0x130b   : > { %v2636_v29 = vsel %vm1208_vm3, %v2632_v26, -inf }
0x130c   : > { %2637 = vmax.xlane.f32.xlu0 %v2636_v29  ;;  %v2628_v30 = vpop.f32.mrf.mxu1 }
0x130e   : > { %v4655_v31 = vpop.f32.mrf.mxu1 }
0x1319   : > { %2705 = vrot.lane.b32.xlu1 %v5485_v15, %s4953_s1 }
0x131d   : > { %2757 = vrot.lane.b32.xlu1 %v5481_v11, %s4954_s16 }
0x1391   : > { %v2635_v32 = vpop.xlane.xlu1 %2634 }
0x1392   : > { %v2639_v33 = vsub.f32 %v2631_v21, %v2635_v32 }
0x1394   : > { %v2641_v35 = vmul.f32 1.442695, %v2639_v33 }
0x1395   : > { %v2638_v37 = vpop.xlane.xlu0 %2637  ;;  %v2706_v39 = vpop.permute.xlu1 %2705 }
0x1396   : > { %4881 = vpow2.f32 %v2641_v35  ;;  %v2640_v40 = vsub.f32 %v2632_v26, %v2638_v37  ;;  %v2711_v41 = vsel %vm1335_vm4, %v2706_v39, 0 }
0x1397   : > { %4663 = vmatpush3.bf16.msra.mxu1 %v2711_v41 }
0x1398   : > { %v2643_v42 = vmul.f32 1.442695, %v2640_v40  ;;  %4674 = vmatprep.subr.bf16.mxu1 %v4950_v36 }
0x1399   : > { %v2758_v54 = vpop.permute.xlu1 %2757 }
0x139a   : > { %4883 = vpow2.f32 %v2643_v42  ;;  %v2763_v34 = vsel %vm1208_vm3, %v2758_v54, 0 }
0x13a3   : > { %v4882_v53 = vpop.eup %4881 }
0x13a4   : > { %v2645_v43 = vsel %vm1208_vm3, %v4882_v53, 0.0 }
0x13a5   : > { %2646 = vadd.xlane.f32.xlu0 %v2645_v43 }
0x13a7   : > { %v4884_v44 = vpop.eup %4883 }
0x13a8   : > { %v2648_v45 = vsel %vm1208_vm3, %v4884_v44, 0.0 }
0x13a9   : > { %2649 = vadd.xlane.f32.xlu1 %v2648_v45 }
0x13ba   : > { %2807 = vrot.lane.b32.xlu1 %v5485_v15, %s4954_s16  ;;  %s5791_s16 = smov 48  }
0x13bb   : > { %2657 = vrot.lane.b32.xlu0 %v5481_v11, %s4953_s1  ;;  %s5790_s1 = smov 112  }
0x13be   : > { %2805 = vrot.lane.b32.xlu1 %v5485_v15, %s4955_s30 }
0x13bf   : > { %2755 = vrot.lane.b32.xlu0 %v5481_v11, %s4955_s30  ;;  %s5792_s30 = smov 72  }
0x142e   : > { %v2647_v46 = vpop.xlane.xlu0 %2646 }
0x142f   : > { %4885 = vrcp.f32 %v2647_v46 }
0x1432   : > { %v2658_v47 = vpop.permute.xlu0 %2657  ;;  %v2650_v48 = vpop.xlane.xlu1 %2649 }
0x1433   : > { %v2663_v49 = vsel %vm1335_vm4, %v2658_v47, 0  ;;  %4887 = vrcp.f32 %v2650_v48 }
0x1434   : > { %4657 = vmatpush3.bf16.msra.mxu0 %v2663_v49 }
0x1435   : > { %4668 = vmatprep.subr.bf16.mxu0 %v4950_v36 }
0x1436   : > { %v2808_v55 = vpop.permute.xlu1 %2807  ;;  %v2756_v58 = vpop.permute.xlu0 %2755 }
0x1437   : > { %v2813_v57 = vsel %vm1208_vm3, %v2808_v55, 0 }
0x143a   : > { %v2806_v59 = vpop.permute.xlu1 %2805 }
0x143c   : > { %v4886_v50 = vpop.eup %4885 }
0x143d   : > { %v2653_v51 = vmul.f32 %v4886_v50, %v4882_v53 }
0x143f   : > { %v2655_v52 = vpack.c.bf16 %v2653_v51, %v2653_v51 }
0x1440   : > { %v4888_v0 = vpop.eup %4887 }
0x1441   : > { %4659 = vmatmul.mubr.msk.bf16.vlgmr.msra.gmra.mxu0 %vm1208_vm3, %v2655_v52  ;;  %v2654_v38 = vmul.f32 %v4888_v0, %v4884_v44 }
0x1442   : > { %4669 = vmatpush3.bf16.xpose.msra.mxu0 %v2763_v34  ;;  %4670 = vmatprep.mubr.msk.bf16.mxu0 %vm4951_vm2, %v4950_v36 }
0x1443   : > { %v2656_v56 = vpack.c.bf16 %v2654_v38, %v2654_v38  ;;  %4680 = vmatprep.subr.bf16.mxu0 %v4950_v36 }
0x1445   : > { %4665 = vmatmul.mubr.msk.bf16.vlgmr.msra.gmra.mxu1 %vm1208_vm3, %v2656_v56 }
0x1446   : > { %4675 = vmatpush3.bf16.xpose.msra.mxu1 %v2813_v57  ;;  %4676 = vmatprep.mubr.msk.bf16.mxu1 %vm4951_vm2, %v4950_v36 }
0x1447   : > { %4686 = vmatprep.subr.bf16.mxu1 %v4950_v36 }
0x1449   : > { %4671 = vmatmul.mubr.msk.bf16.vlgmr.msra.gmra.mxu0 %vm1208_vm3, %v2756_v58 }
0x144a   : > { %4682 = vmatprep.mubr.msk.bf16.mxu0 %vm4951_vm2, %v4950_v36 }
0x144d   : > { %4677 = vmatmul.mubr.msk.bf16.vlgmr.msra.gmra.mxu1 %vm1208_vm3, %v2806_v59 }
0x144e   : > { %4688 = vmatprep.mubr.msk.bf16.mxu1 %vm4951_vm2, %v4950_v36 }
0x1501   : > { %v2699_v61 = vpop.f32.mrf.mxu0 }
0x1502   : > { %2753 = vst.msk [vmem:[#allocation2] sm:$0xff] %vm1208_vm3, %v2699_v61 }
0x1503   : > { %v4660_v62 = vpop.f32.mrf.mxu0 }
0x1505   : > { %v2702_v63 = vpop.f32.mrf.mxu0  ;;  %v2747_v1 = vpop.f32.mrf.mxu1 }
0x1506   : > { %2754 = vst.msk [vmem:[#allocation2 + $0x8] sm:$0xff] %vm1208_vm3, %v2747_v1 }
0x1507   : > { %v4661_v2 = vpop.f32.mrf.mxu0  ;;  %v4666_v3 = vpop.f32.mrf.mxu1 }
0x1509   : > { %v2750_v4 = vpop.f32.mrf.mxu1  ;;  %v2799_v6 = vpop.f32.mrf.mxu0 }
0x150a   : > { %v2855_v7 = vmul.f32 0.35355338, %v2799_v6 }
0x150b   : > { %v4667_v8 = vpop.f32.mrf.mxu1  ;;  %v4672_v9 = vpop.f32.mrf.mxu0 }
0x150c   : > { %v2857_v10 = vsel %vm1208_vm3, %v2855_v7, -inf }
0x150d   : > { %v2849_v12 = vpop.f32.mrf.mxu1  ;;  %2858 = vmax.xlane.f32.xlu0 %v2857_v10  ;;  %v2802_v13 = vpop.f32.mrf.mxu0 }
0x150e   : > { %v2856_v14 = vmul.f32 0.35355338, %v2849_v12 }
0x150f   : > { %v4673_v16 = vpop.f32.mrf.mxu0  ;;  %v4678_v17 = vpop.f32.mrf.mxu1 }
0x1510   : > { %v2860_v18 = vsel %vm1208_vm3, %v2856_v14, -inf }
0x1511   : > { %2861 = vmax.xlane.f32.xlu1 %v2860_v18  ;;  %v2852_v19 = vpop.f32.mrf.mxu1 }
0x1513   : > { %v4679_v20 = vpop.f32.mrf.mxu1 }
0x1522   : > { %2929 = vrot.lane.b32.xlu1 %v5485_v15, %s5788_s20 }
0x1526   : > { %2989 = vrot.lane.b32.xlu1 %v5481_v11, %s5789_s2 }
0x152a   : > { %3039 = vrot.lane.b32.xlu1 %v5485_v15, %s5789_s2  ;;  %s5802_s2 = sld [smem:[#allocation23_spill]] }
0x152e   : > { %3037 = vrot.lane.b32.xlu1 %v5485_v15, %s5790_s1 }
0x1596   : > { %v2859_v21 = vpop.xlane.xlu0 %2858 }
0x1597   : > { %v2863_v22 = vsub.f32 %v2855_v7, %v2859_v21 }
0x1599   : > { %v2865_v23 = vmul.f32 1.442695, %v2863_v22 }
0x159a   : > { %v2862_v24 = vpop.xlane.xlu1 %2861 }
0x159b   : > { %4889 = vpow2.f32 %v2865_v23  ;;  %v2864_v25 = vsub.f32 %v2856_v14, %v2862_v24 }
0x159d   : > { %v2867_v26 = vmul.f32 1.442695, %v2864_v25 }
0x159e   : > { %v2930_v27 = vpop.permute.xlu1 %2929 }
0x159f   : > { %4891 = vpow2.f32 %v2867_v26  ;;  %v2935_v28 = vsel %vm1335_vm4, %v2930_v27, 0 }
0x15a0   : > { %4687 = vmatpush3.bf16.msra.mxu1 %v2935_v28 }
0x15a1   : > { %4698 = vmatprep.subr.bf16.mxu1 %v4950_v36 }
0x15a2   : > { %v2990_v41 = vpop.permute.xlu1 %2989 }
0x15a3   : > { %v2995_v44 = vsel %vm1208_vm3, %v2990_v41, 0 }
0x15a6   : > { %v3040_v54 = vpop.permute.xlu1 %3039 }
0x15a7   : > { %v3045_v47 = vsel %vm1208_vm3, %v3040_v54, 0 }
0x15a8   : > { %v4890_v29 = vpop.eup %4889 }
0x15a9   : > { %v2869_v30 = vsel %vm1208_vm3, %v4890_v29, 0.0 }
0x15aa   : > { %2870 = vadd.xlane.f32.xlu0 %v2869_v30  ;;  %v3038_v49 = vpop.permute.xlu1 %3037 }
0x15ac   : > { %v4892_v31 = vpop.eup %4891 }
0x15ad   : > { %v2872_v32 = vsel %vm1208_vm3, %v4892_v31, 0.0 }
0x15ae   : > { %2873 = vadd.xlane.f32.xlu0 %v2872_v32 }
0x15c4   : > { %2881 = vrot.lane.b32.xlu0 %v5481_v11, %s5788_s20 }
0x15c8   : > { %2987 = vrot.lane.b32.xlu0 %v5481_v11, %s5790_s1  ;;  %s1010_s1 = scalar_lea.vmem %s5802_s2, %s5139_s3 }
0x1633   : > { %v2871_v33 = vpop.xlane.xlu0 %2870 }
0x1634   : > { %4893 = vrcp.f32 %v2871_v33 }
0x1637   : > { %v2874_v35 = vpop.xlane.xlu0 %2873 }
0x1638   : > { %4895 = vrcp.f32 %v2874_v35 }
0x163b   : > { %v2882_v37 = vpop.permute.xlu0 %2881 }
0x163c   : > { %v2887_v39 = vsel %vm1335_vm4, %v2882_v37, 0 }
0x163d   : > { %4681 = vmatpush3.bf16.msra.mxu0 %v2887_v39 }
0x163e   : > { %4692 = vmatprep.subr.bf16.mxu0 %v4950_v36 }
0x163f   : > { %v2988_v48 = vpop.permute.xlu0 %2987 }
0x1641   : > { %v4894_v40 = vpop.eup %4893 }
0x1642   : > { %v2877_v42 = vmul.f32 %v4894_v40, %v4890_v29 }
0x1644   : > { %v2879_v53 = vpack.c.bf16 %v2877_v42, %v2877_v42 }
0x1645   : > { %v4896_v43 = vpop.eup %4895 }
0x1646   : > { %4683 = vmatmul.mubr.msk.bf16.vlgmr.msra.gmra.mxu0 %vm1208_vm3, %v2879_v53  ;;  %v2878_v45 = vmul.f32 %v4896_v43, %v4892_v31 }
0x1647   : > { %4693 = vmatpush3.bf16.xpose.msra.mxu0 %v2995_v44  ;;  %4694 = vmatprep.mubr.msk.bf16.mxu0 %vm4951_vm2, %v4950_v36 }
0x1648   : > { %v2880_v46 = vpack.c.bf16 %v2878_v45, %v2878_v45  ;;  %4704 = vmatprep.subr.bf16.mxu0 %v4950_v36 }
0x164a   : > { %4689 = vmatmul.mubr.msk.bf16.vlgmr.msra.gmra.mxu1 %vm1208_vm3, %v2880_v46 }
0x164b   : > { %4699 = vmatpush3.bf16.xpose.msra.mxu1 %v3045_v47  ;;  %4700 = vmatprep.mubr.msk.bf16.mxu1 %vm4951_vm2, %v4950_v36 }
0x164c   : > { %4710 = vmatprep.subr.bf16.mxu1 %v4950_v36 }
0x164e   : > { %4695 = vmatmul.mubr.msk.bf16.vlgmr.msra.gmra.mxu0 %vm1208_vm3, %v2988_v48 }
0x164f   : > { %4706 = vmatprep.mubr.msk.bf16.mxu0 %vm4951_vm2, %v4950_v36 }
0x1652   : > { %4701 = vmatmul.mubr.msk.bf16.vlgmr.msra.gmra.mxu1 %vm1208_vm3, %v3038_v49 }
0x1653   : > { %4712 = vmatprep.mubr.msk.bf16.mxu1 %vm4951_vm2, %v4950_v36 }
0x1706   : > { %v5575_v50 = vpop.f32.mrf.mxu0 }
0x1708   : > { %v4684_v51 = vpop.f32.mrf.mxu0 }
0x170a   : > { %v2926_v52 = vpop.f32.mrf.mxu0  ;;  %v5577_v0 = vpop.f32.mrf.mxu1 }
0x170c   : > { %v4685_v34 = vpop.f32.mrf.mxu0  ;;  %v4690_v38 = vpop.f32.mrf.mxu1 }
0x170e   : > { %v2974_v55 = vpop.f32.mrf.mxu1  ;;  %v3031_v56 = vpop.f32.mrf.mxu0 }
0x170f   : > { %v3087_v57 = vmul.f32 0.35355338, %v3031_v56 }
0x1710   : > { %v4691_v58 = vpop.f32.mrf.mxu1  ;;  %v4696_v59 = vpop.f32.mrf.mxu0 }
0x1711   : > { %v3089_v61 = vsel %vm1208_vm3, %v3087_v57, -inf }
0x1712   : > { %v3081_v62 = vpop.f32.mrf.mxu1  ;;  %3090 = vmax.xlane.f32.xlu0 %v3089_v61  ;;  %v3034_v63 = vpop.f32.mrf.mxu0 }
0x1713   : > { %v3088_v1 = vmul.f32 0.35355338, %v3081_v62 }
0x1714   : > { %v4697_v2 = vpop.f32.mrf.mxu0  ;;  %v4702_v3 = vpop.f32.mrf.mxu1 }
0x1715   : > { %v3092_v4 = vsel %vm1208_vm3, %v3088_v1, -inf }
0x1716   : > { %3093 = vmax.xlane.f32.xlu1 %v3092_v4  ;;  %v3084_v6 = vpop.f32.mrf.mxu1 }
0x1718   : > { %v4703_v7 = vpop.f32.mrf.mxu1 }
0x1727   : > { %3161 = vrot.lane.b32.xlu1 %v5485_v15, %s5791_s16 }
0x172b   : > { %3221 = vrot.lane.b32.xlu1 %v5481_v11, %s5792_s30 }
0x172f   : > { %3271 = vrot.lane.b32.xlu1 %v5485_v15, %s5792_s30 }
0x1733   : > { %3269 = vrot.lane.b32.xlu1 %v5485_v15, %s5793_s26 }
0x179b   : > { %v3091_v8 = vpop.xlane.xlu0 %3090 }
0x179c   : > { %v3095_v9 = vsub.f32 %v3087_v57, %v3091_v8 }
0x179e   : > { %v3097_v10 = vmul.f32 1.442695, %v3095_v9 }
0x179f   : > { %v3094_v12 = vpop.xlane.xlu1 %3093 }
0x17a0   : > { %4897 = vpow2.f32 %v3097_v10  ;;  %v3096_v13 = vsub.f32 %v3088_v1, %v3094_v12 }
0x17a2   : > { %v3099_v14 = vmul.f32 1.442695, %v3096_v13 }
0x17a3   : > { %v3162_v16 = vpop.permute.xlu1 %3161 }
0x17a4   : > { %4899 = vpow2.f32 %v3099_v14  ;;  %v3167_v17 = vsel %vm1335_vm4, %v3162_v16, 0 }
0x17a5   : > { %4711 = vmatpush3.bf16.msra.mxu1 %v3167_v17 }
0x17a6   : > { %4722 = vmatprep.subr.bf16.mxu1 %v4950_v36 }
0x17a7   : > { %v3222_v27 = vpop.permute.xlu1 %3221 }
0x17a8   : > { %v3227_v31 = vsel %vm1208_vm3, %v3222_v27, 0 }
0x17ab   : > { %v3272_v33 = vpop.permute.xlu1 %3271 }
0x17ac   : > { %v3277_v37 = vsel %vm1208_vm3, %v3272_v33, 0 }
0x17ad   : > { %v4898_v18 = vpop.eup %4897 }
0x17ae   : > { %v3101_v19 = vsel %vm1208_vm3, %v4898_v18, 0.0 }
0x17af   : > { %3102 = vadd.xlane.f32.xlu0 %v3101_v19  ;;  %v3270_v40 = vpop.permute.xlu1 %3269 }
0x17b1   : > { %v4900_v20 = vpop.eup %4899 }
0x17b2   : > { %v3104_v21 = vsel %vm1208_vm3, %v4900_v20, 0.0 }
0x17b3   : > { %3105 = vadd.xlane.f32.xlu0 %v3104_v21 }
0x17c9   : > { %3113 = vrot.lane.b32.xlu0 %v5481_v11, %s5791_s16 }
0x17cd   : > { %3219 = vrot.lane.b32.xlu0 %v5481_v11, %s5793_s26 }
0x1838   : > { %v3103_v22 = vpop.xlane.xlu0 %3102 }
0x1839   : > { %4901 = vrcp.f32 %v3103_v22 }
0x183c   : > { %v3106_v23 = vpop.xlane.xlu0 %3105 }
0x183d   : > { %4903 = vrcp.f32 %v3106_v23  ;;  %v4821_v23 = vld [vmem:[%s5183_s25 + $0x18] sm:$0xff]  }
0x1840   : > { %v3114_v24 = vpop.permute.xlu0 %3113 }
0x1841   : > { %v3119_v25 = vsel %vm1335_vm4, %v3114_v24, 0  ;;  %v4822_v24 = vld [vmem:[%s5183_s25 + $0x10] sm:$0xff]   ;;  %s5799_s25 = sld [smem:[#allocation8_spill]] }
0x1842   : > { %4705 = vmatpush3.bf16.msra.mxu0 %v3119_v25 }
0x1843   : > { %4716 = vmatprep.subr.bf16.mxu0 %v4950_v36 }
0x1844   : > { %v3220_v39 = vpop.permute.xlu0 %3219 }
0x1846   : > { %v4902_v26 = vpop.eup %4901 }
0x1847   : > { %v3109_v28 = vmul.f32 %v4902_v26, %v4898_v18 }
0x1849   : > { %v3111_v29 = vpack.c.bf16 %v3109_v28, %v3109_v28 }
0x184a   : > { %v4904_v30 = vpop.eup %4903 }
0x184b   : > { %4707 = vmatmul.mubr.msk.bf16.vlgmr.msra.gmra.mxu0 %vm1208_vm3, %v3111_v29  ;;  %v3110_v32 = vmul.f32 %v4904_v30, %v4900_v20 }
0x184c   : > { %4717 = vmatpush3.bf16.xpose.msra.mxu0 %v3227_v31  ;;  %4718 = vmatprep.mubr.msk.bf16.mxu0 %vm4951_vm2, %v4950_v36 }
0x184d   : > { %v3112_v35 = vpack.c.bf16 %v3110_v32, %v3110_v32  ;;  %4728 = vmatprep.subr.bf16.mxu0 %v4950_v36 }
0x184f   : > { %4713 = vmatmul.mubr.msk.bf16.vlgmr.msra.gmra.mxu1 %vm1208_vm3, %v3112_v35 }
0x1850   : > { %4723 = vmatpush3.bf16.xpose.msra.mxu1 %v3277_v37  ;;  %4724 = vmatprep.mubr.msk.bf16.mxu1 %vm4951_vm2, %v4950_v36 }
0x1851   : > { %4734 = vmatprep.subr.bf16.mxu1 %v4950_v36 }
0x1853   : > { %4719 = vmatmul.mubr.msk.bf16.vlgmr.msra.gmra.mxu0 %vm1208_vm3, %v3220_v39 }
0x1854   : > { %4730 = vmatprep.mubr.msk.bf16.mxu0 %vm4951_vm2, %v4950_v36 }
0x1857   : > { %4725 = vmatmul.mubr.msk.bf16.vlgmr.msra.gmra.mxu1 %vm1208_vm3, %v3270_v40 }
0x1858   : > { %4736 = vmatprep.mubr.msk.bf16.mxu1 %vm4951_vm2, %v4950_v36 }
0x190b   : > { %v3155_v41 = vpop.f32.mrf.mxu0 }
0x190d   : > { %v4708_v42 = vpop.f32.mrf.mxu0 }
0x190f   : > { %v3158_v53 = vpop.f32.mrf.mxu0  ;;  %v3203_v43 = vpop.f32.mrf.mxu1 }
0x1911   : > { %v4709_v44 = vpop.f32.mrf.mxu0  ;;  %v4714_v45 = vpop.f32.mrf.mxu1 }
0x1913   : > { %v3206_v54 = vpop.f32.mrf.mxu1  ;;  %v3263_v46 = vpop.f32.mrf.mxu0 }
0x1914   : > { %v3319_v47 = vmul.f32 0.35355338, %v3263_v46 }
0x1915   : > { %v4715_v48 = vpop.f32.mrf.mxu1  ;;  %v4720_v49 = vpop.f32.mrf.mxu0 }
0x1916   : > { %v3321_v51 = vsel %vm1208_vm3, %v3319_v47, -inf }
0x1917   : > { %v3313_v52 = vpop.f32.mrf.mxu1  ;;  %3322 = vmax.xlane.f32.xlu0 %v3321_v51  ;;  %v3266_v34 = vpop.f32.mrf.mxu0 }
0x1918   : > { %v3320_v38 = vmul.f32 0.35355338, %v3313_v52 }
0x1919   : > { %v4721_v55 = vpop.f32.mrf.mxu0  ;;  %v4726_v56 = vpop.f32.mrf.mxu1 }
0x191a   : > { %v3324_v57 = vsel %vm1208_vm3, %v3320_v38, -inf }
0x191b   : > { %3325 = vmax.xlane.f32.xlu1 %v3324_v57  ;;  %v3316_v58 = vpop.f32.mrf.mxu1 }
0x191d   : > { %v4727_v59 = vpop.f32.mrf.mxu1 }
0x192c   : > { %3393 = vrot.lane.b32.xlu1 %v5485_v15, %s5794_s5 }
0x1930   : > { %2979 = vrot.lane.b32.xlu1 %v5575_v50, %s5795_s0 }
0x1934   : > { %2981 = vrot.lane.b32.xlu1 %v5577_v0, %s5795_s0 }
0x1938   : > { %3213 = vrot.lane.b32.xlu1 %v3203_v43, %s5796_s17 }
0x19a0   : > { %v3323_v61 = vpop.xlane.xlu0 %3322 }
0x19a1   : > { %v3327_v62 = vsub.f32 %v3319_v47, %v3323_v61  ;;  %v4823_v61 = vld [vmem:[%s5188_s27 + $0x18] sm:$0xff]  }
0x19a3   : > { %v3329_v63 = vmul.f32 1.442695, %v3327_v62 }
0x19a4   : > { %v3326_v1 = vpop.xlane.xlu1 %3325 }
0x19a5   : > { %4905 = vpow2.f32 %v3329_v63  ;;  %v3328_v2 = vsub.f32 %v3320_v38, %v3326_v1 }
0x19a7   : > { %v3331_v3 = vmul.f32 1.442695, %v3328_v2 }
0x19a8   : > { %v3394_v4 = vpop.permute.xlu1 %3393 }
0x19a9   : > { %4907 = vpow2.f32 %v3331_v3  ;;  %v3399_v6 = vsel %vm1335_vm4, %v3394_v4, 0 }
0x19aa   : > { %4735 = vmatpush3.bf16.msra.mxu1 %v3399_v6 }
0x19ab   : > { %4748 = vmatprep.subr.bf16.mxu1 %v4950_v36 }
0x19ac   : > { %v2980_v15 = vpop.permute.xlu1 %2979 }
0x19ad   : > { %2985 = vst.msk [vmem:[#allocation2] sm:$0xff] %vm1659_vm5, %v2980_v15 }
0x19b0   : > { %v2982_v50 = vpop.permute.xlu1 %2981 }
0x19b1   : > { %2986 = vst.msk [vmem:[#allocation2 + $0x8] sm:$0xff] %vm1659_vm5, %v2982_v50  ;;  %v4358_v50 = vld [vmem:[%s5411_s19 + $0x1] ss:$0 sm:$0xff] }
0x19b2   : > { %v4906_v0 = vpop.eup %4905 }
0x19b3   : > { %v3333_v7 = vsel %vm1208_vm3, %v4906_v0, 0.0 }
0x19b4   : > { %v3214_v8 = vpop.permute.xlu1 %3213  ;;  %3334 = vadd.xlane.f32.xlu0 %v3333_v7 }
0x19b5   : > { %3218 = vst.msk [vmem:[#allocation2 + $0x8] sm:$0xff] %vm1892_vm6, %v3214_v8 }
0x19b6   : > { %v4908_v9 = vpop.eup %4907 }
0x19b7   : > { %v3336_v10 = vsel %vm1208_vm3, %v4908_v9, 0.0 }
0x19b8   : > { %3337 = vadd.xlane.f32.xlu0 %v3336_v10 }
0x19ce   : > { %3345 = vrot.lane.b32.xlu0 %v5481_v11, %s5794_s5 }
0x19d2   : > { %3211 = vrot.lane.b32.xlu0 %v3155_v41, %s5796_s17  ;;  %v4352_v41 = vld [vmem:[%s5394_s18 + $0x1] ss:$0 sm:$0xff] }
0x1a3d   : > { %v3335_v12 = vpop.xlane.xlu0 %3334 }
0x1a3e   : > { %4909 = vrcp.f32 %v3335_v12 }
0x1a41   : > { %v3338_v13 = vpop.xlane.xlu0 %3337 }
0x1a42   : > { %4911 = vrcp.f32 %v3338_v13 }
0x1a45   : > { %v3346_v14 = vpop.permute.xlu0 %3345 }
0x1a46   : > { %v3351_v16 = vsel %vm1335_vm4, %v3346_v14, 0 }
0x1a47   : > { %4729 = vmatpush3.bf16.msra.mxu0 %v3351_v16  ;;  %v4825_v16 = vld [vmem:[%s5103_s28 + $0x38] sm:$0xff]  }
0x1a48   : > { %4740 = vmatprep.subr.bf16.mxu0 %v4950_v36 }
0x1a49   : > { %v3212_v17 = vpop.permute.xlu0 %3211 }
0x1a4a   : > { %3217 = vst.msk [vmem:[#allocation2] sm:$0xff] %vm1892_vm6, %v3212_v17  ;;  %v4826_v17 = vld [vmem:[%s5103_s28 + $0x30] sm:$0xff]  }
0x1a4b   : > { %v4910_v18 = vpop.eup %4909 }
0x1a4c   : > { %v3341_v19 = vmul.f32 %v4910_v18, %v4906_v0  ;;  %v4827_v18 = vld [vmem:[%s5103_s28 + $0x28] sm:$0xff]  }
0x1a4e   : > { %v3343_v11 = vpack.c.bf16 %v3341_v19, %v3341_v19  ;;  %v4828_v19 = vld [vmem:[%s5103_s28 + $0x20] sm:$0xff]   ;;  %s5798_s28 = sld [smem:[#allocation7_spill]] }
0x1a4f   : > { %v4912_v20 = vpop.eup %4911 }
0x1a50   : > { %4731 = vmatmul.mubr.msk.bf16.vlgmr.msra.gmra.mxu0 %vm1208_vm3, %v3343_v11  ;;  %v3342_v21 = vmul.f32 %v4912_v20, %v4908_v9  ;;  %v4359_v9 = vld [vmem:[%s5418_s6 + $0x1] ss:$0 sm:$0xff] }
0x1a51   : > { %4744 = vmatprep.mubr.msk.bf16.mxu0 %vm4951_vm2, %v4950_v36  ;;  %4741 = vmatpush3.bf16.msra.mxu0 %v4821_v23  ;;  %v4365_v11 = vld [vmem:[%s5436_s29 + $0x1] ss:$0 sm:$0xff]  ;;  %s5801_s29 = sld [smem:[#allocation22_spill]] }
0x1a52   : > { %v3344_v22 = vpack.c.bf16 %v3342_v21, %v3342_v21  ;;  %4742 = vmatprep.subr.bf16.mxu0 %v4950_v36 }
0x1a54   : > { %4737 = vmatmul.mubr.msk.bf16.vlgmr.msra.gmra.mxu1 %vm1208_vm3, %v3344_v22 }
0x1a55   : > { %4752 = vmatprep.mubr.msk.bf16.mxu1 %vm4951_vm2, %v4950_v36  ;;  %4743 = vmatpush3.bf16.msra.mxu0 %v4822_v24 }
0x1a56   : > { %4756 = vmatprep.subr.bf16.mxu0 %v4950_v36  ;;  %4749 = vmatpush3.bf16.msra.mxu1 %v4823_v61 }
0x1a57   : > { %4750 = vmatprep.subr.bf16.mxu1 %v4950_v36 }
0x1b10   : > { %v3387_v25 = vpop.f32.mrf.mxu0 }
0x1b11   : > { %3443 = vrot.lane.b32.xlu0 %v3387_v25, %s5797_s21 }
0x1b12   : > { %v4732_v26 = vpop.f32.mrf.mxu0 }
0x1b14   : > { %v3390_v27 = vpop.f32.mrf.mxu0  ;;  %v3435_v28 = vpop.f32.mrf.mxu1 }
0x1b15   : > { %3445 = vrot.lane.b32.xlu1 %v3435_v28, %s5797_s21 }
0x1b16   : > { %v4733_v29 = vpop.f32.mrf.mxu0  ;;  %v4738_v30 = vpop.f32.mrf.mxu1 }
0x1b18   : > { %v3438_v31 = vpop.f32.mrf.mxu1 }
0x1b1a   : > { %v4739_v32 = vpop.f32.mrf.mxu1 }
0x1b83   : > { %v3444_v33 = vpop.permute.xlu0 %3443 }
0x1b84   : > { %3449 = vst.msk [vmem:[#allocation2] sm:$0xff] %vm2125_vm7, %v3444_v33 }
0x1b87   : > { %v3446_v35 = vpop.permute.xlu1 %3445 }
0x1b88   : > { %3450 = vst.msk [vmem:[#allocation2 + $0x8] sm:$0xff] %vm2125_vm7, %v3446_v35 }
0x1b8b   : > { %v3451_v37 = vld [vmem:[#allocation2] sm:$0xff] }
0x1b8f   : > { %v3452_v39 = vld [vmem:[#allocation2 + $0x8] sm:$0xff] }
0x1b90   : > { %v3458_v40 = vpack.c.bf16 %v3452_v39, %v3451_v37 }
0x1b92   : > { %4745 = vmatmul.mubr.msk.bf16.vlgmr.msra.gmra.mxu0 %vm1091_vm1, %v3458_v40 }
0x1b93   : > { %4764 = vmatprep.mubr.msk.bf16.mxu0 %vm4951_vm2, %v4950_v36  ;;  %4757 = vmatpush3.bf16.msra.mxu0 %v4825_v16 }
0x1b94   : > { %4758 = vmatprep.subr.bf16.mxu0 %v4950_v36 }
0x1b97   : > { %4759 = vmatpush3.bf16.msra.mxu0 %v4826_v17  ;;  %v4387_v17 = vld [vmem:[%s5468_s24 + $0x1] ss:$0 sm:$0xff] }
0x1b98   : > { %4760 = vmatprep.subr.bf16.mxu0 %v4950_v36 }
0x1b9b   : > { %4761 = vmatpush3.bf16.msra.mxu0 %v4827_v18 }
0x1b9c   : > { %4762 = vmatprep.subr.bf16.mxu0 %v4950_v36 }
0x1b9f   : > { %4763 = vmatpush3.bf16.msra.mxu0 %v4828_v19 }
0x1c52   : > { %v3516_v42 = vpop.f32.mrf.mxu0 }
0x1c53   : > { %v3517_v53 = vadd.f32 %v4352_v41, %v3516_v42 }
0x1c54   : > { %v4746_v43 = vpop.f32.mrf.mxu0 }
0x1c55   : > { %v3523_v44 = vadd.f32 %v3517_v53, %v5471_v60 }
0x1c56   : > { %v3519_v45 = vpop.f32.mrf.mxu0 }
0x1c57   : > { %v3520_v54 = vadd.f32 %v4352_v41, %v3519_v45  ;;  %v3529_v46 = vsel %vm1091_vm1, %v3523_v44, 0.0 }
0x1c58   : > { %3530 = vadd.xlane.f32.xlu0 %v3529_v46  ;;  %v4747_v47 = vpop.f32.mrf.mxu0  ;;  %v4378_v46 = vld [vmem:[%s5446_s22 + $0x1] ss:$0 sm:$0xff]  ;;  %s1006_s22 = scalar_lea.vmem %s5801_s29, %s5805_s23 }
0x1c59   : > { %v3524_v48 = vadd.f32 %v3520_v54, %v5473_v5  ;;  %v4824_v5 = vld [vmem:[%s5188_s27 + $0x10] sm:$0xff]  }
0x1c5a   : > { %4751 = vmatpush3.bf16.msra.mxu1 %v4824_v5 }
0x1c5b   : > { %v3532_v49 = vsel %vm1091_vm1, %v3524_v48, 0.0  ;;  %4768 = vmatprep.subr.bf16.mxu1 %v4950_v36 }
0x1c5c   : > { %3533 = vadd.xlane.f32.xlu1 %v3532_v49 }
0x1ce1   : > { %v3531_v51 = vpop.xlane.xlu0 %3530 }
0x1ce2   : > { %v3535_v52 = vmul.f32 0.03125, %v3531_v51 }
0x1ce4   : > { %v3537_v34 = vsub.f32 %v3523_v44, %v3535_v52 }
0x1ce5   : > { %v3534_v38 = vpop.xlane.xlu1 %3533 }
0x1ce6   : > { %v3536_v55 = vmul.f32 0.03125, %v3534_v38  ;;  %v3539_v56 = vmul.f32 %v3537_v34, %v3537_v34 }
0x1ce8   : > { %v3538_v60 = vsub.f32 %v3524_v48, %v3536_v55  ;;  %v3541_v57 = vsel %vm1091_vm1, %v3539_v56, 0.0 }
0x1ce9   : > { %3542 = vadd.xlane.f32.xlu0 %v3541_v57 }
0x1cea   : > { %v3540_v58 = vmul.f32 %v3538_v60, %v3538_v60 }
0x1cec   : > { %v3544_v59 = vsel %vm1091_vm1, %v3540_v58, 0.0 }
0x1ced   : > { %3545 = vadd.xlane.f32.xlu0 %v3544_v59 }
0x1d72   : > { %v3543_v62 = vpop.xlane.xlu0 %3542 }
0x1d73   : > { %v3547_v63 = vmul.f32 0.03125, %v3543_v62 }
0x1d75   : > { %v3549_v1 = vadd.f32 1e-12, %v3547_v63 }
0x1d76   : > { %v3546_v2 = vpop.xlane.xlu0 %3545 }
0x1d77   : > { %4913 = vrsqrt.f32 %v3549_v1  ;;  %v3548_v3 = vmul.f32 0.03125, %v3546_v2 }
0x1d79   : > { %v3550_v4 = vadd.f32 1e-12, %v3548_v3 }
0x1d7b   : > { %4915 = vrsqrt.f32 %v3550_v4  ;;  %v4829_v4 = vld [vmem:[%s5798_s28 + $0x8] sm:$0xff]  }
0x1d84   : > { %v4914_v6 = vpop.eup %4913 }
0x1d85   : > { %v3553_v15 = vmul.f32 %v4914_v6, %v3537_v34  ;;  %v4830_v6 = vld [vmem:[%s5798_s28] sm:$0xff]  }
0x1d87   : > { %v3561_v8 = vmul.f32 %v4358_v50, %v3553_v15 }
0x1d88   : > { %v4916_v0 = vpop.eup %4915 }
0x1d89   : > { %v3554_v7 = vmul.f32 %v4916_v0, %v3538_v60  ;;  %v3569_v12 = vadd.f32 %v4359_v9, %v3561_v8 }
0x1d8b   : > { %v3562_v10 = vmul.f32 %v4358_v50, %v3554_v7 }
0x1d8d   : > { %v3570_v13 = vadd.f32 %v4359_v9, %v3562_v10 }
0x1d8f   : > { %v3576_v14 = vpack.c.bf16 %v3570_v13, %v3569_v12 }
0x1d91   : > { %4753 = vmatmul.mubr.msk.bf16.vlgmr.msra.gmra.mxu1 %vm1091_vm1, %v3576_v14 }
0x1d92   : > { %4772 = vmatprep.mubr.msk.bf16.mxu1 %vm4951_vm2, %v4950_v36  ;;  %4769 = vmatpush3.bf16.msra.mxu1 %v4829_v4 }
0x1d93   : > { %4770 = vmatprep.subr.bf16.mxu1 %v4950_v36 }
0x1d96   : > { %4771 = vmatpush3.bf16.msra.mxu1 %v4830_v6 }
0x1d97   : > { %4776 = vmatprep.subr.bf16.mxu1 %v4950_v36 }
0x1e51   : > { %v3634_v20 = vpop.f32.mrf.mxu1 }
0x1e52   : > { %v3635_v21 = vadd.f32 %v4365_v11, %v3634_v20 }
0x1e53   : > { %v4754_v22 = vpop.f32.mrf.mxu1 }
0x1e54   : > { %v3643_v23 = vmul.f32 0.044715, %v3635_v21  ;;  %v3641_v42 = vmul.f32 0.5, %v3635_v21 }
0x1e55   : > { %v3637_v24 = vpop.f32.mrf.mxu1 }
0x1e56   : > { %v3645_v25 = vmul.f32 %v3643_v23, %v3635_v21  ;;  %v3638_v26 = vadd.f32 %v4365_v11, %v3637_v24 }
0x1e57   : > { %v4755_v27 = vpop.f32.mrf.mxu1 }
0x1e58   : > { %v3647_v28 = vmul.f32 %v3645_v25, %v3635_v21  ;;  %v3644_v29 = vmul.f32 0.044715, %v3638_v26  ;;  %v3642_v53 = vmul.f32 0.5, %v3638_v26 }
0x1e5a   : > { %v3649_v30 = vadd.f32 %v3647_v28, %v3635_v21  ;;  %v3646_v31 = vmul.f32 %v3644_v29, %v3638_v26  ;;  %v4831_v28 = vld [vmem:[%s5799_s25 + $0x8] sm:$0xff]   ;;  %v4832_v29 = vld [vmem:[%s5799_s25] sm:$0xff]  }
0x1e5c   : > { %v3651_v32 = vmul.f32 0.7978846, %v3649_v30  ;;  %v3648_v33 = vmul.f32 %v3646_v31, %v3638_v26 }
0x1e5e   : > { %4917 = vtanh.f32 %v3651_v32  ;;  %v3650_v35 = vadd.f32 %v3648_v33, %v3638_v26 }
0x1e60   : > { %v3652_v37 = vmul.f32 0.7978846, %v3650_v35 }
0x1e62   : > { %4919 = vtanh.f32 %v3652_v37 }
0x1e6b   : > { %v4918_v39 = vpop.eup %4917 }
0x1e6c   : > { %v3655_v40 = vadd.f32 1.0, %v4918_v39 }
0x1e6e   : > { %v3657_v44 = vmul.f32 %v3655_v40, %v3641_v42 }
0x1e6f   : > { %v4920_v41 = vpop.eup %4919 }
0x1e70   : > { %v3656_v43 = vadd.f32 1.0, %v4920_v41 }
0x1e72   : > { %v3658_v45 = vmul.f32 %v3656_v43, %v3642_v53 }
0x1e74   : > { %v3668_v54 = vpack.c.bf16 %v3658_v45, %v3657_v44 }
0x1e76   : > { %4765 = vmatmul.mubr.msk.bf16.vlgmr.msra.gmra.mxu0 %vm2370_vm8, %v3668_v54 }
0x1f36   : > { %v3738_v47 = vpop.f32.mrf.mxu0 }
0x1f37   : > { %v3739_v48 = vadd.f32 %v4378_v46, %v3738_v47 }
0x1f38   : > { %v4766_v49 = vpop.f32.mrf.mxu0 }
0x1f39   : > { %v3745_v51 = vadd.f32 %v3739_v48, %v3569_v12  ;;  %v4386_v12 = vld [vmem:[%s5461_s14 + $0x1] ss:$0 sm:$0xff]  ;;  %s5800_s14 = sld [smem:[#allocation20_spill]] }
0x1f3a   : > { %v3741_v52 = vpop.f32.mrf.mxu0 }
0x1f3b   : > { %v3742_v34 = vadd.f32 %v4378_v46, %v3741_v52  ;;  %v3751_v38 = vsel %vm1091_vm1, %v3745_v51, 0.0 }
0x1f3c   : > { %3752 = vadd.xlane.f32.xlu1 %v3751_v38  ;;  %v4767_v55 = vpop.f32.mrf.mxu0 }
0x1f3d   : > { %v3746_v56 = vadd.f32 %v3742_v34, %v3570_v13 }
0x1f3f   : > { %v3754_v60 = vsel %vm1091_vm1, %v3746_v56, 0.0  ;;  %s998_s6 = scalar_lea.vmem %s5800_s14, %s5805_s23 }
0x1f40   : > { %3755 = vadd.xlane.f32.xlu0 %v3754_v60  ;;  %v4388_v30 = vld [vmem:[%s998_s6] ss:$0 sm:$0xff] }
0x1fc5   : > { %v3753_v57 = vpop.xlane.xlu1 %3752 }
0x1fc6   : > { %v3757_v58 = vmul.f32 0.03125, %v3753_v57 }
0x1fc8   : > { %v3759_v59 = vsub.f32 %v3745_v51, %v3757_v58 }
0x1fc9   : > { %v3756_v61 = vpop.xlane.xlu0 %3755 }
0x1fca   : > { %v3758_v5 = vmul.f32 0.03125, %v3756_v61  ;;  %v3761_v62 = vmul.f32 %v3759_v59, %v3759_v59 }
0x1fcc   : > { %v3760_v63 = vsub.f32 %v3746_v56, %v3758_v5  ;;  %v3763_v1 = vsel %vm1091_vm1, %v3761_v62, 0.0 }
0x1fcd   : > { %3764 = vadd.xlane.f32.xlu1 %v3763_v1 }
0x1fce   : > { %v3762_v2 = vmul.f32 %v3760_v63, %v3760_v63 }
0x1fd0   : > { %v3766_v3 = vsel %vm1091_vm1, %v3762_v2, 0.0 }
0x1fd1   : > { %3767 = vadd.xlane.f32.xlu0 %v3766_v3 }
0x2056   : > { %v3765_v15 = vpop.xlane.xlu1 %3764 }
0x2057   : > { %v3769_v50 = vmul.f32 0.03125, %v3765_v15 }
0x2059   : > { %v3771_v0 = vadd.f32 1e-12, %v3769_v50 }
0x205a   : > { %v3768_v7 = vpop.xlane.xlu0 %3767 }
0x205b   : > { %4921 = vrsqrt.f32 %v3771_v0  ;;  %v3770_v8 = vmul.f32 0.03125, %v3768_v7 }
0x205d   : > { %v3772_v9 = vadd.f32 1e-12, %v3770_v8 }
0x205f   : > { %4923 = vrsqrt.f32 %v3772_v9 }
0x2068   : > { %v4922_v10 = vpop.eup %4921 }
0x2069   : > { %v3775_v13 = vmul.f32 %v4922_v10, %v3759_v59 }
0x206b   : > { %v3783_v14 = vmul.f32 %v4386_v12, %v3775_v13 }
0x206c   : > { %v4924_v16 = vpop.eup %4923 }
0x206d   : > { %v3776_v18 = vmul.f32 %v4924_v16, %v3760_v63  ;;  %v3791_v11 = vadd.f32 %v4387_v17, %v3783_v14 }
0x206f   : > { %v3784_v19 = vmul.f32 %v4386_v12, %v3776_v18  ;;  %v3797_v21 = vpack.c.bf16 %v3791_v11, %v3791_v11 }
0x2071   : > { %v3792_v20 = vadd.f32 %v4387_v17, %v3784_v19  ;;  %v3808_v24 = vunpack.c.l.b16 %v3797_v21 }
0x2073   : > { %v3798_v22 = vpack.c.bf16 %v3792_v20, %v3792_v20 }
0x2075   : > { %v3809_v23 = vunpack.c.l.b16 %v3798_v22 }
0x2077   : > { %v3810_v25 = vrot.slane %v3809_v23, 7 }
0x2079   : > { %v3812_v26 = vsel %vm3811_vm9, %v3810_v25, %v3808_v24 }
0x207a   : > { %v3813_v27 = vpack.c.b16 %v3812_v26, %v3812_v26 }
0x207c   : > { %4773 = vmatmul.mubr.msk.bf16.vlgmr.msra.gmra.mxu1 %vm1091_vm1, %v3813_v27 }
0x207d   : > { %4780 = vmatprep.mubr.msk.bf16.mxu1 %vm4951_vm2, %v4950_v36  ;;  %4777 = vmatpush3.bf16.msra.mxu1 %v4831_v28 }
0x207e   : > { %4778 = vmatprep.subr.bf16.mxu1 %v4950_v36  ;;  %v4392_v36 = vld [vmem:[%s1006_s22] ss:$0 sm:$0xff] }
0x2081   : > { %4779 = vmatpush3.bf16.msra.mxu1 %v4832_v29 }
0x213c   : > { %v3863_v31 = vpop.f32.mrf.mxu1 }
0x213d   : > { %v3864_v32 = vadd.f32 %v4388_v30, %v3863_v31 }
0x213e   : > { %v4774_v33 = vpop.f32.mrf.mxu1 }
0x213f   : > { %4925 = vtanh.f32 %v3864_v32 }
0x2140   : > { %v3866_v35 = vpop.f32.mrf.mxu1 }
0x2142   : > { %v4775_v37 = vpop.f32.mrf.mxu1 }
0x214c   : > { %v4926_v39 = vpop.eup %4925 }
0x214d   : > { %v3874_v40 = vpack.c.bf16 %v4926_v39, %v4926_v39 }
0x214f   : > { %4781 = vmatmul.mubr.msk.bf16.vlgmr.msra.gmra.mxu1 %vm1091_vm1, %v3874_v40 }
0x220f   : > { %v3931_v41 = vpop.f32.mrf.mxu1 }
0x2210   : > { %v3932_v42 = vadd.f32 %v4392_v36, %v3931_v41 }
0x2211   : > { %v4782_v53 = vpop.f32.mrf.mxu1 }
0x2212   : > { %3937 = vst [vmem:[%s1010_s1] sm:$0x3] %v3932_v42 }
0x2213   : > { %v3934_v43 = vpop.f32.mrf.mxu1 }
0x2215   : > { %v4783_v44 = vpop.f32.mrf.mxu1 }
0x2216 PF: > { %s5803_s16 = sld [smem:[#allocation6_spill]] }
0x221c   : > { %s38_s0 = sadd.s32 1, %s5803_s16  }
0x221d   : > { %p35_p9 = scmp.ge.s32.totalorder %s38_s0, 4  }
0x221f   :  { %37 = sbr.rel (!%p35_p9) target bundleno = 37 (0x25), region = 222 }

</bundles_post_ra>
